<compile_context>
chip_gen: v7x
topology: tpu7x:2x2x1
jax: 0.10.0
libtpu: 0.0.40
codegen_flags: <defaults>
</compile_context>

<pallas_src>
import jax
import jax.numpy as jnp
import numpy as np
from jax.experimental import pallas as pl
from jax.experimental.pallas import tpu as pltpu

EMBED_DIM = 300      # conv is nn.Conv1d(300, 2H, 3) -> embed_dim must be 300
HIDDEN = 32
POLARITIES = 3
VOCAB = 50
CONV_K = 3


# ----------------------------------------------------------------------------
# The single fused Pallas kernel
# ----------------------------------------------------------------------------
def _td_lstm_fused_kernel(el_ref, er_ref, easp_ref, lenl_ref, lenr_ref,
                          wihl_ref, wihr_ref, bl_ref, br_ref, whh_ref,
                          wc_ref, bc_ref, wp_ref, bp_ref, wt_ref, bt_ref,
                          out_ref):
    e_l = el_ref[...]                                   # [B, T_L, D] (also ctx conv input)
    e_r = er_ref[...]                                   # [B, T_R, D]
    e_asp = easp_ref[...]                               # [B, T_A, D]
    whh = whh_ref[...]                                  # [2H, 8H] block-diag, g-cols pre-scaled x2
    B, T_L, D = e_l.shape
    T_R = e_r.shape[1]
    H = whh.shape[0] // 2
    G = 4 * H
    T = max(T_L, T_R)

    # ---- Phase 1: hoisted input projections (one MXU pass per direction). ----
    gx_l = (jnp.dot(e_l.reshape(B * T_L, D), wihl_ref[...],
                    preferred_element_type=jnp.float32)
            + bl_ref[...]).reshape(B, T_L, G)
    gx_r = (jnp.dot(e_r.reshape(B * T_R, D), wihr_ref[...],
                    preferred_element_type=jnp.float32)
            + br_ref[...]).reshape(B, T_R, G)

    # ---- Loop-invariant constants (hoisted -> no per-step broadcast_in_dim). ----
    lane = jax.lax.broadcasted_iota(jnp.int32, (B, 2 * G), 1)
    is_g = ((lane >= 2 * H) & (lane < 3 * H)) | ((lane >= 6 * H) & (lane < 7 * H))
    g_scale = jnp.where(is_g, 2.0, 1.0).astype(jnp.float32)    # tanh(x) = 2*sigmoid(2x) - 1
    g_shift = jnp.where(is_g, -1.0, 0.0).astype(jnp.float32)
    len_l = jnp.broadcast_to(lenl_ref[...], (B, H))             # [B, H] int32
    len_r = jnp.broadcast_to(lenr_ref[...], (B, H))

    # ---- Phase 2: merged L/R recurrence. ONE [B,2H]x[2H,8H] MXU issue and ONE
    # sigmoid pass per step.  T=8 -> static unroll is fine; for long sequences
    # switch to lax.fori_loop(..., unroll=True) with gates_x resident in VMEM. ----
    h_l = jnp.zeros((B, H), jnp.float32)
    h_r = jnp.zeros((B, H), jnp.float32)
    c_l = jnp.zeros((B, H), jnp.float32)
    c_r = jnp.zeros((B, H), jnp.float32)
    h_cat = jnp.zeros((B, 2 * H), jnp.float32)
    for t in range(T):
        tl = min(t, T_L - 1)    # static clamp: past a direction's own T the state
        tr = min(t, T_R - 1)    # is frozen by the length mask anyway (len <= T).
        gx_t = jnp.concatenate([gx_l[:, tl, :], gx_r[:, tr, :]], axis=-1)   # [B,8H], 128-aligned
        pre = gx_t + jnp.dot(h_cat, whh, preferred_element_type=jnp.float32)
        act = jax.nn.sigmoid(pre) * g_scale + g_shift    # sigmoid everywhere, tanh on g via affine
        # gate layout (PyTorch order i,f,g,o): left = lanes 0:4H, right = 4H:8H
        c_l_new = act[:, H:2 * H] * c_l + act[:, 0:H] * act[:, 2 * H:3 * H]
        c_r_new = act[:, 5 * H:6 * H] * c_r + act[:, 4 * H:5 * H] * act[:, 6 * H:7 * H]
        h_l_new = act[:, 3 * H:4 * H] * jnp.tanh(c_l_new)
        h_r_new = act[:, 7 * H:8 * H] * jnp.tanh(c_r_new)
        v_l = len_l > t
        v_r = len_r > t
        c_l = jnp.where(v_l, c_l_new, c_l)
        h_l = jnp.where(v_l, h_l_new, h_l)
        c_r = jnp.where(v_r, c_r_new, c_r)
        h_r = jnp.where(v_r, h_r_new, h_r)
        h_cat = jnp.concatenate([h_l, h_r], axis=-1)     # [B, 2H] state for the next dot
    # h_cat == h_n = cat(h_n_l, h_n_r); stays in vregs, no HBM round trip.

    # ---- Phase 3: Conv1d(K=3, valid) + global max-pool on ctx / asp, then
    # h_h = tanh(h_h_proj(cat(ctx_pool, asp_pool))) and out = dense_total(cat(h_h, h_n)). ----
    wc = wc_ref[...]                                     # [K, D, O]
    K = wc.shape[0]
    O = wc.shape[2]

    def conv_pool(x):                                    # [B, L, D] -> [B, O]
        Bx, L, _ = x.shape
        Lo = L - K + 1
        x2d = x.reshape(Bx * L, D)
        # K accumulated lane-aligned dots; sliding-window select happens on the
        # small O-lane output (no non-128-aligned im2col lane concat in-kernel).
        y = [jnp.dot(x2d, wc[k], preferred_element_type=jnp.float32).reshape(Bx, L, O)
             for k in range(K)]
        acc = y[0][:, 0:Lo, :]
        for k in range(1, K):
            acc = acc + y[k][:, k:k + Lo, :]
        return jnp.max(acc, axis=1) + bc_ref[...]        # per-channel bias: add after max

    ctx_pool = conv_pool(e_l)                            # [B, 2H]
    asp_pool = conv_pool(e_asp)                          # [B, 2H]
    twoH = 2 * H
    wp = wp_ref[...]                                     # [4H, 2H]
    wt = wt_ref[...]                                     # [4H, P]
    h_h = jnp.tanh(
        jnp.dot(ctx_pool, wp[:twoH, :], preferred_element_type=jnp.float32)
        + jnp.dot(asp_pool, wp[twoH:, :], preferred_element_type=jnp.float32)
        + bp_ref[...])
    out_ref[...] = (
        jnp.dot(h_h, wt[:twoH, :], preferred_element_type=jnp.float32)
        + jnp.dot(h_cat, wt[twoH:, :], preferred_element_type=jnp.float32)
        + bt_ref[...])


# ----------------------------------------------------------------------------
# One-time weight preparation (off the forward path)
# ----------------------------------------------------------------------------
def prepare_params(raw):
    """Fold tanh(x)=2*sigmoid(2x)-1 into the g-gate columns (x2) and build the
    block-diagonal merged W_hh [2H, 8H]; done once, outside the forward."""
    H = HIDDEN

    def scale_g(w):                                      # x2 on g-band columns 2H:3H
        return jnp.concatenate(
            [w[..., :2 * H], 2.0 * w[..., 2 * H:3 * H], w[..., 3 * H:]], axis=-1)

    whh_l = scale_g(raw["w_hh_l"])
    whh_r = scale_g(raw["w_hh_r"])
    z = jnp.zeros((H, 4 * H), jnp.float32)
    whh_bd = jnp.concatenate(
        [jnp.concatenate([whh_l, z], axis=1),
         jnp.concatenate([z, whh_r], axis=1)], axis=0)   # [2H, 8H]
    return {
        "embedding": raw["embedding"],
        "w_ih_l": scale_g(raw["w_ih_l"]), "w_ih_r": scale_g(raw["w_ih_r"]),
        "b_l": scale_g(raw["b_l"]), "b_r": scale_g(raw["b_r"]),
        "whh_bd": whh_bd,
        "conv_w": raw["conv_w"], "conv_b": raw["conv_b"],
        "w_proj": raw["w_proj"], "b_proj": raw["b_proj"],
        "w_total": raw["w_total"], "b_total": raw["b_total"],
    }


# ----------------------------------------------------------------------------
# Forward wrapper: only token-id length counts + embedding gathers stay in XLA
# ----------------------------------------------------------------------------
def td_lstm_forward(p, x_l, x_r, aspect):
    emb = p["embedding"]
    len_l = jnp.sum(x_l != 0, axis=-1, keepdims=True).astype(jnp.int32)   # [B, 1]
    len_r = jnp.sum(x_r != 0, axis=-1, keepdims=True).astype(jnp.int32)
    e_l = emb[x_l]                                      # [B, T_L, D]
    e_r = emb[x_r]                                      # [B, T_R, D]
    e_asp = emb[aspect]                                 # [B, T_A, D]
    B, T_L, D = e_l.shape
    T_R, T_A = e_r.shape[1], e_asp.shape[1]
    H = HIDDEN
    P = p["w_total"].shape[1]
    K = p["conv_w"].shape[0]
    O = p["conv_w"].shape[2]

    def full(shape):                                    # full-array block, grid=(1,)
        nd = len(shape)
        return pl.BlockSpec(shape, lambda *_: (0,) * nd)

    return pl.pallas_call(
        _td_lstm_fused_kernel,
        out_shape=jax.ShapeDtypeStruct((B, P), jnp.float32),
        grid_spec=pltpu.PrefetchScalarGridSpec(
            num_scalar_prefetch=0,
            grid=(1,),
            in_specs=[
                full((B, T_L, D)), full((B, T_R, D)), full((B, T_A, D)),
                full((B, 1)), full((B, 1)),
                full((D, 4 * H)), full((D, 4 * H)),
                full((1, 4 * H)), full((1, 4 * H)),
                full((2 * H, 8 * H)),
                full((K, D, O)), full((1, O)),
                full((4 * H, 2 * H)), full((1, 2 * H)),
                full((4 * H, P)), full((1, P)),
            ],
            out_specs=full((B, P)),
        ),
        compiler_params=pltpu.CompilerParams(
            dimension_semantics=("arbitrary",)),         # single grid step; no TC split needed
    )(e_l, e_r, e_asp, len_l, len_r,
      p["w_ih_l"], p["w_ih_r"], p["b_l"], p["b_r"], p["whh_bd"],
      p["conv_w"], p["conv_b"], p["w_proj"], p["b_proj"],
      p["w_total"], p["b_total"])


# ----------------------------------------------------------------------------
# Pure-JAX reference (for a correctness sanity check) — uses the RAW params
# ----------------------------------------------------------------------------
def _lstm_ref(e, lengths, w_ih, w_hh, b):
    B, T, D = e.shape
    H = w_hh.shape[0]
    h = jnp.zeros((B, H), jnp.float32)
    c = jnp.zeros((B, H), jnp.float32)
    for t in range(T):
        gates = e[:, t, :] @ w_ih + h @ w_hh + b
        i = jax.nn.sigmoid(gates[:, :H])
        f = jax.nn.sigmoid(gates[:, H:2 * H])
        g = jnp.tanh(gates[:, 2 * H:3 * H])
        o = jax.nn.sigmoid(gates[:, 3 * H:])
        c_new = f * c + i * g
        h_new = o * jnp.tanh(c_new)
        m = (t < lengths).astype(jnp.float32)[:, None]
        c = m * c_new + (1.0 - m) * c
        h = m * h_new + (1.0 - m) * h
    return h


def _conv_pool_ref(e, w, b):
    K = w.shape[0]
    Lo = e.shape[1] - K + 1
    acc = jnp.zeros((e.shape[0], Lo, w.shape[2]), jnp.float32)
    for k in range(K):
        acc = acc + jnp.einsum('bld,do->blo', e[:, k:k + Lo, :], w[k])
    acc = acc + b
    return jnp.max(acc, axis=1)


def td_lstm_forward_ref(params, x_l, x_r, aspect):
    emb = params["embedding"]
    x_l_len = jnp.sum(x_l != 0, axis=-1).astype(jnp.int32)
    x_r_len = jnp.sum(x_r != 0, axis=-1).astype(jnp.int32)
    h_l = _lstm_ref(emb[x_l], x_l_len, params["w_ih_l"], params["w_hh_l"], params["b_l"])
    h_r = _lstm_ref(emb[x_r], x_r_len, params["w_ih_r"], params["w_hh_r"], params["b_r"])
    h_n = jnp.concatenate([h_l, h_r], axis=-1)
    ctx_pool = _conv_pool_ref(emb[x_l], params["conv_w"], params["conv_b"])
    asp_pool = _conv_pool_ref(emb[aspect], params["conv_w"], params["conv_b"])
    h_h = jnp.tanh(jnp.concatenate([ctx_pool, asp_pool], -1) @ params["w_proj"]
                   + params["b_proj"])
    return jnp.concatenate([h_h, h_n], -1) @ params["w_total"] + params["b_total"]


# ----------------------------------------------------------------------------
# Deterministic parameter / input construction
# ----------------------------------------------------------------------------
def make_params(key):
    D, H, P = EMBED_DIM, HIDDEN, POLARITIES
    ks = jax.random.split(key, 12)
    n = lambda k, shape, s=0.1: (s * jax.random.normal(k, shape)).astype(jnp.float32)
    embedding = n(ks[0], (VOCAB, D), 0.5).at[0].set(0.0)   # row 0 ~ padding token
    return {
        "embedding": embedding,
        # lstm_l / lstm_r (weights stored transposed: [in, 4H]); bias = b_ih + b_hh
        "w_ih_l": n(ks[1], (D, 4 * H)), "w_hh_l": n(ks[2], (H, 4 * H)),
        "b_l": n(ks[3], (1, 4 * H)),
        "w_ih_r": n(ks[4], (D, 4 * H)), "w_hh_r": n(ks[5], (H, 4 * H)),
        "b_r": n(ks[6], (1, 4 * H)),
        # conv: stored as [K, in=300, out=2H]   (conv_w[k, d, o] == torch w[o, d, k])
        "conv_w": n(ks[7], (CONV_K, D, 2 * H)), "conv_b": n(ks[8], (1, 2 * H)),
        # h_h_proj: Linear(4H -> 2H), stored [4H, 2H]
        "w_proj": n(ks[9], (4 * H, 2 * H)), "b_proj": n(ks[10], (1, 2 * H)),
        # dense_total: Linear(4H -> P), stored [4H, P]
        "w_total": n(ks[11], (4 * H, P)),
        "b_total": jnp.zeros((1, P), jnp.float32),
        # NOTE: `dense`, `cls_dense`, `cls_lstm`, `cls_asp_lstm` are dead code in
        # forward() when opt.classifier is True and are intentionally omitted.
    }


def make_indices(key, B, T, lengths):
    idx = jax.random.randint(key, (B, T), 1, VOCAB)
    mask = jnp.arange(T)[None, :] < jnp.array(lengths)[:, None]
    return jnp.where(mask, idx, 0).astype(jnp.int32)


if __name__ == "__main__":
    root = jax.random.PRNGKey(0)
    k_par, k_l, k_r, k_a = jax.random.split(root, 4)

    B, T_L, T_R, T_A = 2, 8, 8, 4
    params = make_params(k_par)
    fused = prepare_params(params)                     # one-time weight prep
    x_l = make_indices(k_l, B, T_L, [6, 8])
    x_r = make_indices(k_r, B, T_R, [8, 4])
    aspect = make_indices(k_a, B, T_A, [2, 4])

    fwd = jax.jit(td_lstm_forward)
    out = jax.block_until_ready(fwd(fused, x_l, x_r, aspect))
    ref = jax.block_until_ready(td_lstm_forward_ref(params, x_l, x_r, aspect))

    assert out.shape == (B, POLARITIES)
    np.testing.assert_allclose(np.asarray(out), np.asarray(ref),
                               rtol=1e-2, atol=1e-2)
    print("KERNEL_OK")
</pallas_src>

<mosaic_0001>
module attributes {stable_mosaic.version = 11 : i64} {
  func.func @_td_lstm_fused_kernel(%arg0: i32, %arg1: memref<2x8x300xf32, #tpu.memory_space<vmem>>, %arg2: memref<2x8x300xf32, #tpu.memory_space<vmem>>, %arg3: memref<2x4x300xf32, #tpu.memory_space<vmem>>, %arg4: memref<2x1xi32, #tpu.memory_space<vmem>>, %arg5: memref<2x1xi32, #tpu.memory_space<vmem>>, %arg6: memref<300x128xf32, #tpu.memory_space<vmem>>, %arg7: memref<300x128xf32, #tpu.memory_space<vmem>>, %arg8: memref<1x128xf32, #tpu.memory_space<vmem>>, %arg9: memref<1x128xf32, #tpu.memory_space<vmem>>, %arg10: memref<64x256xf32, #tpu.memory_space<vmem>>, %arg11: memref<3x300x64xf32, #tpu.memory_space<vmem>>, %arg12: memref<1x64xf32, #tpu.memory_space<vmem>>, %arg13: memref<128x64xf32, #tpu.memory_space<vmem>>, %arg14: memref<1x64xf32, #tpu.memory_space<vmem>>, %arg15: memref<128x3xf32, #tpu.memory_space<vmem>>, %arg16: memref<1x3xf32, #tpu.memory_space<vmem>>, %arg17: memref<2x3xf32, #tpu.memory_space<vmem>>) attributes {dimension_semantics = [#tpu.dimension_semantics<arbitrary>], iteration_bounds = array<i64: 1>, scalar_prefetch = 0 : i64, scratch_operands = 0 : i64, tpu.core_type = #tpu.core_type<tc>, window_params = [{pipeline_mode = #tpu.pipeline_mode<synchronous>, transform_indices = @transform_0, window_bounds = array<i64: 2, 8, 300>}, {pipeline_mode = #tpu.pipeline_mode<synchronous>, transform_indices = @transform_1, window_bounds = array<i64: 2, 8, 300>}, {pipeline_mode = #tpu.pipeline_mode<synchronous>, transform_indices = @transform_2, window_bounds = array<i64: 2, 4, 300>}, {pipeline_mode = #tpu.pipeline_mode<synchronous>, transform_indices = @transform_3, window_bounds = array<i64: 2, 1>}, {pipeline_mode = #tpu.pipeline_mode<synchronous>, transform_indices = @transform_4, window_bounds = array<i64: 2, 1>}, {pipeline_mode = #tpu.pipeline_mode<synchronous>, transform_indices = @transform_5, window_bounds = array<i64: 300, 128>}, {pipeline_mode = #tpu.pipeline_mode<synchronous>, transform_indices = @transform_6, window_bounds = array<i64: 300, 128>}, {pipeline_mode = #tpu.pipeline_mode<synchronous>, transform_indices = @transform_7, window_bounds = array<i64: 1, 128>}, {pipeline_mode = #tpu.pipeline_mode<synchronous>, transform_indices = @transform_8, window_bounds = array<i64: 1, 128>}, {pipeline_mode = #tpu.pipeline_mode<synchronous>, transform_indices = @transform_9, window_bounds = array<i64: 64, 256>}, {pipeline_mode = #tpu.pipeline_mode<synchronous>, transform_indices = @transform_10, window_bounds = array<i64: 3, 300, 64>}, {pipeline_mode = #tpu.pipeline_mode<synchronous>, transform_indices = @transform_11, window_bounds = array<i64: 1, 64>}, {pipeline_mode = #tpu.pipeline_mode<synchronous>, transform_indices = @transform_12, window_bounds = array<i64: 128, 64>}, {pipeline_mode = #tpu.pipeline_mode<synchronous>, transform_indices = @transform_13, window_bounds = array<i64: 1, 64>}, {pipeline_mode = #tpu.pipeline_mode<synchronous>, transform_indices = @transform_14, window_bounds = array<i64: 128, 3>}, {pipeline_mode = #tpu.pipeline_mode<synchronous>, transform_indices = @transform_15, window_bounds = array<i64: 1, 3>}, {pipeline_mode = #tpu.pipeline_mode<synchronous>, transform_indices = @transform_16, window_bounds = array<i64: 2, 3>}]} {
    %c0 = arith.constant 0 : index
    %c0_0 = arith.constant 0 : index
    %c0_1 = arith.constant 0 : index
    %0 = vector.load %arg1[%c0, %c0_0, %c0_1] : memref<2x8x300xf32, #tpu.memory_space<vmem>>, vector<2x8x300xf32>
    %c0_2 = arith.constant 0 : index
    %c0_3 = arith.constant 0 : index
    %c0_4 = arith.constant 0 : index
    %1 = vector.load %arg2[%c0_2, %c0_3, %c0_4] : memref<2x8x300xf32, #tpu.memory_space<vmem>>, vector<2x8x300xf32>
    %c0_5 = arith.constant 0 : index
    %c0_6 = arith.constant 0 : index
    %c0_7 = arith.constant 0 : index
    %2 = vector.load %arg3[%c0_5, %c0_6, %c0_7] : memref<2x4x300xf32, #tpu.memory_space<vmem>>, vector<2x4x300xf32>
    %c0_8 = arith.constant 0 : index
    %c0_9 = arith.constant 0 : index
    %3 = vector.load %arg10[%c0_8, %c0_9] : memref<64x256xf32, #tpu.memory_space<vmem>>, vector<64x256xf32>
    %4 = vector.shape_cast %0 : vector<2x8x300xf32> to vector<16x300xf32>
    %c0_10 = arith.constant 0 : index
    %c0_11 = arith.constant 0 : index
    %5 = vector.load %arg6[%c0_10, %c0_11] : memref<300x128xf32, #tpu.memory_space<vmem>>, vector<300x128xf32>
    %cst = arith.constant dense<0.000000e+00> : vector<16x128xf32>
    %6 = tpu.matmul %4, %5, %cst {dimension_numbers = #tpu.dot_dimension_numbers<[1], [0], [0], [1], [0, 0, 1, 1], [], []>} : vector<16x300xf32>, vector<300x128xf32>, vector<16x128xf32> -> vector<16x128xf32>
    %c0_12 = arith.constant 0 : index
    %c0_13 = arith.constant 0 : index
    %7 = vector.load %arg8[%c0_12, %c0_13] : memref<1x128xf32, #tpu.memory_space<vmem>>, vector<1x128xf32>
    %8 = vector.broadcast %7 : vector<1x128xf32> to vector<16x128xf32>
    %9 = arith.addf %6, %8 : vector<16x128xf32>
    %10 = vector.shape_cast %9 : vector<16x128xf32> to vector<2x8x128xf32>
    %11 = vector.shape_cast %1 : vector<2x8x300xf32> to vector<16x300xf32>
    %c0_14 = arith.constant 0 : index
    %c0_15 = arith.constant 0 : index
    %12 = vector.load %arg7[%c0_14, %c0_15] : memref<300x128xf32, #tpu.memory_space<vmem>>, vector<300x128xf32>
    %cst_16 = arith.constant dense<0.000000e+00> : vector<16x128xf32>
    %13 = tpu.matmul %11, %12, %cst_16 {dimension_numbers = #tpu.dot_dimension_numbers<[1], [0], [0], [1], [0, 0, 1, 1], [], []>} : vector<16x300xf32>, vector<300x128xf32>, vector<16x128xf32> -> vector<16x128xf32>
    %c0_17 = arith.constant 0 : index
    %c0_18 = arith.constant 0 : index
    %14 = vector.load %arg9[%c0_17, %c0_18] : memref<1x128xf32, #tpu.memory_space<vmem>>, vector<1x128xf32>
    %15 = vector.broadcast %14 : vector<1x128xf32> to vector<16x128xf32>
    %16 = arith.addf %13, %15 : vector<16x128xf32>
    %17 = vector.shape_cast %16 : vector<16x128xf32> to vector<2x8x128xf32>
    %18 = tpu.iota {dimensions = array<i32: 1>} : vector<2x256xi32>
    %c64_i32 = arith.constant 64 : i32
    %19 = vector.broadcast %c64_i32 : i32 to vector<2x256xi32>
    %20 = arith.cmpi sge, %18, %19 : vector<2x256xi32>
    %c96_i32 = arith.constant 96 : i32
    %21 = vector.broadcast %c96_i32 : i32 to vector<2x256xi32>
    %22 = arith.cmpi slt, %18, %21 : vector<2x256xi32>
    %23 = arith.andi %20, %22 : vector<2x256xi1>
    %c192_i32 = arith.constant 192 : i32
    %24 = vector.broadcast %c192_i32 : i32 to vector<2x256xi32>
    %25 = arith.cmpi sge, %18, %24 : vector<2x256xi32>
    %c224_i32 = arith.constant 224 : i32
    %26 = vector.broadcast %c224_i32 : i32 to vector<2x256xi32>
    %27 = arith.cmpi slt, %18, %26 : vector<2x256xi32>
    %28 = arith.andi %25, %27 : vector<2x256xi1>
    %29 = arith.ori %23, %28 : vector<2x256xi1>
    %cst_19 = arith.constant 2.000000e+00 : f32
    %cst_20 = arith.constant 1.000000e+00 : f32
    %30 = vector.broadcast %cst_19 : f32 to vector<2x256xf32>
    %31 = vector.broadcast %cst_20 : f32 to vector<2x256xf32>
    %32 = arith.select %29, %30, %31 : vector<2x256xi1>, vector<2x256xf32>
    %cst_21 = arith.constant -1.000000e+00 : f32
    %cst_22 = arith.constant 0.000000e+00 : f32
    %33 = vector.broadcast %cst_21 : f32 to vector<2x256xf32>
    %34 = vector.broadcast %cst_22 : f32 to vector<2x256xf32>
    %35 = arith.select %29, %33, %34 : vector<2x256xi1>, vector<2x256xf32>
    %c0_23 = arith.constant 0 : index
    %c0_24 = arith.constant 0 : index
    %36 = vector.load %arg4[%c0_23, %c0_24] : memref<2x1xi32, #tpu.memory_space<vmem>>, vector<2x1xi32>
    %37 = vector.shape_cast %36 : vector<2x1xi32> to vector<2x1xi32>
    %38 = vector.broadcast %37 : vector<2x1xi32> to vector<2x32xi32>
    %c0_25 = arith.constant 0 : index
    %c0_26 = arith.constant 0 : index
    %39 = vector.load %arg5[%c0_25, %c0_26] : memref<2x1xi32, #tpu.memory_space<vmem>>, vector<2x1xi32>
    %40 = vector.shape_cast %39 : vector<2x1xi32> to vector<2x1xi32>
    %41 = vector.broadcast %40 : vector<2x1xi32> to vector<2x32xi32>
    %cst_27 = arith.constant 0.000000e+00 : f32
    %42 = vector.broadcast %cst_27 : f32 to vector<2x32xf32>
    %cst_28 = arith.constant 0.000000e+00 : f32
    %43 = vector.broadcast %cst_28 : f32 to vector<2x32xf32>
    %cst_29 = arith.constant 0.000000e+00 : f32
    %44 = vector.broadcast %cst_29 : f32 to vector<2x32xf32>
    %cst_30 = arith.constant 0.000000e+00 : f32
    %45 = vector.broadcast %cst_30 : f32 to vector<2x32xf32>
    %cst_31 = arith.constant 0.000000e+00 : f32
    %46 = vector.broadcast %cst_31 : f32 to vector<2x64xf32>
    %47 = vector.extract_strided_slice %10 {offsets = [0, 0, 0], sizes = [2, 1, 128], strides = [1, 1, 1]} : vector<2x8x128xf32> to vector<2x1x128xf32>
    %48 = vector.shape_cast %47 : vector<2x1x128xf32> to vector<2x128xf32>
    %49 = vector.extract_strided_slice %17 {offsets = [0, 0, 0], sizes = [2, 1, 128], strides = [1, 1, 1]} : vector<2x8x128xf32> to vector<2x1x128xf32>
    %50 = vector.shape_cast %49 : vector<2x1x128xf32> to vector<2x128xf32>
    %51 = tpu.concatenate %48, %50 in 1 : vector<2x128xf32>, vector<2x128xf32> -> vector<2x256xf32>
    %cst_32 = arith.constant dense<0.000000e+00> : vector<2x256xf32>
    %52 = tpu.matmul %46, %3, %cst_32 {dimension_numbers = #tpu.dot_dimension_numbers<[1], [0], [0], [1], [0, 0, 1, 1], [], []>} : vector<2x64xf32>, vector<64x256xf32>, vector<2x256xf32> -> vector<2x256xf32>
    %53 = arith.addf %51, %52 : vector<2x256xf32>
    %54 = arith.negf %53 : vector<2x256xf32>
    %55 = math.exp %54 : vector<2x256xf32>
    %cst_33 = arith.constant 1.000000e+00 : f32
    %56 = vector.broadcast %cst_33 : f32 to vector<2x256xf32>
    %57 = arith.addf %56, %55 : vector<2x256xf32>
    %58 = arith.divf %56, %57 : vector<2x256xf32>
    %59 = arith.mulf %58, %32 : vector<2x256xf32>
    %60 = arith.addf %59, %35 : vector<2x256xf32>
    %61 = vector.extract_strided_slice %60 {offsets = [0, 32], sizes = [2, 32], strides = [1, 1]} : vector<2x256xf32> to vector<2x32xf32>
    %62 = arith.mulf %61, %44 : vector<2x32xf32>
    %63 = vector.extract_strided_slice %60 {offsets = [0, 0], sizes = [2, 32], strides = [1, 1]} : vector<2x256xf32> to vector<2x32xf32>
    %64 = vector.extract_strided_slice %60 {offsets = [0, 64], sizes = [2, 32], strides = [1, 1]} : vector<2x256xf32> to vector<2x32xf32>
    %65 = arith.mulf %63, %64 : vector<2x32xf32>
    %66 = arith.addf %62, %65 : vector<2x32xf32>
    %67 = vector.extract_strided_slice %60 {offsets = [0, 160], sizes = [2, 32], strides = [1, 1]} : vector<2x256xf32> to vector<2x32xf32>
    %68 = arith.mulf %67, %45 : vector<2x32xf32>
    %69 = vector.extract_strided_slice %60 {offsets = [0, 128], sizes = [2, 32], strides = [1, 1]} : vector<2x256xf32> to vector<2x32xf32>
    %70 = vector.extract_strided_slice %60 {offsets = [0, 192], sizes = [2, 32], strides = [1, 1]} : vector<2x256xf32> to vector<2x32xf32>
    %71 = arith.mulf %69, %70 : vector<2x32xf32>
    %72 = arith.addf %68, %71 : vector<2x32xf32>
    %73 = vector.extract_strided_slice %60 {offsets = [0, 96], sizes = [2, 32], strides = [1, 1]} : vector<2x256xf32> to vector<2x32xf32>
    %74 = math.tanh %66 : vector<2x32xf32>
    %75 = arith.mulf %73, %74 : vector<2x32xf32>
    %76 = vector.extract_strided_slice %60 {offsets = [0, 224], sizes = [2, 32], strides = [1, 1]} : vector<2x256xf32> to vector<2x32xf32>
    %77 = math.tanh %72 : vector<2x32xf32>
    %78 = arith.mulf %76, %77 : vector<2x32xf32>
    %c0_i32 = arith.constant 0 : i32
    %79 = vector.broadcast %c0_i32 : i32 to vector<2x32xi32>
    %80 = arith.cmpi sgt, %38, %79 : vector<2x32xi32>
    %c0_i32_34 = arith.constant 0 : i32
    %81 = vector.broadcast %c0_i32_34 : i32 to vector<2x32xi32>
    %82 = arith.cmpi sgt, %41, %81 : vector<2x32xi32>
    %83 = arith.select %80, %66, %44 : vector<2x32xi1>, vector<2x32xf32>
    %84 = arith.select %80, %75, %42 : vector<2x32xi1>, vector<2x32xf32>
    %85 = arith.select %82, %72, %45 : vector<2x32xi1>, vector<2x32xf32>
    %86 = arith.select %82, %78, %43 : vector<2x32xi1>, vector<2x32xf32>
    %87 = tpu.concatenate %84, %86 in 1 : vector<2x32xf32>, vector<2x32xf32> -> vector<2x64xf32>
    %88 = vector.extract_strided_slice %10 {offsets = [0, 1, 0], sizes = [2, 1, 128], strides = [1, 1, 1]} : vector<2x8x128xf32> to vector<2x1x128xf32>
    %89 = vector.shape_cast %88 : vector<2x1x128xf32> to vector<2x128xf32>
    %90 = vector.extract_strided_slice %17 {offsets = [0, 1, 0], sizes = [2, 1, 128], strides = [1, 1, 1]} : vector<2x8x128xf32> to vector<2x1x128xf32>
    %91 = vector.shape_cast %90 : vector<2x1x128xf32> to vector<2x128xf32>
    %92 = tpu.concatenate %89, %91 in 1 : vector<2x128xf32>, vector<2x128xf32> -> vector<2x256xf32>
    %cst_35 = arith.constant dense<0.000000e+00> : vector<2x256xf32>
    %93 = tpu.matmul %87, %3, %cst_35 {dimension_numbers = #tpu.dot_dimension_numbers<[1], [0], [0], [1], [0, 0, 1, 1], [], []>} : vector<2x64xf32>, vector<64x256xf32>, vector<2x256xf32> -> vector<2x256xf32>
    %94 = arith.addf %92, %93 : vector<2x256xf32>
    %95 = arith.negf %94 : vector<2x256xf32>
    %96 = math.exp %95 : vector<2x256xf32>
    %cst_36 = arith.constant 1.000000e+00 : f32
    %97 = vector.broadcast %cst_36 : f32 to vector<2x256xf32>
    %98 = arith.addf %97, %96 : vector<2x256xf32>
    %99 = arith.divf %97, %98 : vector<2x256xf32>
    %100 = arith.mulf %99, %32 : vector<2x256xf32>
    %101 = arith.addf %100, %35 : vector<2x256xf32>
    %102 = vector.extract_strided_slice %101 {offsets = [0, 32], sizes = [2, 32], strides = [1, 1]} : vector<2x256xf32> to vector<2x32xf32>
    %103 = arith.mulf %102, %83 : vector<2x32xf32>
    %104 = vector.extract_strided_slice %101 {offsets = [0, 0], sizes = [2, 32], strides = [1, 1]} : vector<2x256xf32> to vector<2x32xf32>
    %105 = vector.extract_strided_slice %101 {offsets = [0, 64], sizes = [2, 32], strides = [1, 1]} : vector<2x256xf32> to vector<2x32xf32>
    %106 = arith.mulf %104, %105 : vector<2x32xf32>
    %107 = arith.addf %103, %106 : vector<2x32xf32>
    %108 = vector.extract_strided_slice %101 {offsets = [0, 160], sizes = [2, 32], strides = [1, 1]} : vector<2x256xf32> to vector<2x32xf32>
    %109 = arith.mulf %108, %85 : vector<2x32xf32>
    %110 = vector.extract_strided_slice %101 {offsets = [0, 128], sizes = [2, 32], strides = [1, 1]} : vector<2x256xf32> to vector<2x32xf32>
    %111 = vector.extract_strided_slice %101 {offsets = [0, 192], sizes = [2, 32], strides = [1, 1]} : vector<2x256xf32> to vector<2x32xf32>
    %112 = arith.mulf %110, %111 : vector<2x32xf32>
    %113 = arith.addf %109, %112 : vector<2x32xf32>
    %114 = vector.extract_strided_slice %101 {offsets = [0, 96], sizes = [2, 32], strides = [1, 1]} : vector<2x256xf32> to vector<2x32xf32>
    %115 = math.tanh %107 : vector<2x32xf32>
    %116 = arith.mulf %114, %115 : vector<2x32xf32>
    %117 = vector.extract_strided_slice %101 {offsets = [0, 224], sizes = [2, 32], strides = [1, 1]} : vector<2x256xf32> to vector<2x32xf32>
    %118 = math.tanh %113 : vector<2x32xf32>
    %119 = arith.mulf %117, %118 : vector<2x32xf32>
    %c1_i32 = arith.constant 1 : i32
    %120 = vector.broadcast %c1_i32 : i32 to vector<2x32xi32>
    %121 = arith.cmpi sgt, %38, %120 : vector<2x32xi32>
    %c1_i32_37 = arith.constant 1 : i32
    %122 = vector.broadcast %c1_i32_37 : i32 to vector<2x32xi32>
    %123 = arith.cmpi sgt, %41, %122 : vector<2x32xi32>
    %124 = arith.select %121, %107, %83 : vector<2x32xi1>, vector<2x32xf32>
    %125 = arith.select %121, %116, %84 : vector<2x32xi1>, vector<2x32xf32>
    %126 = arith.select %123, %113, %85 : vector<2x32xi1>, vector<2x32xf32>
    %127 = arith.select %123, %119, %86 : vector<2x32xi1>, vector<2x32xf32>
    %128 = tpu.concatenate %125, %127 in 1 : vector<2x32xf32>, vector<2x32xf32> -> vector<2x64xf32>
    %129 = vector.extract_strided_slice %10 {offsets = [0, 2, 0], sizes = [2, 1, 128], strides = [1, 1, 1]} : vector<2x8x128xf32> to vector<2x1x128xf32>
    %130 = vector.shape_cast %129 : vector<2x1x128xf32> to vector<2x128xf32>
    %131 = vector.extract_strided_slice %17 {offsets = [0, 2, 0], sizes = [2, 1, 128], strides = [1, 1, 1]} : vector<2x8x128xf32> to vector<2x1x128xf32>
    %132 = vector.shape_cast %131 : vector<2x1x128xf32> to vector<2x128xf32>
    %133 = tpu.concatenate %130, %132 in 1 : vector<2x128xf32>, vector<2x128xf32> -> vector<2x256xf32>
    %cst_38 = arith.constant dense<0.000000e+00> : vector<2x256xf32>
    %134 = tpu.matmul %128, %3, %cst_38 {dimension_numbers = #tpu.dot_dimension_numbers<[1], [0], [0], [1], [0, 0, 1, 1], [], []>} : vector<2x64xf32>, vector<64x256xf32>, vector<2x256xf32> -> vector<2x256xf32>
    %135 = arith.addf %133, %134 : vector<2x256xf32>
    %136 = arith.negf %135 : vector<2x256xf32>
    %137 = math.exp %136 : vector<2x256xf32>
    %cst_39 = arith.constant 1.000000e+00 : f32
    %138 = vector.broadcast %cst_39 : f32 to vector<2x256xf32>
    %139 = arith.addf %138, %137 : vector<2x256xf32>
    %140 = arith.divf %138, %139 : vector<2x256xf32>
    %141 = arith.mulf %140, %32 : vector<2x256xf32>
    %142 = arith.addf %141, %35 : vector<2x256xf32>
    %143 = vector.extract_strided_slice %142 {offsets = [0, 32], sizes = [2, 32], strides = [1, 1]} : vector<2x256xf32> to vector<2x32xf32>
    %144 = arith.mulf %143, %124 : vector<2x32xf32>
    %145 = vector.extract_strided_slice %142 {offsets = [0, 0], sizes = [2, 32], strides = [1, 1]} : vector<2x256xf32> to vector<2x32xf32>
    %146 = vector.extract_strided_slice %142 {offsets = [0, 64], sizes = [2, 32], strides = [1, 1]} : vector<2x256xf32> to vector<2x32xf32>
    %147 = arith.mulf %145, %146 : vector<2x32xf32>
    %148 = arith.addf %144, %147 : vector<2x32xf32>
    %149 = vector.extract_strided_slice %142 {offsets = [0, 160], sizes = [2, 32], strides = [1, 1]} : vector<2x256xf32> to vector<2x32xf32>
    %150 = arith.mulf %149, %126 : vector<2x32xf32>
    %151 = vector.extract_strided_slice %142 {offsets = [0, 128], sizes = [2, 32], strides = [1, 1]} : vector<2x256xf32> to vector<2x32xf32>
    %152 = vector.extract_strided_slice %142 {offsets = [0, 192], sizes = [2, 32], strides = [1, 1]} : vector<2x256xf32> to vector<2x32xf32>
    %153 = arith.mulf %151, %152 : vector<2x32xf32>
    %154 = arith.addf %150, %153 : vector<2x32xf32>
    %155 = vector.extract_strided_slice %142 {offsets = [0, 96], sizes = [2, 32], strides = [1, 1]} : vector<2x256xf32> to vector<2x32xf32>
    %156 = math.tanh %148 : vector<2x32xf32>
    %157 = arith.mulf %155, %156 : vector<2x32xf32>
    %158 = vector.extract_strided_slice %142 {offsets = [0, 224], sizes = [2, 32], strides = [1, 1]} : vector<2x256xf32> to vector<2x32xf32>
    %159 = math.tanh %154 : vector<2x32xf32>
    %160 = arith.mulf %158, %159 : vector<2x32xf32>
    %c2_i32 = arith.constant 2 : i32
    %161 = vector.broadcast %c2_i32 : i32 to vector<2x32xi32>
    %162 = arith.cmpi sgt, %38, %161 : vector<2x32xi32>
    %c2_i32_40 = arith.constant 2 : i32
    %163 = vector.broadcast %c2_i32_40 : i32 to vector<2x32xi32>
    %164 = arith.cmpi sgt, %41, %163 : vector<2x32xi32>
    %165 = arith.select %162, %148, %124 : vector<2x32xi1>, vector<2x32xf32>
    %166 = arith.select %162, %157, %125 : vector<2x32xi1>, vector<2x32xf32>
    %167 = arith.select %164, %154, %126 : vector<2x32xi1>, vector<2x32xf32>
    %168 = arith.select %164, %160, %127 : vector<2x32xi1>, vector<2x32xf32>
    %169 = tpu.concatenate %166, %168 in 1 : vector<2x32xf32>, vector<2x32xf32> -> vector<2x64xf32>
    %170 = vector.extract_strided_slice %10 {offsets = [0, 3, 0], sizes = [2, 1, 128], strides = [1, 1, 1]} : vector<2x8x128xf32> to vector<2x1x128xf32>
    %171 = vector.shape_cast %170 : vector<2x1x128xf32> to vector<2x128xf32>
    %172 = vector.extract_strided_slice %17 {offsets = [0, 3, 0], sizes = [2, 1, 128], strides = [1, 1, 1]} : vector<2x8x128xf32> to vector<2x1x128xf32>
    %173 = vector.shape_cast %172 : vector<2x1x128xf32> to vector<2x128xf32>
    %174 = tpu.concatenate %171, %173 in 1 : vector<2x128xf32>, vector<2x128xf32> -> vector<2x256xf32>
    %cst_41 = arith.constant dense<0.000000e+00> : vector<2x256xf32>
    %175 = tpu.matmul %169, %3, %cst_41 {dimension_numbers = #tpu.dot_dimension_numbers<[1], [0], [0], [1], [0, 0, 1, 1], [], []>} : vector<2x64xf32>, vector<64x256xf32>, vector<2x256xf32> -> vector<2x256xf32>
    %176 = arith.addf %174, %175 : vector<2x256xf32>
    %177 = arith.negf %176 : vector<2x256xf32>
    %178 = math.exp %177 : vector<2x256xf32>
    %cst_42 = arith.constant 1.000000e+00 : f32
    %179 = vector.broadcast %cst_42 : f32 to vector<2x256xf32>
    %180 = arith.addf %179, %178 : vector<2x256xf32>
    %181 = arith.divf %179, %180 : vector<2x256xf32>
    %182 = arith.mulf %181, %32 : vector<2x256xf32>
    %183 = arith.addf %182, %35 : vector<2x256xf32>
    %184 = vector.extract_strided_slice %183 {offsets = [0, 32], sizes = [2, 32], strides = [1, 1]} : vector<2x256xf32> to vector<2x32xf32>
    %185 = arith.mulf %184, %165 : vector<2x32xf32>
    %186 = vector.extract_strided_slice %183 {offsets = [0, 0], sizes = [2, 32], strides = [1, 1]} : vector<2x256xf32> to vector<2x32xf32>
    %187 = vector.extract_strided_slice %183 {offsets = [0, 64], sizes = [2, 32], strides = [1, 1]} : vector<2x256xf32> to vector<2x32xf32>
    %188 = arith.mulf %186, %187 : vector<2x32xf32>
    %189 = arith.addf %185, %188 : vector<2x32xf32>
    %190 = vector.extract_strided_slice %183 {offsets = [0, 160], sizes = [2, 32], strides = [1, 1]} : vector<2x256xf32> to vector<2x32xf32>
    %191 = arith.mulf %190, %167 : vector<2x32xf32>
    %192 = vector.extract_strided_slice %183 {offsets = [0, 128], sizes = [2, 32], strides = [1, 1]} : vector<2x256xf32> to vector<2x32xf32>
    %193 = vector.extract_strided_slice %183 {offsets = [0, 192], sizes = [2, 32], strides = [1, 1]} : vector<2x256xf32> to vector<2x32xf32>
    %194 = arith.mulf %192, %193 : vector<2x32xf32>
    %195 = arith.addf %191, %194 : vector<2x32xf32>
    %196 = vector.extract_strided_slice %183 {offsets = [0, 96], sizes = [2, 32], strides = [1, 1]} : vector<2x256xf32> to vector<2x32xf32>
    %197 = math.tanh %189 : vector<2x32xf32>
    %198 = arith.mulf %196, %197 : vector<2x32xf32>
    %199 = vector.extract_strided_slice %183 {offsets = [0, 224], sizes = [2, 32], strides = [1, 1]} : vector<2x256xf32> to vector<2x32xf32>
    %200 = math.tanh %195 : vector<2x32xf32>
    %201 = arith.mulf %199, %200 : vector<2x32xf32>
    %c3_i32 = arith.constant 3 : i32
    %202 = vector.broadcast %c3_i32 : i32 to vector<2x32xi32>
    %203 = arith.cmpi sgt, %38, %202 : vector<2x32xi32>
    %c3_i32_43 = arith.constant 3 : i32
    %204 = vector.broadcast %c3_i32_43 : i32 to vector<2x32xi32>
    %205 = arith.cmpi sgt, %41, %204 : vector<2x32xi32>
    %206 = arith.select %203, %189, %165 : vector<2x32xi1>, vector<2x32xf32>
    %207 = arith.select %203, %198, %166 : vector<2x32xi1>, vector<2x32xf32>
    %208 = arith.select %205, %195, %167 : vector<2x32xi1>, vector<2x32xf32>
    %209 = arith.select %205, %201, %168 : vector<2x32xi1>, vector<2x32xf32>
    %210 = tpu.concatenate %207, %209 in 1 : vector<2x32xf32>, vector<2x32xf32> -> vector<2x64xf32>
    %211 = vector.extract_strided_slice %10 {offsets = [0, 4, 0], sizes = [2, 1, 128], strides = [1, 1, 1]} : vector<2x8x128xf32> to vector<2x1x128xf32>
    %212 = vector.shape_cast %211 : vector<2x1x128xf32> to vector<2x128xf32>
    %213 = vector.extract_strided_slice %17 {offsets = [0, 4, 0], sizes = [2, 1, 128], strides = [1, 1, 1]} : vector<2x8x128xf32> to vector<2x1x128xf32>
    %214 = vector.shape_cast %213 : vector<2x1x128xf32> to vector<2x128xf32>
    %215 = tpu.concatenate %212, %214 in 1 : vector<2x128xf32>, vector<2x128xf32> -> vector<2x256xf32>
    %cst_44 = arith.constant dense<0.000000e+00> : vector<2x256xf32>
    %216 = tpu.matmul %210, %3, %cst_44 {dimension_numbers = #tpu.dot_dimension_numbers<[1], [0], [0], [1], [0, 0, 1, 1], [], []>} : vector<2x64xf32>, vector<64x256xf32>, vector<2x256xf32> -> vector<2x256xf32>
    %217 = arith.addf %215, %216 : vector<2x256xf32>
    %218 = arith.negf %217 : vector<2x256xf32>
    %219 = math.exp %218 : vector<2x256xf32>
    %cst_45 = arith.constant 1.000000e+00 : f32
    %220 = vector.broadcast %cst_45 : f32 to vector<2x256xf32>
    %221 = arith.addf %220, %219 : vector<2x256xf32>
    %222 = arith.divf %220, %221 : vector<2x256xf32>
    %223 = arith.mulf %222, %32 : vector<2x256xf32>
    %224 = arith.addf %223, %35 : vector<2x256xf32>
    %225 = vector.extract_strided_slice %224 {offsets = [0, 32], sizes = [2, 32], strides = [1, 1]} : vector<2x256xf32> to vector<2x32xf32>
    %226 = arith.mulf %225, %206 : vector<2x32xf32>
    %227 = vector.extract_strided_slice %224 {offsets = [0, 0], sizes = [2, 32], strides = [1, 1]} : vector<2x256xf32> to vector<2x32xf32>
    %228 = vector.extract_strided_slice %224 {offsets = [0, 64], sizes = [2, 32], strides = [1, 1]} : vector<2x256xf32> to vector<2x32xf32>
    %229 = arith.mulf %227, %228 : vector<2x32xf32>
    %230 = arith.addf %226, %229 : vector<2x32xf32>
    %231 = vector.extract_strided_slice %224 {offsets = [0, 160], sizes = [2, 32], strides = [1, 1]} : vector<2x256xf32> to vector<2x32xf32>
    %232 = arith.mulf %231, %208 : vector<2x32xf32>
    %233 = vector.extract_strided_slice %224 {offsets = [0, 128], sizes = [2, 32], strides = [1, 1]} : vector<2x256xf32> to vector<2x32xf32>
    %234 = vector.extract_strided_slice %224 {offsets = [0, 192], sizes = [2, 32], strides = [1, 1]} : vector<2x256xf32> to vector<2x32xf32>
    %235 = arith.mulf %233, %234 : vector<2x32xf32>
    %236 = arith.addf %232, %235 : vector<2x32xf32>
    %237 = vector.extract_strided_slice %224 {offsets = [0, 96], sizes = [2, 32], strides = [1, 1]} : vector<2x256xf32> to vector<2x32xf32>
    %238 = math.tanh %230 : vector<2x32xf32>
    %239 = arith.mulf %237, %238 : vector<2x32xf32>
    %240 = vector.extract_strided_slice %224 {offsets = [0, 224], sizes = [2, 32], strides = [1, 1]} : vector<2x256xf32> to vector<2x32xf32>
    %241 = math.tanh %236 : vector<2x32xf32>
    %242 = arith.mulf %240, %241 : vector<2x32xf32>
    %c4_i32 = arith.constant 4 : i32
    %243 = vector.broadcast %c4_i32 : i32 to vector<2x32xi32>
    %244 = arith.cmpi sgt, %38, %243 : vector<2x32xi32>
    %c4_i32_46 = arith.constant 4 : i32
    %245 = vector.broadcast %c4_i32_46 : i32 to vector<2x32xi32>
    %246 = arith.cmpi sgt, %41, %245 : vector<2x32xi32>
    %247 = arith.select %244, %230, %206 : vector<2x32xi1>, vector<2x32xf32>
    %248 = arith.select %244, %239, %207 : vector<2x32xi1>, vector<2x32xf32>
    %249 = arith.select %246, %236, %208 : vector<2x32xi1>, vector<2x32xf32>
    %250 = arith.select %246, %242, %209 : vector<2x32xi1>, vector<2x32xf32>
    %251 = tpu.concatenate %248, %250 in 1 : vector<2x32xf32>, vector<2x32xf32> -> vector<2x64xf32>
    %252 = vector.extract_strided_slice %10 {offsets = [0, 5, 0], sizes = [2, 1, 128], strides = [1, 1, 1]} : vector<2x8x128xf32> to vector<2x1x128xf32>
    %253 = vector.shape_cast %252 : vector<2x1x128xf32> to vector<2x128xf32>
    %254 = vector.extract_strided_slice %17 {offsets = [0, 5, 0], sizes = [2, 1, 128], strides = [1, 1, 1]} : vector<2x8x128xf32> to vector<2x1x128xf32>
    %255 = vector.shape_cast %254 : vector<2x1x128xf32> to vector<2x128xf32>
    %256 = tpu.concatenate %253, %255 in 1 : vector<2x128xf32>, vector<2x128xf32> -> vector<2x256xf32>
    %cst_47 = arith.constant dense<0.000000e+00> : vector<2x256xf32>
    %257 = tpu.matmul %251, %3, %cst_47 {dimension_numbers = #tpu.dot_dimension_numbers<[1], [0], [0], [1], [0, 0, 1, 1], [], []>} : vector<2x64xf32>, vector<64x256xf32>, vector<2x256xf32> -> vector<2x256xf32>
    %258 = arith.addf %256, %257 : vector<2x256xf32>
    %259 = arith.negf %258 : vector<2x256xf32>
    %260 = math.exp %259 : vector<2x256xf32>
    %cst_48 = arith.constant 1.000000e+00 : f32
    %261 = vector.broadcast %cst_48 : f32 to vector<2x256xf32>
    %262 = arith.addf %261, %260 : vector<2x256xf32>
    %263 = arith.divf %261, %262 : vector<2x256xf32>
    %264 = arith.mulf %263, %32 : vector<2x256xf32>
    %265 = arith.addf %264, %35 : vector<2x256xf32>
    %266 = vector.extract_strided_slice %265 {offsets = [0, 32], sizes = [2, 32], strides = [1, 1]} : vector<2x256xf32> to vector<2x32xf32>
    %267 = arith.mulf %266, %247 : vector<2x32xf32>
    %268 = vector.extract_strided_slice %265 {offsets = [0, 0], sizes = [2, 32], strides = [1, 1]} : vector<2x256xf32> to vector<2x32xf32>
    %269 = vector.extract_strided_slice %265 {offsets = [0, 64], sizes = [2, 32], strides = [1, 1]} : vector<2x256xf32> to vector<2x32xf32>
    %270 = arith.mulf %268, %269 : vector<2x32xf32>
    %271 = arith.addf %267, %270 : vector<2x32xf32>
    %272 = vector.extract_strided_slice %265 {offsets = [0, 160], sizes = [2, 32], strides = [1, 1]} : vector<2x256xf32> to vector<2x32xf32>
    %273 = arith.mulf %272, %249 : vector<2x32xf32>
    %274 = vector.extract_strided_slice %265 {offsets = [0, 128], sizes = [2, 32], strides = [1, 1]} : vector<2x256xf32> to vector<2x32xf32>
    %275 = vector.extract_strided_slice %265 {offsets = [0, 192], sizes = [2, 32], strides = [1, 1]} : vector<2x256xf32> to vector<2x32xf32>
    %276 = arith.mulf %274, %275 : vector<2x32xf32>
    %277 = arith.addf %273, %276 : vector<2x32xf32>
    %278 = vector.extract_strided_slice %265 {offsets = [0, 96], sizes = [2, 32], strides = [1, 1]} : vector<2x256xf32> to vector<2x32xf32>
    %279 = math.tanh %271 : vector<2x32xf32>
    %280 = arith.mulf %278, %279 : vector<2x32xf32>
    %281 = vector.extract_strided_slice %265 {offsets = [0, 224], sizes = [2, 32], strides = [1, 1]} : vector<2x256xf32> to vector<2x32xf32>
    %282 = math.tanh %277 : vector<2x32xf32>
    %283 = arith.mulf %281, %282 : vector<2x32xf32>
    %c5_i32 = arith.constant 5 : i32
    %284 = vector.broadcast %c5_i32 : i32 to vector<2x32xi32>
    %285 = arith.cmpi sgt, %38, %284 : vector<2x32xi32>
    %c5_i32_49 = arith.constant 5 : i32
    %286 = vector.broadcast %c5_i32_49 : i32 to vector<2x32xi32>
    %287 = arith.cmpi sgt, %41, %286 : vector<2x32xi32>
    %288 = arith.select %285, %271, %247 : vector<2x32xi1>, vector<2x32xf32>
    %289 = arith.select %285, %280, %248 : vector<2x32xi1>, vector<2x32xf32>
    %290 = arith.select %287, %277, %249 : vector<2x32xi1>, vector<2x32xf32>
    %291 = arith.select %287, %283, %250 : vector<2x32xi1>, vector<2x32xf32>
    %292 = tpu.concatenate %289, %291 in 1 : vector<2x32xf32>, vector<2x32xf32> -> vector<2x64xf32>
    %293 = vector.extract_strided_slice %10 {offsets = [0, 6, 0], sizes = [2, 1, 128], strides = [1, 1, 1]} : vector<2x8x128xf32> to vector<2x1x128xf32>
    %294 = vector.shape_cast %293 : vector<2x1x128xf32> to vector<2x128xf32>
    %295 = vector.extract_strided_slice %17 {offsets = [0, 6, 0], sizes = [2, 1, 128], strides = [1, 1, 1]} : vector<2x8x128xf32> to vector<2x1x128xf32>
    %296 = vector.shape_cast %295 : vector<2x1x128xf32> to vector<2x128xf32>
    %297 = tpu.concatenate %294, %296 in 1 : vector<2x128xf32>, vector<2x128xf32> -> vector<2x256xf32>
    %cst_50 = arith.constant dense<0.000000e+00> : vector<2x256xf32>
    %298 = tpu.matmul %292, %3, %cst_50 {dimension_numbers = #tpu.dot_dimension_numbers<[1], [0], [0], [1], [0, 0, 1, 1], [], []>} : vector<2x64xf32>, vector<64x256xf32>, vector<2x256xf32> -> vector<2x256xf32>
    %299 = arith.addf %297, %298 : vector<2x256xf32>
    %300 = arith.negf %299 : vector<2x256xf32>
    %301 = math.exp %300 : vector<2x256xf32>
    %cst_51 = arith.constant 1.000000e+00 : f32
    %302 = vector.broadcast %cst_51 : f32 to vector<2x256xf32>
    %303 = arith.addf %302, %301 : vector<2x256xf32>
    %304 = arith.divf %302, %303 : vector<2x256xf32>
    %305 = arith.mulf %304, %32 : vector<2x256xf32>
    %306 = arith.addf %305, %35 : vector<2x256xf32>
    %307 = vector.extract_strided_slice %306 {offsets = [0, 32], sizes = [2, 32], strides = [1, 1]} : vector<2x256xf32> to vector<2x32xf32>
    %308 = arith.mulf %307, %288 : vector<2x32xf32>
    %309 = vector.extract_strided_slice %306 {offsets = [0, 0], sizes = [2, 32], strides = [1, 1]} : vector<2x256xf32> to vector<2x32xf32>
    %310 = vector.extract_strided_slice %306 {offsets = [0, 64], sizes = [2, 32], strides = [1, 1]} : vector<2x256xf32> to vector<2x32xf32>
    %311 = arith.mulf %309, %310 : vector<2x32xf32>
    %312 = arith.addf %308, %311 : vector<2x32xf32>
    %313 = vector.extract_strided_slice %306 {offsets = [0, 160], sizes = [2, 32], strides = [1, 1]} : vector<2x256xf32> to vector<2x32xf32>
    %314 = arith.mulf %313, %290 : vector<2x32xf32>
    %315 = vector.extract_strided_slice %306 {offsets = [0, 128], sizes = [2, 32], strides = [1, 1]} : vector<2x256xf32> to vector<2x32xf32>
    %316 = vector.extract_strided_slice %306 {offsets = [0, 192], sizes = [2, 32], strides = [1, 1]} : vector<2x256xf32> to vector<2x32xf32>
    %317 = arith.mulf %315, %316 : vector<2x32xf32>
    %318 = arith.addf %314, %317 : vector<2x32xf32>
    %319 = vector.extract_strided_slice %306 {offsets = [0, 96], sizes = [2, 32], strides = [1, 1]} : vector<2x256xf32> to vector<2x32xf32>
    %320 = math.tanh %312 : vector<2x32xf32>
    %321 = arith.mulf %319, %320 : vector<2x32xf32>
    %322 = vector.extract_strided_slice %306 {offsets = [0, 224], sizes = [2, 32], strides = [1, 1]} : vector<2x256xf32> to vector<2x32xf32>
    %323 = math.tanh %318 : vector<2x32xf32>
    %324 = arith.mulf %322, %323 : vector<2x32xf32>
    %c6_i32 = arith.constant 6 : i32
    %325 = vector.broadcast %c6_i32 : i32 to vector<2x32xi32>
    %326 = arith.cmpi sgt, %38, %325 : vector<2x32xi32>
    %c6_i32_52 = arith.constant 6 : i32
    %327 = vector.broadcast %c6_i32_52 : i32 to vector<2x32xi32>
    %328 = arith.cmpi sgt, %41, %327 : vector<2x32xi32>
    %329 = arith.select %326, %312, %288 : vector<2x32xi1>, vector<2x32xf32>
    %330 = arith.select %326, %321, %289 : vector<2x32xi1>, vector<2x32xf32>
    %331 = arith.select %328, %318, %290 : vector<2x32xi1>, vector<2x32xf32>
    %332 = arith.select %328, %324, %291 : vector<2x32xi1>, vector<2x32xf32>
    %333 = tpu.concatenate %330, %332 in 1 : vector<2x32xf32>, vector<2x32xf32> -> vector<2x64xf32>
    %334 = vector.extract_strided_slice %10 {offsets = [0, 7, 0], sizes = [2, 1, 128], strides = [1, 1, 1]} : vector<2x8x128xf32> to vector<2x1x128xf32>
    %335 = vector.shape_cast %334 : vector<2x1x128xf32> to vector<2x128xf32>
    %336 = vector.extract_strided_slice %17 {offsets = [0, 7, 0], sizes = [2, 1, 128], strides = [1, 1, 1]} : vector<2x8x128xf32> to vector<2x1x128xf32>
    %337 = vector.shape_cast %336 : vector<2x1x128xf32> to vector<2x128xf32>
    %338 = tpu.concatenate %335, %337 in 1 : vector<2x128xf32>, vector<2x128xf32> -> vector<2x256xf32>
    %cst_53 = arith.constant dense<0.000000e+00> : vector<2x256xf32>
    %339 = tpu.matmul %333, %3, %cst_53 {dimension_numbers = #tpu.dot_dimension_numbers<[1], [0], [0], [1], [0, 0, 1, 1], [], []>} : vector<2x64xf32>, vector<64x256xf32>, vector<2x256xf32> -> vector<2x256xf32>
    %340 = arith.addf %338, %339 : vector<2x256xf32>
    %341 = arith.negf %340 : vector<2x256xf32>
    %342 = math.exp %341 : vector<2x256xf32>
    %cst_54 = arith.constant 1.000000e+00 : f32
    %343 = vector.broadcast %cst_54 : f32 to vector<2x256xf32>
    %344 = arith.addf %343, %342 : vector<2x256xf32>
    %345 = arith.divf %343, %344 : vector<2x256xf32>
    %346 = arith.mulf %345, %32 : vector<2x256xf32>
    %347 = arith.addf %346, %35 : vector<2x256xf32>
    %348 = vector.extract_strided_slice %347 {offsets = [0, 32], sizes = [2, 32], strides = [1, 1]} : vector<2x256xf32> to vector<2x32xf32>
    %349 = arith.mulf %348, %329 : vector<2x32xf32>
    %350 = vector.extract_strided_slice %347 {offsets = [0, 0], sizes = [2, 32], strides = [1, 1]} : vector<2x256xf32> to vector<2x32xf32>
    %351 = vector.extract_strided_slice %347 {offsets = [0, 64], sizes = [2, 32], strides = [1, 1]} : vector<2x256xf32> to vector<2x32xf32>
    %352 = arith.mulf %350, %351 : vector<2x32xf32>
    %353 = arith.addf %349, %352 : vector<2x32xf32>
    %354 = vector.extract_strided_slice %347 {offsets = [0, 160], sizes = [2, 32], strides = [1, 1]} : vector<2x256xf32> to vector<2x32xf32>
    %355 = arith.mulf %354, %331 : vector<2x32xf32>
    %356 = vector.extract_strided_slice %347 {offsets = [0, 128], sizes = [2, 32], strides = [1, 1]} : vector<2x256xf32> to vector<2x32xf32>
    %357 = vector.extract_strided_slice %347 {offsets = [0, 192], sizes = [2, 32], strides = [1, 1]} : vector<2x256xf32> to vector<2x32xf32>
    %358 = arith.mulf %356, %357 : vector<2x32xf32>
    %359 = arith.addf %355, %358 : vector<2x32xf32>
    %360 = vector.extract_strided_slice %347 {offsets = [0, 96], sizes = [2, 32], strides = [1, 1]} : vector<2x256xf32> to vector<2x32xf32>
    %361 = math.tanh %353 : vector<2x32xf32>
    %362 = arith.mulf %360, %361 : vector<2x32xf32>
    %363 = vector.extract_strided_slice %347 {offsets = [0, 224], sizes = [2, 32], strides = [1, 1]} : vector<2x256xf32> to vector<2x32xf32>
    %364 = math.tanh %359 : vector<2x32xf32>
    %365 = arith.mulf %363, %364 : vector<2x32xf32>
    %c7_i32 = arith.constant 7 : i32
    %366 = vector.broadcast %c7_i32 : i32 to vector<2x32xi32>
    %367 = arith.cmpi sgt, %38, %366 : vector<2x32xi32>
    %c7_i32_55 = arith.constant 7 : i32
    %368 = vector.broadcast %c7_i32_55 : i32 to vector<2x32xi32>
    %369 = arith.cmpi sgt, %41, %368 : vector<2x32xi32>
    %370 = arith.select %367, %362, %330 : vector<2x32xi1>, vector<2x32xf32>
    %371 = arith.select %369, %365, %332 : vector<2x32xi1>, vector<2x32xf32>
    %372 = tpu.concatenate %370, %371 in 1 : vector<2x32xf32>, vector<2x32xf32> -> vector<2x64xf32>
    %c0_56 = arith.constant 0 : index
    %c0_57 = arith.constant 0 : index
    %c0_58 = arith.constant 0 : index
    %373 = vector.load %arg11[%c0_56, %c0_57, %c0_58] : memref<3x300x64xf32, #tpu.memory_space<vmem>>, vector<3x300x64xf32>
    %374 = vector.shape_cast %0 : vector<2x8x300xf32> to vector<16x300xf32>
    %375 = vector.extract_strided_slice %373 {offsets = [0, 0, 0], sizes = [1, 300, 64], strides = [1, 1, 1]} : vector<3x300x64xf32> to vector<1x300x64xf32>
    %376 = vector.shape_cast %375 : vector<1x300x64xf32> to vector<300x64xf32>
    %cst_59 = arith.constant dense<0.000000e+00> : vector<16x64xf32>
    %377 = tpu.matmul %374, %376, %cst_59 {dimension_numbers = #tpu.dot_dimension_numbers<[1], [0], [0], [1], [0, 0, 1, 1], [], []>} : vector<16x300xf32>, vector<300x64xf32>, vector<16x64xf32> -> vector<16x64xf32>
    %378 = vector.shape_cast %377 : vector<16x64xf32> to vector<2x8x64xf32>
    %379 = vector.extract_strided_slice %373 {offsets = [1, 0, 0], sizes = [1, 300, 64], strides = [1, 1, 1]} : vector<3x300x64xf32> to vector<1x300x64xf32>
    %380 = vector.shape_cast %379 : vector<1x300x64xf32> to vector<300x64xf32>
    %cst_60 = arith.constant dense<0.000000e+00> : vector<16x64xf32>
    %381 = tpu.matmul %374, %380, %cst_60 {dimension_numbers = #tpu.dot_dimension_numbers<[1], [0], [0], [1], [0, 0, 1, 1], [], []>} : vector<16x300xf32>, vector<300x64xf32>, vector<16x64xf32> -> vector<16x64xf32>
    %382 = vector.shape_cast %381 : vector<16x64xf32> to vector<2x8x64xf32>
    %383 = vector.extract_strided_slice %373 {offsets = [2, 0, 0], sizes = [1, 300, 64], strides = [1, 1, 1]} : vector<3x300x64xf32> to vector<1x300x64xf32>
    %384 = vector.shape_cast %383 : vector<1x300x64xf32> to vector<300x64xf32>
    %cst_61 = arith.constant dense<0.000000e+00> : vector<16x64xf32>
    %385 = tpu.matmul %374, %384, %cst_61 {dimension_numbers = #tpu.dot_dimension_numbers<[1], [0], [0], [1], [0, 0, 1, 1], [], []>} : vector<16x300xf32>, vector<300x64xf32>, vector<16x64xf32> -> vector<16x64xf32>
    %386 = vector.shape_cast %385 : vector<16x64xf32> to vector<2x8x64xf32>
    %387 = vector.extract_strided_slice %378 {offsets = [0, 0, 0], sizes = [2, 6, 64], strides = [1, 1, 1]} : vector<2x8x64xf32> to vector<2x6x64xf32>
    %388 = vector.extract_strided_slice %382 {offsets = [0, 1, 0], sizes = [2, 6, 64], strides = [1, 1, 1]} : vector<2x8x64xf32> to vector<2x6x64xf32>
    %389 = arith.addf %387, %388 : vector<2x6x64xf32>
    %390 = vector.extract_strided_slice %386 {offsets = [0, 2, 0], sizes = [2, 6, 64], strides = [1, 1, 1]} : vector<2x8x64xf32> to vector<2x6x64xf32>
    %391 = arith.addf %389, %390 : vector<2x6x64xf32>
    %cst_62 = arith.constant dense<0xFF800000> : vector<2x64xf32>
    %392 = vector.multi_reduction <maximumf>, %391, %cst_62 [1] : vector<2x6x64xf32> to vector<2x64xf32>
    %c0_63 = arith.constant 0 : index
    %c0_64 = arith.constant 0 : index
    %393 = vector.load %arg12[%c0_63, %c0_64] : memref<1x64xf32, #tpu.memory_space<vmem>>, vector<1x64xf32>
    %394 = vector.broadcast %393 : vector<1x64xf32> to vector<2x64xf32>
    %395 = arith.addf %392, %394 : vector<2x64xf32>
    %396 = vector.shape_cast %2 : vector<2x4x300xf32> to vector<8x300xf32>
    %397 = vector.extract_strided_slice %373 {offsets = [0, 0, 0], sizes = [1, 300, 64], strides = [1, 1, 1]} : vector<3x300x64xf32> to vector<1x300x64xf32>
    %398 = vector.shape_cast %397 : vector<1x300x64xf32> to vector<300x64xf32>
    %cst_65 = arith.constant dense<0.000000e+00> : vector<8x64xf32>
    %399 = tpu.matmul %396, %398, %cst_65 {dimension_numbers = #tpu.dot_dimension_numbers<[1], [0], [0], [1], [0, 0, 1, 1], [], []>} : vector<8x300xf32>, vector<300x64xf32>, vector<8x64xf32> -> vector<8x64xf32>
    %400 = vector.shape_cast %399 : vector<8x64xf32> to vector<2x4x64xf32>
    %401 = vector.extract_strided_slice %373 {offsets = [1, 0, 0], sizes = [1, 300, 64], strides = [1, 1, 1]} : vector<3x300x64xf32> to vector<1x300x64xf32>
    %402 = vector.shape_cast %401 : vector<1x300x64xf32> to vector<300x64xf32>
    %cst_66 = arith.constant dense<0.000000e+00> : vector<8x64xf32>
    %403 = tpu.matmul %396, %402, %cst_66 {dimension_numbers = #tpu.dot_dimension_numbers<[1], [0], [0], [1], [0, 0, 1, 1], [], []>} : vector<8x300xf32>, vector<300x64xf32>, vector<8x64xf32> -> vector<8x64xf32>
    %404 = vector.shape_cast %403 : vector<8x64xf32> to vector<2x4x64xf32>
    %405 = vector.extract_strided_slice %373 {offsets = [2, 0, 0], sizes = [1, 300, 64], strides = [1, 1, 1]} : vector<3x300x64xf32> to vector<1x300x64xf32>
    %406 = vector.shape_cast %405 : vector<1x300x64xf32> to vector<300x64xf32>
    %cst_67 = arith.constant dense<0.000000e+00> : vector<8x64xf32>
    %407 = tpu.matmul %396, %406, %cst_67 {dimension_numbers = #tpu.dot_dimension_numbers<[1], [0], [0], [1], [0, 0, 1, 1], [], []>} : vector<8x300xf32>, vector<300x64xf32>, vector<8x64xf32> -> vector<8x64xf32>
    %408 = vector.shape_cast %407 : vector<8x64xf32> to vector<2x4x64xf32>
    %409 = vector.extract_strided_slice %400 {offsets = [0, 0, 0], sizes = [2, 2, 64], strides = [1, 1, 1]} : vector<2x4x64xf32> to vector<2x2x64xf32>
    %410 = vector.extract_strided_slice %404 {offsets = [0, 1, 0], sizes = [2, 2, 64], strides = [1, 1, 1]} : vector<2x4x64xf32> to vector<2x2x64xf32>
    %411 = arith.addf %409, %410 : vector<2x2x64xf32>
    %412 = vector.extract_strided_slice %408 {offsets = [0, 2, 0], sizes = [2, 2, 64], strides = [1, 1, 1]} : vector<2x4x64xf32> to vector<2x2x64xf32>
    %413 = arith.addf %411, %412 : vector<2x2x64xf32>
    %cst_68 = arith.constant dense<0xFF800000> : vector<2x64xf32>
    %414 = vector.multi_reduction <maximumf>, %413, %cst_68 [1] : vector<2x2x64xf32> to vector<2x64xf32>
    %c0_69 = arith.constant 0 : index
    %c0_70 = arith.constant 0 : index
    %415 = vector.load %arg12[%c0_69, %c0_70] : memref<1x64xf32, #tpu.memory_space<vmem>>, vector<1x64xf32>
    %416 = vector.broadcast %415 : vector<1x64xf32> to vector<2x64xf32>
    %417 = arith.addf %414, %416 : vector<2x64xf32>
    %c0_71 = arith.constant 0 : index
    %c0_72 = arith.constant 0 : index
    %418 = vector.load %arg13[%c0_71, %c0_72] : memref<128x64xf32, #tpu.memory_space<vmem>>, vector<128x64xf32>
    %c0_73 = arith.constant 0 : index
    %c0_74 = arith.constant 0 : index
    %419 = vector.load %arg15[%c0_73, %c0_74] : memref<128x3xf32, #tpu.memory_space<vmem>>, vector<128x3xf32>
    %420 = vector.extract_strided_slice %418 {offsets = [0, 0], sizes = [64, 64], strides = [1, 1]} : vector<128x64xf32> to vector<64x64xf32>
    %cst_75 = arith.constant dense<0.000000e+00> : vector<2x64xf32>
    %421 = tpu.matmul %395, %420, %cst_75 {dimension_numbers = #tpu.dot_dimension_numbers<[1], [0], [0], [1], [0, 0, 1, 1], [], []>} : vector<2x64xf32>, vector<64x64xf32>, vector<2x64xf32> -> vector<2x64xf32>
    %422 = vector.extract_strided_slice %418 {offsets = [64, 0], sizes = [64, 64], strides = [1, 1]} : vector<128x64xf32> to vector<64x64xf32>
    %cst_76 = arith.constant dense<0.000000e+00> : vector<2x64xf32>
    %423 = tpu.matmul %417, %422, %cst_76 {dimension_numbers = #tpu.dot_dimension_numbers<[1], [0], [0], [1], [0, 0, 1, 1], [], []>} : vector<2x64xf32>, vector<64x64xf32>, vector<2x64xf32> -> vector<2x64xf32>
    %424 = arith.addf %421, %423 : vector<2x64xf32>
    %c0_77 = arith.constant 0 : index
    %c0_78 = arith.constant 0 : index
    %425 = vector.load %arg14[%c0_77, %c0_78] : memref<1x64xf32, #tpu.memory_space<vmem>>, vector<1x64xf32>
    %426 = vector.broadcast %425 : vector<1x64xf32> to vector<2x64xf32>
    %427 = arith.addf %424, %426 : vector<2x64xf32>
    %428 = math.tanh %427 : vector<2x64xf32>
    %429 = vector.extract_strided_slice %419 {offsets = [0, 0], sizes = [64, 3], strides = [1, 1]} : vector<128x3xf32> to vector<64x3xf32>
    %cst_79 = arith.constant dense<0.000000e+00> : vector<2x3xf32>
    %430 = tpu.matmul %428, %429, %cst_79 {dimension_numbers = #tpu.dot_dimension_numbers<[1], [0], [0], [1], [0, 0, 1, 1], [], []>} : vector<2x64xf32>, vector<64x3xf32>, vector<2x3xf32> -> vector<2x3xf32>
    %431 = vector.extract_strided_slice %419 {offsets = [64, 0], sizes = [64, 3], strides = [1, 1]} : vector<128x3xf32> to vector<64x3xf32>
    %cst_80 = arith.constant dense<0.000000e+00> : vector<2x3xf32>
    %432 = tpu.matmul %372, %431, %cst_80 {dimension_numbers = #tpu.dot_dimension_numbers<[1], [0], [0], [1], [0, 0, 1, 1], [], []>} : vector<2x64xf32>, vector<64x3xf32>, vector<2x3xf32> -> vector<2x3xf32>
    %433 = arith.addf %430, %432 : vector<2x3xf32>
    %c0_81 = arith.constant 0 : index
    %c0_82 = arith.constant 0 : index
    %434 = vector.load %arg16[%c0_81, %c0_82] : memref<1x3xf32, #tpu.memory_space<vmem>>, vector<1x3xf32>
    %435 = vector.broadcast %434 : vector<1x3xf32> to vector<2x3xf32>
    %436 = arith.addf %433, %435 : vector<2x3xf32>
    %c0_83 = arith.constant 0 : index
    %c0_84 = arith.constant 0 : index
    %437 = vector.load %arg17[%c0_83, %c0_84] : memref<2x3xf32, #tpu.memory_space<vmem>>, vector<2x3xf32>
    tpu.vector_store %arg17[%c0_83, %c0_84], %436 {strides = array<i32>} : memref<2x3xf32, #tpu.memory_space<vmem>>, vector<2x3xf32>,
    return
  }
  func.func @transform_0(%arg0: i32) -> (i32, i32, i32) {
    %c0_i32 = arith.constant 0 : i32
    %c0_i32_0 = arith.constant 0 : i32
    %c0_i32_1 = arith.constant 0 : i32
    %c0_i32_2 = arith.constant 0 : i32
    return %c0_i32, %c0_i32_0, %c0_i32_1 : i32, i32, i32
  }
  func.func @transform_1(%arg0: i32) -> (i32, i32, i32) {
    %c0_i32 = arith.constant 0 : i32
    %c0_i32_0 = arith.constant 0 : i32
    %c0_i32_1 = arith.constant 0 : i32
    %c0_i32_2 = arith.constant 0 : i32
    return %c0_i32, %c0_i32_0, %c0_i32_1 : i32, i32, i32
  }
  func.func @transform_2(%arg0: i32) -> (i32, i32, i32) {
    %c0_i32 = arith.constant 0 : i32
    %c0_i32_0 = arith.constant 0 : i32
    %c0_i32_1 = arith.constant 0 : i32
    %c0_i32_2 = arith.constant 0 : i32
    return %c0_i32, %c0_i32_0, %c0_i32_1 : i32, i32, i32
  }
  func.func @transform_3(%arg0: i32) -> (i32, i32) {
    %c0_i32 = arith.constant 0 : i32
    %c0_i32_0 = arith.constant 0 : i32
    %c0_i32_1 = arith.constant 0 : i32
    return %c0_i32, %c0_i32_0 : i32, i32
  }
  func.func @transform_4(%arg0: i32) -> (i32, i32) {
    %c0_i32 = arith.constant 0 : i32
    %c0_i32_0 = arith.constant 0 : i32
    %c0_i32_1 = arith.constant 0 : i32
    return %c0_i32, %c0_i32_0 : i32, i32
  }
  func.func @transform_5(%arg0: i32) -> (i32, i32) {
    %c0_i32 = arith.constant 0 : i32
    %c0_i32_0 = arith.constant 0 : i32
    %c0_i32_1 = arith.constant 0 : i32
    return %c0_i32, %c0_i32_0 : i32, i32
  }
  func.func @transform_6(%arg0: i32) -> (i32, i32) {
    %c0_i32 = arith.constant 0 : i32
    %c0_i32_0 = arith.constant 0 : i32
    %c0_i32_1 = arith.constant 0 : i32
    return %c0_i32, %c0_i32_0 : i32, i32
  }
  func.func @transform_7(%arg0: i32) -> (i32, i32) {
    %c0_i32 = arith.constant 0 : i32
    %c0_i32_0 = arith.constant 0 : i32
    %c0_i32_1 = arith.constant 0 : i32
    return %c0_i32, %c0_i32_0 : i32, i32
  }
  func.func @transform_8(%arg0: i32) -> (i32, i32) {
    %c0_i32 = arith.constant 0 : i32
    %c0_i32_0 = arith.constant 0 : i32
    %c0_i32_1 = arith.constant 0 : i32
    return %c0_i32, %c0_i32_0 : i32, i32
  }
  func.func @transform_9(%arg0: i32) -> (i32, i32) {
    %c0_i32 = arith.constant 0 : i32
    %c0_i32_0 = arith.constant 0 : i32
    %c0_i32_1 = arith.constant 0 : i32
    return %c0_i32, %c0_i32_0 : i32, i32
  }
  func.func @transform_10(%arg0: i32) -> (i32, i32, i32) {
    %c0_i32 = arith.constant 0 : i32
    %c0_i32_0 = arith.constant 0 : i32
    %c0_i32_1 = arith.constant 0 : i32
    %c0_i32_2 = arith.constant 0 : i32
    return %c0_i32, %c0_i32_0, %c0_i32_1 : i32, i32, i32
  }
  func.func @transform_11(%arg0: i32) -> (i32, i32) {
    %c0_i32 = arith.constant 0 : i32
    %c0_i32_0 = arith.constant 0 : i32
    %c0_i32_1 = arith.constant 0 : i32
    return %c0_i32, %c0_i32_0 : i32, i32
  }
  func.func @transform_12(%arg0: i32) -> (i32, i32) {
    %c0_i32 = arith.constant 0 : i32
    %c0_i32_0 = arith.constant 0 : i32
    %c0_i32_1 = arith.constant 0 : i32
    return %c0_i32, %c0_i32_0 : i32, i32
  }
  func.func @transform_13(%arg0: i32) -> (i32, i32) {
    %c0_i32 = arith.constant 0 : i32
    %c0_i32_0 = arith.constant 0 : i32
    %c0_i32_1 = arith.constant 0 : i32
    return %c0_i32, %c0_i32_0 : i32, i32
  }
  func.func @transform_14(%arg0: i32) -> (i32, i32) {
    %c0_i32 = arith.constant 0 : i32
    %c0_i32_0 = arith.constant 0 : i32
    %c0_i32_1 = arith.constant 0 : i32
    return %c0_i32, %c0_i32_0 : i32, i32
  }
  func.func @transform_15(%arg0: i32) -> (i32, i32) {
    %c0_i32 = arith.constant 0 : i32
    %c0_i32_0 = arith.constant 0 : i32
    %c0_i32_1 = arith.constant 0 : i32
    return %c0_i32, %c0_i32_0 : i32, i32
  }
  func.func @transform_16(%arg0: i32) -> (i32, i32) {
    %c0_i32 = arith.constant 0 : i32
    %c0_i32_0 = arith.constant 0 : i32
    %c0_i32_1 = arith.constant 0 : i32
    return %c0_i32, %c0_i32_0 : i32, i32
  }
}

</mosaic_0001>

<bundles_post_ra>
// kernel: td_lstm_forward.1
= control target key start
LH: loop header
LB: loop body
LE: loop exit
PB: predicated region body
PF: predicated region fallthrough
CT: control target
= control target key end

     0   :  { %s6469_s0 = inlined_call_operand.vmem [shape: f32[2,8,300], index: 0, kind: input, shape index: {}]   ;;  %s6470_s1 = inlined_call_operand.vmem [shape: f32[2,8,300], index: 1, kind: input, shape index: {}]   ;;  %s6471_s2 = inlined_call_operand.vmem [shape: f32[2,4,300], index: 2, kind: input, shape index: {}]   ;;  %s6472_s3 = inlined_call_operand.vmem [shape: s32[2,1], index: 3, kind: input, shape index: {}]   ;;  %s6473_s4 = inlined_call_operand.vmem [shape: s32[2,1], index: 4, kind: input, shape index: {}]   ;;  %s6474_s5 = inlined_call_operand.vmem [shape: f32[300,128], index: 5, kind: input, shape index: {}]   ;;  %s6475_s6 = inlined_call_operand.vmem [shape: f32[300,128], index: 6, kind: input, shape index: {}]   ;;  %s6476_s7 = inlined_call_operand.vmem [shape: f32[1,128], index: 7, kind: input, shape index: {}]   ;;  %s6477_s8 = inlined_call_operand.vmem [shape: f32[1,128], index: 8, kind: input, shape index: {}]   ;;  %s6478_s9 = inlined_call_operand.vmem [shape: f32[64,256], index: 9, kind: input, shape index: {}]   ;;  %s6479_s10 = inlined_call_operand.vmem [shape: f32[3,300,64], index: 10, kind: input, shape index: {}]   ;;  %s6480_s11 = inlined_call_operand.vmem [shape: f32[1,64], index: 11, kind: input, shape index: {}]   ;;  %s6481_s12 = inlined_call_operand.vmem [shape: f32[128,64], index: 12, kind: input, shape index: {}]   ;;  %s6482_s13 = inlined_call_operand.vmem [shape: f32[1,64], index: 13, kind: input, shape index: {}]   ;;  %s6483_s14 = inlined_call_operand.vmem [shape: f32[128,3], index: 14, kind: input, shape index: {}]   ;;  %s6484_s15 = inlined_call_operand.vmem [shape: f32[1,3], index: 15, kind: input, shape index: {}]   ;;  %s6485_s16 = inlined_call_operand.hbm [shape: f32[2,3], index: 16, kind: output, shape index: {}]  }
   0x1   :  { %6523 = sst [smem:[#allocation31_spill]] %s6469_s0 }
   0x2   :  { %v102_v0 = vld [vmem:[%s6474_s5 + $0x80] sm:$0xff]  ;;  %v103_v1 = vld [vmem:[%s6474_s5 + $0x88] sm:$0xff]  ;;  %v104_v9 = vld [vmem:[%s6474_s5 + $0x90] sm:$0xff]  ;;  %vm138_vm0 = vcmask 1043456   ;;  %vm4758_vm1 = vmmov 1   ;;  %vm131_vm3 = vcmask 359424  }
   0x3   :  { %v118_v2 = vld [vmem:[%s6474_s5 + $0x100] sm:$0xff]  ;;  %v4070_v3 = vpack.c.bf16 %v103_v1, %v102_v0  ;;  %v119_v4 = vld [vmem:[%s6474_s5 + $0x108] sm:$0xff]  ;;  %v105_v10 = vld [vmem:[%s6474_s5 + $0x98] sm:$0xff]  ;;  %s6526_s18 = sld [smem:[#allocation31_spill]] }
   0x4   :  { %v86_v5 = vld [vmem:[%s6474_s5] sm:$0xff]  ;;  %v87_v6 = vld [vmem:[%s6474_s5 + $0x8] sm:$0xff]  ;;  %v4102_v7 = vpack.c.bf16 %v119_v4, %v118_v2  ;;  %v120_v11 = vld [vmem:[%s6474_s5 + $0x110] sm:$0xff]  ;;  %v4074_v12 = vpack.c.bf16 %v105_v10, %v104_v9 }
   0x5   :  { %v4072_v8 = vpack.c.bf16 %v87_v6, %v86_v5  ;;  %4071 = vmatprep.subr.bf16.mxu0 %v4070_v3  ;;  %v121_v13 = vld [vmem:[%s6474_s5 + $0x118] sm:$0xff]  ;;  %v88_v14 = vld [vmem:[%s6474_s5 + $0x10] sm:$0xff]  ;;  %v106_v18 = vld [vmem:[%s6474_s5 + $0xa0] sm:$0xff] }
   0x6   :  { %v89_v15 = vld [vmem:[%s6474_s5 + $0x18] sm:$0xff]  ;;  %4103 = vmatprep.subr.bf16.mxu1 %v4102_v7  ;;  %v4106_v16 = vpack.c.bf16 %v121_v13, %v120_v11  ;;  %v107_v19 = vld [vmem:[%s6474_s5 + $0xa8] sm:$0xff]  ;;  %v122_v20 = vld [vmem:[%s6474_s5 + $0x120] sm:$0xff] }
   0x7   :  { %4073 = vmatpush3.bf16.msra.mxu0 %v4072_v8  ;;  %v4076_v17 = vpack.c.bf16 %v89_v15, %v88_v14  ;;  %4105 = vmatpush3.bf16.msra.mxu1 %v4102_v7  ;;  %v4078_v21 = vpack.c.bf16 %v107_v19, %v106_v18  ;;  %v123_v22 = vld [vmem:[%s6474_s5 + $0x128] sm:$0xf]  ;;  %vm4902_vm2 = vmpackc.low %vm138_vm0, %vm4758_vm1  ;;  %v90_v24 = vld [vmem:[%s6474_s5 + $0x20] sm:$0xff] }
   0x8   :  { %4075 = vmatprep.subr.bf16.mxu0 %v4074_v12  ;;  %4107 = vmatprep.subr.bf16.mxu1 %v4106_v16  ;;  %v4110_v25 = vpack.c.bf16 %v123_v22, %v122_v20  ;;  %v91_v26 = vld [vmem:[%s6474_s5 + $0x28] sm:$0xff]  ;;  %v108_v27 = vld [vmem:[%s6474_s5 + $0xb0] sm:$0xff]  ;;  %v109_v28 = vld [vmem:[%s6474_s5 + $0xb8] sm:$0xff] }
   0x9   :  { %v56_v29 = vld [vmem:[%s6526_s18 + $0x10] sm:$0xff]  ;;  %v308_v30 = vld [vmem:[%s6475_s6 + $0x80] sm:$0xff]  ;;  %v309_v31 = vld [vmem:[%s6475_s6 + $0x88] sm:$0xff]  ;;  %v4080_v32 = vpack.c.bf16 %v91_v26, %v90_v24  ;;  %v4082_v33 = vpack.c.bf16 %v109_v28, %v108_v27 }
   0xa   :  { %3886 = vmatprep.mubr.msk.f32.mxu1 %vm131_vm3, %v56_v29  ;;  %v92_v34 = vld [vmem:[%s6474_s5 + $0x30] sm:$0xff]  ;;  %v93_v35 = vld [vmem:[%s6474_s5 + $0x38] sm:$0xff]  ;;  %v292_v36 = vld [vmem:[%s6475_s6] sm:$0xff]  ;;  %v4116_v37 = vpack.c.bf16 %v309_v31, %v308_v30 }
   0xb   :  { %4077 = vmatpush3.bf16.msra.mxu0 %v4076_v17  ;;  %4109 = vmatpush3.bf16.msra.mxu1 %v4106_v16  ;;  %v293_v38 = vld [vmem:[%s6475_s6 + $0x8] sm:$0xff]  ;;  %v110_v39 = vld [vmem:[%s6474_s5 + $0xc0] sm:$0xff]  ;;  %v310_v41 = vld [vmem:[%s6475_s6 + $0x90] sm:$0xff]  ;;  %v4084_v43 = vpack.c.bf16 %v93_v35, %v92_v34 }
   0xc   :  { %4079 = vmatprep.subr.bf16.mxu0 %v4078_v21  ;;  %4112 = vmatprep.subr.msk.bf16.mxu1 %vm4902_vm2, %v4110_v25  ;;  %v111_v40 = vld [vmem:[%s6474_s5 + $0xc8] sm:$0xff]  ;;  %v311_v42 = vld [vmem:[%s6475_s6 + $0x98] sm:$0xff]  ;;  %v4118_v45 = vpack.c.bf16 %v293_v38, %v292_v36  ;;  %v94_v47 = vld [vmem:[%s6474_s5 + $0x40] sm:$0xff] }
   0xd   :  { %v59_v44 = vld [vmem:[%s6526_s18 + $0x28] sm:$0xff]  ;;  %v4086_v46 = vpack.c.bf16 %v111_v40, %v110_v39  ;;  %v294_v49 = vld [vmem:[%s6475_s6 + $0x10] sm:$0xff]  ;;  %v4120_v50 = vpack.c.bf16 %v311_v42, %v310_v41  ;;  %v295_v51 = vld [vmem:[%s6475_s6 + $0x18] sm:$0xff] }
   0xe   :  { %v95_v48 = vld [vmem:[%s6474_s5 + $0x48] sm:$0xff]  ;;  %v112_v52 = vld [vmem:[%s6474_s5 + $0xd0] sm:$0xff]  ;;  %v113_v53 = vld [vmem:[%s6474_s5 + $0xd8] sm:$0xff]  ;;  %v4122_v57 = vpack.c.bf16 %v295_v51, %v294_v49 }
   0xf   :  { %4081 = vmatpush3.bf16.msra.mxu0 %v4080_v32  ;;  %4115 = vmatpush3.bf16.msk.msra.mxu1 %vm4902_vm2, %v4110_v25  ;;  %v312_v54 = vld [vmem:[%s6475_s6 + $0xa0] sm:$0xff]  ;;  %v313_v55 = vld [vmem:[%s6475_s6 + $0xa8] sm:$0xff]  ;;  %v4088_v56 = vpack.c.bf16 %v95_v48, %v94_v47  ;;  %v4090_v58 = vpack.c.bf16 %v113_v53, %v112_v52  ;;  %v96_v59 = vld [vmem:[%s6474_s5 + $0x50] sm:$0xff] }
  0x10   :  { %4083 = vmatprep.subr.bf16.mxu0 %v4082_v33  ;;  %4117 = vmatprep.subr.bf16.mxu1 %v4116_v37  ;;  %v97_v60 = vld [vmem:[%s6474_s5 + $0x58] sm:$0xff]  ;;  %v296_v61 = vld [vmem:[%s6475_s6 + $0x20] sm:$0xff]  ;;  %v4124_v62 = vpack.c.bf16 %v313_v55, %v312_v54  ;;  %v297_v63 = vld [vmem:[%s6475_s6 + $0x28] sm:$0xff] }
  0x11   :  { %v114_v0 = vld [vmem:[%s6474_s5 + $0xe0] sm:$0xff]  ;;  %v115_v1 = vld [vmem:[%s6474_s5 + $0xe8] sm:$0xff]  ;;  %v314_v2 = vld [vmem:[%s6475_s6 + $0xb0] sm:$0xff]  ;;  %v4092_v4 = vpack.c.bf16 %v97_v60, %v96_v59  ;;  %v4126_v6 = vpack.c.bf16 %v297_v63, %v296_v61 }
  0x12   :  { %3887 = vmatmul.mubr.msk.f32.vlgmr.msra.gmra.mrb[0].mxu1 %vm131_vm3, %v59_v44  ;;  %v315_v3 = vld [vmem:[%s6475_s6 + $0xb8] sm:$0xff]  ;;  %v55_v5 = vld [vmem:[%s6526_s18 + $0x8] sm:$0xff]  ;;  %v4094_v7 = vpack.c.bf16 %v115_v1, %v114_v0  ;;  %v98_v8 = vld [vmem:[%s6474_s5 + $0x60] sm:$0xff] }
  0x13   :  { %4085 = vmatpush3.bf16.msra.mxu0 %v4084_v43  ;;  %4119 = vmatpush3.bf16.msra.mxu1 %v4118_v45  ;;  %v99_v9 = vld [vmem:[%s6474_s5 + $0x68] sm:$0xff]  ;;  %v298_v10 = vld [vmem:[%s6475_s6 + $0x30] sm:$0xff]  ;;  %v4128_v11 = vpack.c.bf16 %v315_v3, %v314_v2  ;;  %v299_v12 = vld [vmem:[%s6475_s6 + $0x38] sm:$0xff] }
  0x14   :  { %4087 = vmatprep.subr.bf16.mxu0 %v4086_v46  ;;  %4121 = vmatprep.subr.bf16.mxu1 %v4120_v50  ;;  %v116_v13 = vld [vmem:[%s6474_s5 + $0xf0] sm:$0xff]  ;;  %v117_v14 = vld [vmem:[%s6474_s5 + $0xf8] sm:$0xff]  ;;  %v316_v15 = vld [vmem:[%s6475_s6 + $0xc0] sm:$0xff]  ;;  %v4096_v17 = vpack.c.bf16 %v99_v9, %v98_v8  ;;  %v4130_v18 = vpack.c.bf16 %v299_v12, %v298_v10 }
  0x15   :  { %206 = vmatprep.mubr.f32.mxu0 %v55_v5  ;;  %v317_v16 = vld [vmem:[%s6475_s6 + $0xc8] sm:$0xff]  ;;  %v4098_v19 = vpack.c.bf16 %v117_v14, %v116_v13  ;;  %v100_v20 = vld [vmem:[%s6474_s5 + $0x70] sm:$0xff]  ;;  %v101_v21 = vld [vmem:[%s6474_s5 + $0x78] sm:$0xff] }
  0x16   :  { %v300_v22 = vld [vmem:[%s6475_s6 + $0x40] sm:$0xff]  ;;  %v4132_v24 = vpack.c.bf16 %v317_v16, %v316_v15  ;;  %v301_v25 = vld [vmem:[%s6475_s6 + $0x48] sm:$0xff]  ;;  %v318_v28 = vld [vmem:[%s6475_s6 + $0xd0] sm:$0xff]  ;;  %v4100_v31 = vpack.c.bf16 %v101_v21, %v100_v20 }
  0x17   :  { %4089 = vmatpush3.bf16.msra.mxu0 %v4088_v56  ;;  %4123 = vmatpush3.bf16.msra.mxu1 %v4122_v57  ;;  %v324_v26 = vld [vmem:[%s6475_s6 + $0x100] sm:$0xff]  ;;  %v325_v27 = vld [vmem:[%s6475_s6 + $0x108] sm:$0xff]  ;;  %v319_v29 = vld [vmem:[%s6475_s6 + $0xd8] sm:$0xff]  ;;  %v4134_v32 = vpack.c.bf16 %v301_v25, %v300_v22 }
  0x18   :  { %4091 = vmatprep.subr.bf16.mxu0 %v4090_v58  ;;  %4125 = vmatprep.subr.bf16.mxu1 %v4124_v62  ;;  %v61_v30 = vld [vmem:[%s6470_s1 + $0x8] sm:$0xff]  ;;  %v4148_v33 = vpack.c.bf16 %v325_v27, %v324_v26  ;;  %v302_v34 = vld [vmem:[%s6475_s6 + $0x50] sm:$0xff]  ;;  %v4136_v35 = vpack.c.bf16 %v319_v29, %v318_v28  ;;  %v303_v36 = vld [vmem:[%s6475_s6 + $0x58] sm:$0xff] }
  0x19   :  { %410 = vmatprep.mubr.f32.mxu1 %v61_v30  ;;  %v326_v37 = vld [vmem:[%s6475_s6 + $0x110] sm:$0xff]  ;;  %v327_v38 = vld [vmem:[%s6475_s6 + $0x118] sm:$0xff]  ;;  %v320_v39 = vld [vmem:[%s6475_s6 + $0xe0] sm:$0xff]  ;;  %v4138_v43 = vpack.c.bf16 %v303_v36, %v302_v34 }
  0x1a   :  { %v321_v40 = vld [vmem:[%s6475_s6 + $0xe8] sm:$0xff]  ;;  %v54_v41 = vld [vmem:[%s6526_s18] sm:$0xff]  ;;  %v4152_v44 = vpack.c.bf16 %v327_v38, %v326_v37  ;;  %v322_v47 = vld [vmem:[%s6475_s6 + $0xf0] sm:$0xff] }
  0x1b   :  { %4093 = vmatpush3.bf16.msra.mxu0 %v4092_v4  ;;  %4127 = vmatpush3.bf16.msra.mxu1 %v4126_v6  ;;  %v58_v42 = vld [vmem:[%s6526_s18 + $0x20] sm:$0xff]  ;;  %v305_v46 = vld [vmem:[%s6475_s6 + $0x68] sm:$0xff]  ;;  %v4140_v48 = vpack.c.bf16 %v321_v40, %v320_v39  ;;  %v323_v49 = vld [vmem:[%s6475_s6 + $0xf8] sm:$0xff] }
  0x1c   :  { %4095 = vmatprep.subr.bf16.mxu0 %v4094_v7  ;;  %4129 = vmatprep.subr.bf16.mxu1 %v4128_v11  ;;  %v304_v45 = vld [vmem:[%s6475_s6 + $0x60] sm:$0xff]  ;;  %v329_v51 = vld [vmem:[%s6475_s6 + $0x128] sm:$0xf]  ;;  %v57_v52 = vld [vmem:[%s6526_s18 + $0x18] sm:$0xff] }
  0x1d   :  { %v328_v50 = vld [vmem:[%s6475_s6 + $0x120] sm:$0xff] }
  0x1f   :  { %4097 = vmatpush3.bf16.msra.mxu0 %v4096_v17  ;;  %4131 = vmatpush3.bf16.msra.mxu1 %v4130_v18 }
  0x20   :  { %4099 = vmatprep.subr.bf16.mxu0 %v4098_v19  ;;  %4133 = vmatprep.subr.bf16.mxu1 %v4132_v24 }
  0x23   :  { %4101 = vmatpush3.bf16.msra.mxu0 %v4100_v31  ;;  %4135 = vmatpush3.bf16.msra.mxu1 %v4134_v32 }
  0x24   :  { %4149 = vmatprep.subr.bf16.mxu0 %v4148_v33  ;;  %4137 = vmatprep.subr.bf16.mxu1 %v4136_v35 }
  0x26   :  { %207 = vmatmul.mubr.f32.vlgmr.msra.gmra.mrb[0].mxu0 %v54_v41 }
  0x27   :  { %4151 = vmatpush3.bf16.msra.mxu0 %v4148_v33  ;;  %211 = vmatprep.mubr.f32.mxu0 %v58_v42 }
  0x28   :  { %21 = vsyncpa [#allocation3], 0  ;;  %4139 = vmatpush3.bf16.msra.mxu1 %v4138_v43  ;;  %4153 = vmatprep.subr.bf16.mxu0 %v4152_v44  ;;  %v4142_v53 = vpack.c.bf16 %v305_v46, %v304_v45  ;;  %v4156_v54 = vpack.c.bf16 %v329_v51, %v328_v50  ;;  %v306_v55 = vld [vmem:[%s6475_s6 + $0x70] sm:$0xff]  ;;  %v4144_v57 = vpack.c.bf16 %v323_v49, %v322_v47  ;;  %v307_v58 = vld [vmem:[%s6475_s6 + $0x78] sm:$0xff]  ;;  %v6487_v19 = vmov 0.0   ;;  %s4763_s25 = smov 32  }
  0x29   :  { %v62_v56 = vld [vmem:[%s6470_s1 + $0x10] sm:$0xff]  ;;  %4141 = vmatprep.subr.bf16.mxu1 %v4140_v48  ;;  %v71_v59 = vld [vmem:[%s6478_s9 + $0x8] sm:$0xff]  ;;  %v73_v60 = vld [vmem:[%s6478_s9 + $0x18] sm:$0xff]  ;;  %v4146_v61 = vpack.c.bf16 %v307_v58, %v306_v55  ;;  %v4760_v26 = vmov 0   ;;  %vm528_vm4 = vcmask 1041409   ;;  %vm677_vm13 = vcmask 261120  }
  0x2a   :  { %212 = vmatmul.mubr.f32.gmra.mrb[2].mxu0 %v57_v52  ;;  %v5125_v62 = vpack.c.bf16 %v73_v60, %v71_v59  ;;  %v70_v63 = vld [vmem:[%s6478_s9] sm:$0xff]  ;;  %v72_v0 = vld [vmem:[%s6478_s9 + $0x10] sm:$0xff]  ;;  %v75_v1 = vld [vmem:[%s6478_s9 + $0x28] sm:$0xff]  ;;  %4612 = vset.pattern.permute.xlu0 %v4760_v26  ;;  %vm536_vm14 = vcmask 523264   ;;  %vm679_vm15 = vcmask 1042434   ;;  %s4767_s19 = smov [#allocation2]  }
  0x2b   :  { %4155 = vmatpush3.bf16.msra.mxu0 %v4152_v44  ;;  %3901 = vmatprep.mubr.msk.f32.mxu0 %vm131_vm3, %v62_v56  ;;  %v77_v2 = vld [vmem:[%s6478_s9 + $0x38] sm:$0xff]  ;;  %v65_v3 = vld [vmem:[%s6470_s1 + $0x28] sm:$0xff]  ;;  %v5144_v4 = vpack.c.bf16 %v72_v0, %v70_v63  ;;  %v60_v5 = vld [vmem:[%s6470_s1] sm:$0xff]  ;;  %v496_v0 = vlaneseq }
  0x2c   :  { %4143 = vmatpush3.bf16.msra.mxu1 %v4142_v53  ;;  %4158 = vmatprep.subr.msk.bf16.mxu0 %vm4902_vm2, %v4156_v54  ;;  %v5150_v6 = vpack.c.bf16 %v77_v2, %v75_v1  ;;  %v74_v7 = vld [vmem:[%s6478_s9 + $0x20] sm:$0xff]  ;;  %v76_v8 = vld [vmem:[%s6478_s9 + $0x30] sm:$0xff]  ;;  %v79_v10 = vld [vmem:[%s6478_s9 + $0x48] sm:$0xff] }
  0x2d   :  { %4145 = vmatprep.subr.bf16.mxu1 %v4144_v57  ;;  %v64_v9 = vld [vmem:[%s6470_s1 + $0x20] sm:$0xff]  ;;  %v81_v11 = vld [vmem:[%s6478_s9 + $0x58] sm:$0xff]  ;;  %v5170_v12 = vpack.c.bf16 %v76_v8, %v74_v7  ;;  %v80_v16 = vld [vmem:[%s6478_s9 + $0x50] sm:$0xff]  ;;  %4613 = vset.pattern.permute.xlu1 %v4760_v26  ;;  %v497_v1 = vand.u32 127, %v496_v0 }
  0x2e   :  { %v63_v13 = vld [vmem:[%s6470_s1 + $0x18] sm:$0xff]  ;;  %v5176_v14 = vpack.c.bf16 %v81_v11, %v79_v10  ;;  %v78_v15 = vld [vmem:[%s6478_s9 + $0x40] sm:$0xff]  ;;  %v83_v17 = vld [vmem:[%s6478_s9 + $0x68] sm:$0xff] }
  0x2f   :  { %4161 = vmatpush3.bf16.msk.msra.mxu0 %vm4902_vm2, %v4156_v54  ;;  %v85_v18 = vld [vmem:[%s6478_s9 + $0x78] sm:$0xff]  ;;  %v5194_v20 = vpack.c.bf16 %v80_v16, %v78_v15  ;;  %v82_v22 = vld [vmem:[%s6478_s9 + $0x60] sm:$0xff]  ;;  %v84_v24 = vld [vmem:[%s6478_s9 + $0x70] sm:$0xff]  ;;  %v498_v8 = vadd.s32 128, %v497_v1  ;;  %vm499_vm5 = vcmp.ge.s32.totalorder %v497_v1, 64  ;;  %vm501_vm6 = vcmp.lt.s32.totalorder %v497_v1, 96 }
  0x30   :  { %4147 = vmatpush3.bf16.msra.mxu1 %v4146_v61  ;;  %4163 = vmatprep.subr.bf16.mxu0 %v5125_v62  ;;  %v5197_v21 = vpack.c.bf16 %v85_v18, %v83_v17  ;;  %v5209_v25 = vpack.c.bf16 %v84_v24, %v82_v22  ;;  %v3423_v30 = vld [vmem:[%s6476_s7] ss:$0 sm:$0xff]  ;;  %vm503_vm9 = vmand %vm499_vm5, %vm501_vm6  ;;  %s4762_s7 = smov 64   ;;  %vm862_vm5 = vcmask 1043459  }
  0x31   :  { %4179 = vmatprep.subr.bf16.mxu1 %v5125_v62  ;;  %v3427_v44 = vld [vmem:[%s6477_s8] ss:$0 sm:$0xff]  ;;  %vm506_vm7 = vcmp.ge.s32.totalorder %v498_v8, 192  ;;  %vm508_vm8 = vcmp.lt.s32.totalorder %v498_v8, 224 }
  0x32   :  { %3902 = vmatmul.mubr.msk.f32.vlgmr.msra.gmra.mrb[4].mxu0 %vm131_vm3, %v65_v3  ;;  %vm510_vm10 = vmand %vm506_vm7, %vm508_vm8  ;;  %vm1040_vm8 = vcmask 1044484  }
  0x33   :  { %411 = vmatmul.mubr.f32.vlgmr.msra.gmra.mrb[2].mxu1 %v60_v5  ;;  %4165 = vmatpush1.bf16.msra.mxu0 %v5144_v4  ;;  %v5259_v24 = vsel %vm510_vm10, -1.0, %v6487_v19 }
  0x34   :  { %415 = vmatprep.mubr.f32.mxu1 %v64_v9  ;;  %4167 = vmatprep.subr.bf16.mxu0 %v5150_v6  ;;  %v4761_v9 = vmov 1.0   ;;  %6534 = vst [vmem:[#allocation12_spill] sm:$0xff] %v5259_v24 }
  0x35   :  { %604 = vmatprep.mubr.f32.mxu0 %v6487_v19  ;;  %4181 = vmatpush1.bf16.msra.mxu1 %v5144_v4  ;;  %v5248_v10 = vsel %vm503_vm9, 2.0, %v4761_v9  ;;  %v5253_v15 = vsel %vm510_vm10, 2.0, %v4761_v9 }
  0x36   :  { %4183 = vmatprep.subr.bf16.mxu1 %v5150_v6  ;;  %6531 = vst [vmem:[#allocation9_spill] sm:$0xff] %v5248_v10  ;;  %6533 = vst [vmem:[#allocation11_spill] sm:$0xff] %v5253_v15 }
  0x37   :  { %416 = vmatmul.mubr.f32.gmra.mrb[4].mxu1 %v63_v13  ;;  %4169 = vmatpush1.bf16.msra.mxu0 %v5170_v12  ;;  %v5251_v13 = vsel %vm503_vm9, -1.0, %v6487_v19 }
  0x38   :  { %4171 = vmatprep.subr.bf16.mxu0 %v5176_v14  ;;  %751 = vmatprep.mubr.f32.mxu1 %v6487_v19  ;;  %6532 = vst [vmem:[#allocation10_spill] sm:$0xff] %v5251_v13 }
  0x39   :  { %4185 = vmatpush1.bf16.msra.mxu1 %v5170_v12 }
  0x3a   :  { %4187 = vmatprep.subr.bf16.mxu1 %v5176_v14 }
  0x3b   :  { %4173 = vmatpush1.bf16.msra.mxu0 %v5194_v20 }
  0x3c   :  { %4175 = vmatprep.subr.bf16.mxu0 %v5197_v21 }
  0x3d   :  { %4189 = vmatpush1.bf16.msra.mxu1 %v5194_v20 }
  0x3e   :  { %4191 = vmatprep.subr.bf16.mxu1 %v5197_v21 }
  0x3f   :  { %4177 = vmatpush1.bf16.msra.mxu0 %v5209_v25 }
  0x40   :  { %4195 = vmatprep.subr.bf16.mxu0 %v5125_v62 }
  0x41   :  { %4193 = vmatpush1.bf16.msra.mxu1 %v5209_v25 }
  0x42   :  { %605 = vmatmul.mubr.f32.vlgmr.msra.gmra.mrb[6].mxu0 %v6487_v19  ;;  %4211 = vmatprep.subr.bf16.mxu1 %v5125_v62 }
  0x43   :  { %4197 = vmatpush1.bf16.msra.mxu0 %v5144_v4  ;;  %934 = vmatprep.mubr.f32.mxu0 %v6487_v19 }
  0x44   :  { %4199 = vmatprep.subr.bf16.mxu0 %v5150_v6 }
  0x47   :  { %4201 = vmatpush1.bf16.msra.mxu0 %v5170_v12 }
  0x48   :  { %4203 = vmatprep.subr.bf16.mxu0 %v5176_v14 }
  0x4b   :  { %4205 = vmatpush1.bf16.msra.mxu0 %v5194_v20 }
  0x4c   :  { %4207 = vmatprep.subr.bf16.mxu0 %v5197_v21 }
  0x4f   :  { %4209 = vmatpush1.bf16.msra.mxu0 %v5209_v25 }
  0x50   :  { %4227 = vmatprep.subr.bf16.mxu0 %v5125_v62 }
  0xe5   :  { %v3888_v27 = vpop.f32.mrb[0].mxu1 }
  0xe6   :  { %v283_v28 = vpop.f32.mrb[1].mxu1 }
  0xf9   :  { %v3514_v29 = vpop.f32.mrb[0].mxu0 }
  0xfa   :  { %v3515_v31 = vpop.f32.mrb[1].mxu0 }
  0xfb   :  { %v3516_v32 = vadd.f32 %v3515_v31, %v3514_v29 }
  0xfd   :  { %v209_v33 = vadd.f32 %v3516_v32, %v3423_v30  ;;  %v3517_v34 = vpop.f32.mrb[2].mxu0  ;;  %v521_v32 = vld [vmem:[%s6473_s4] sm:$0x3] }
  0xfe   :  { %v3518_v35 = vpop.f32.mrb[3].mxu0 }
  0xff   :  { %v5231_v36 = vadd.f32 %v283_v28, %v209_v33  ;;  %v3519_v37 = vadd.f32 %v3518_v35, %v3517_v34 }
 0x101   :  { %6527 = vst [vmem:[#allocation5_spill] sm:$0xff] %v5231_v36  ;;  %v214_v38 = vadd.f32 %v3519_v37, %v3423_v30 }
 0x103   :  { %v289_v39 = vadd.f32 %v3888_v27, %v214_v38  ;;  %v517_v27 = vld [vmem:[%s6472_s3] sm:$0x3]  ;;  %s4764_s3 = smov 96  }
 0x105   :  { %v3903_v40 = vpop.f32.mrb[4].mxu0  ;;  %v5238_v53 = vrot.slane %v289_v39, 7 }
 0x106   :  { %v3560_v41 = vpop.f32.mrb[2].mxu1  ;;  %v487_v42 = vpop.f32.mrb[5].mxu0 }
 0x107   :  { %v3561_v43 = vpop.f32.mrb[3].mxu1  ;;  %6529 = vst [vmem:[#allocation7_spill] sm:$0xff] %v5238_v53  ;;  %v529_v55 = vsel %vm528_vm4, %v5238_v53, %v5231_v36 }
 0x108   :  { %v3562_v45 = vadd.f32 %v3561_v43, %v3560_v41 }
 0x10a   :  { %v413_v46 = vadd.f32 %v3562_v45, %v3427_v44  ;;  %v3563_v47 = vpop.f32.mrb[4].mxu1 }
 0x10b   :  { %v3564_v48 = vpop.f32.mrb[5].mxu1 }
 0x10c   :  { %v5236_v49 = vadd.f32 %v487_v42, %v413_v46  ;;  %v3565_v50 = vadd.f32 %v3564_v48, %v3563_v47 }
 0x10e   :  { %6528 = vst [vmem:[#allocation6_spill] sm:$0xff] %v5236_v49  ;;  %v418_v51 = vadd.f32 %v3565_v50, %v3427_v44 }
 0x110   :  { %v493_v52 = vadd.f32 %v3903_v40, %v418_v51 }
 0x112   :  { %v5240_v54 = vrot.slane %v493_v52, 7 }
 0x114   :  { %6530 = vst [vmem:[#allocation8_spill] sm:$0xff] %v5240_v54  ;;  %v534_v58 = vsel %vm528_vm4, %v5240_v54, %v5236_v49 }
 0x115   :  { %v606_v56 = vpop.f32.mrb[6].mxu0 }
 0x116   :  { %v611_v57 = vadd.f32 %v606_v56, %v529_v55  ;;  %v608_v59 = vpop.f32.mrb[7].mxu0 }
 0x117   :  { %v612_v60 = vadd.f32 %v608_v59, %v534_v58  ;;  %v680_v59 = vsel %vm679_vm15, %v5238_v53, %v5231_v36 }
 0x118   :  { %v3431_v61 = vmul.f32 -1.442695, %v611_v57 }
 0x119   :  { %v3432_v63 = vmul.f32 -1.442695, %v612_v60 }
 0x11a   :  { %4618 = vpow2.f32 %v3431_v61 }
 0x11b   :  { %4620 = vpow2.f32 %v3432_v63  ;;  %v682_v63 = vsel %vm679_vm15, %v5240_v54, %v5236_v49 }
 0x124   :  { %v4619_v2 = vpop.eup %4618 }
 0x125   :  { %v4621_v3 = vpop.eup %4620  ;;  %v619_v5 = vadd.f32 1.0, %v4619_v2 }
 0x126   :  { %v620_v7 = vadd.f32 1.0, %v4621_v3 }
 0x127   :  { %4622 = vrcp.f32 %v619_v5 }
 0x128   :  { %4624 = vrcp.f32 %v620_v7 }
 0x131   :  { %v4623_v11 = vpop.eup %4622 }
 0x132   :  { %v4625_v16 = vpop.eup %4624  ;;  %v625_v17 = vmul.f32 %v4623_v11, %v5248_v10 }
 0x133   :  { %v626_v22 = vmul.f32 %v4625_v16, %v5253_v15 }
 0x134   :  { %v627_v18 = vadd.f32 %v625_v17, %v5251_v13 }
 0x135   :  { %v628_v26 = vadd.f32 %v626_v22, %v5259_v24 }
 0x136   :  { %631 = vrot.lane.b32.xlu0 %v627_v18, %s4762_s7  ;;  %v629_v33 = vmul.f32 0.0, %v627_v18 }
 0x137   :  { %v640_v37 = vmul.f32 0.0, %v628_v26 }
 0x13a   :  { %642 = vrot.lane.b32.xlu0 %v628_v26, %s4762_s7 }
 0x13e   :  { %519 = vperm.xlu0 %4612, %v517_v27  }
 0x1a8   :  { %v632_v28 = vpop.permute.xlu0 %631 }
 0x1a9   :  { %v634_v29 = vmul.f32 %v632_v28, %v627_v18 }
 0x1ab   :  { %636 = vrot.lane.b32.xlu1 %v634_v29, %s4763_s25 }
 0x1ac   :  { %v643_v30 = vpop.permute.xlu0 %642 }
 0x1ad   :  { %v645_v31 = vmul.f32 %v643_v30, %v628_v26 }
 0x1af   :  { %647 = vrot.lane.b32.xlu1 %v645_v31, %s4763_s25 }
 0x1b3   :  { %523 = vperm.xlu1 %4613, %v521_v32  }
 0x1bd   :  { %v5282_v43 = vpop.permute.xlu0 %519 }
 0x1be   :  { %6536 = vst [vmem:[#allocation14_spill] sm:$0xff] %v5282_v43  ;;  %vm663_vm11 = vcmp.gt.s32.totalorder %v5282_v43, 0  ;;  %vm822_vm1 = vcmp.gt.s32.totalorder %v5282_v43, 1  ;;  %vm1009_vm7 = vcmp.gt.s32.totalorder %v5282_v43, 2  ;;  %vm1187_vm10 = vcmp.gt.s32.totalorder %v5282_v43, 3 }
 0x1bf   :  { %vm1365_vm15 = vcmp.gt.s32.totalorder %v5282_v43, 4 }
 0x21d   :  { %v637_v34 = vpop.permute.xlu1 %636 }
 0x21e   :  { %v5272_v35 = vadd.f32 %v637_v34, %v629_v33 }
 0x220   :  { %4626 = vtanh.f32 %v5272_v35  ;;  %v5324_v30 = vsel %vm663_vm11, %v5272_v35, 0.0 }
 0x221   :  { %v648_v38 = vpop.permute.xlu1 %647  ;;  %v783_v32 = vrot.slane %v5324_v30, 7 }
 0x222   :  { %v5275_v39 = vadd.f32 %v648_v38, %v640_v37 }
 0x224   :  { %4628 = vtanh.f32 %v5275_v39 }
 0x22a   :  { %v4627_v40 = vpop.eup %4626 }
 0x22b   :  { %653 = vrot.lane.b32.xlu1 %v4627_v40, %s4762_s7 }
 0x22e   :  { %v4629_v41 = vpop.eup %4628 }
 0x22f   :  { %659 = vrot.lane.b32.xlu0 %v4629_v41, %s4762_s7 }
 0x232   :  { %v5280_v42 = vpop.permute.xlu1 %523 }
 0x233   :  { %6535 = vst [vmem:[#allocation13_spill] sm:$0xff] %v5280_v42  ;;  %vm664_vm12 = vcmp.gt.s32.totalorder %v5280_v42, 0  ;;  %vm823_vm0 = vcmp.gt.s32.totalorder %v5280_v42, 1  ;;  %vm1010_vm6 = vcmp.gt.s32.totalorder %v5280_v42, 2  ;;  %vm1188_vm9 = vcmp.gt.s32.totalorder %v5280_v42, 3 }
 0x234   :  { %v667_v31 = vsel %vm664_vm12, %v5275_v39, 0.0 }
 0x235   :  { %v797_v33 = vrot.slane %v667_v31, 7 }
 0x29d   :  { %v654_v44 = vpop.permute.xlu1 %653 }
 0x29e   :  { %v656_v45 = vmul.f32 %v654_v44, %v627_v18 }
 0x2a0   :  { %v666_v46 = vsel %vm663_vm11, %v656_v45, 0.0  ;;  %vm1218_vm11 = vcmask 1045509  }
 0x2a1   :  { %v660_v47 = vpop.permute.xlu0 %659  ;;  %670 = vrot.lane.b32.xlu1 %v666_v46, %s4763_s25 }
 0x2a2   :  { %v662_v48 = vmul.f32 %v660_v47, %v628_v26 }
 0x2a4   :  { %v5291_v50 = vsel %vm664_vm12, %v662_v48, 0.0  ;;  %vm1366_vm12 = vcmp.gt.s32.totalorder %v5280_v42, 4 }
 0x2a5   :  { %674 = vrot.lane.b32.xlu0 %v5291_v50, %s4762_s7 }
 0x313   :  { %v5295_v51 = vpop.permute.xlu1 %670 }
 0x317   :  { %v675_v52 = vpop.permute.xlu0 %674 }
 0x318   :  { %v678_v55 = vsel %vm677_vm13, %v5295_v51, %v675_v52 }
 0x319   :  { %3433 = vmatmul.mubr.msk.f32.vlgmr.msra.gmra.mrb[6].mxu1 %vm536_vm14, %v678_v55 }
 0x31a   :  { %4213 = vmatpush1.bf16.msra.mxu1 %v5144_v4  ;;  %1112 = vmatprep.mubr.f32.mxu1 %v6487_v19 }
 0x31b   :  { %4215 = vmatprep.subr.bf16.mxu1 %v5150_v6 }
 0x31e   :  { %4217 = vmatpush1.bf16.msra.mxu1 %v5170_v12 }
 0x31f   :  { %4219 = vmatprep.subr.bf16.mxu1 %v5176_v14 }
 0x322   :  { %4221 = vmatpush1.bf16.msra.mxu1 %v5194_v20 }
 0x323   :  { %4223 = vmatprep.subr.bf16.mxu1 %v5197_v21 }
 0x326   :  { %4225 = vmatpush1.bf16.msra.mxu1 %v5209_v25 }
 0x327   :  { %4243 = vmatprep.subr.bf16.mxu1 %v5125_v62 }
 0x3ec   :  { %v753_v56 = vpop.f32.mrb[6].mxu1 }
 0x3ed   :  { %v760_v57 = vrot.slane %v753_v56, 7  ;;  %v755_v58 = vpop.f32.mrb[7].mxu1 }
 0x3ee   :  { %v761_v60 = vrot.slane %v755_v58, 7 }
 0x3ef   :  { %v764_v61 = vadd.f32 %v760_v57, %v680_v59 }
 0x3f0   :  { %v765_v0 = vadd.f32 %v761_v60, %v682_v63 }
 0x3f1   :  { %v3434_v1 = vmul.f32 -1.442695, %v764_v61 }
 0x3f2   :  { %v3435_v2 = vmul.f32 -1.442695, %v765_v0 }
 0x3f3   :  { %4630 = vpow2.f32 %v3434_v1 }
 0x3f4   :  { %4632 = vpow2.f32 %v3435_v2 }
 0x3fd   :  { %v4631_v3 = vpop.eup %4630 }
 0x3fe   :  { %v4633_v5 = vpop.eup %4632  ;;  %v772_v7 = vadd.f32 1.0, %v4631_v3  ;;  %v863_v3 = vsel %vm862_vm5, %v5238_v53, %v5231_v36 }
 0x3ff   :  { %v773_v8 = vadd.f32 1.0, %v4633_v5 }
 0x400   :  { %4634 = vrcp.f32 %v772_v7 }
 0x401   :  { %4636 = vrcp.f32 %v773_v8  ;;  %v865_v8 = vsel %vm862_vm5, %v5240_v54, %v5236_v49  ;;  %vm1543_vm5 = vcmp.gt.s32.totalorder %v5282_v43, 5 }
 0x40a   :  { %v4635_v9 = vpop.eup %4634 }
 0x40b   :  { %v4637_v11 = vpop.eup %4636  ;;  %v778_v16 = vmul.f32 %v4635_v9, %v5248_v10 }
 0x40c   :  { %v779_v17 = vmul.f32 %v4637_v11, %v5253_v15 }
 0x40d   :  { %v780_v18 = vadd.f32 %v778_v16, %v5251_v13 }
 0x40e   :  { %v781_v22 = vadd.f32 %v779_v17, %v5259_v24 }
 0x40f   :  { %787 = vrot.lane.b32.xlu0 %v780_v18, %s4762_s7  ;;  %v785_v34 = vmul.f32 %v783_v32, %v780_v18 }
 0x410   :  { %801 = vrot.lane.b32.xlu1 %v781_v22, %s4762_s7  ;;  %v799_v38 = vmul.f32 %v797_v33, %v781_v22 }
 0x481   :  { %v788_v26 = vpop.permute.xlu0 %787 }
 0x482   :  { %v790_v27 = vmul.f32 %v788_v26, %v780_v18  ;;  %v802_v28 = vpop.permute.xlu1 %801 }
 0x483   :  { %v804_v29 = vmul.f32 %v802_v28, %v781_v22 }
 0x484   :  { %792 = vrot.lane.b32.xlu0 %v790_v27, %s4763_s25 }
 0x485   :  { %806 = vrot.lane.b32.xlu1 %v804_v29, %s4763_s25 }
 0x4f6   :  { %v793_v37 = vpop.permute.xlu0 %792 }
 0x4f7   :  { %v795_v40 = vadd.f32 %v793_v37, %v785_v34  ;;  %v807_v41 = vpop.permute.xlu1 %806 }
 0x4f8   :  { %v809_v44 = vadd.f32 %v807_v41, %v799_v38 }
 0x4f9   :  { %4638 = vtanh.f32 %v795_v40  ;;  %v825_v59 = vrot.slane %v795_v40, 1 }
 0x4fa   :  { %4640 = vtanh.f32 %v809_v44  ;;  %v840_v56 = vrot.slane %v809_v44, 1 }
 0x503   :  { %v4639_v45 = vpop.eup %4638 }
 0x504   :  { %v4641_v46 = vpop.eup %4640  ;;  %812 = vrot.lane.b32.xlu0 %v4639_v45, %s4762_s7 }
 0x505   :  { %818 = vrot.lane.b32.xlu1 %v4641_v46, %s4762_s7 }
 0x508   :  { %853 = vrot.lane.b32.xlu0 %v5291_v50, %s4763_s25 }
 0x576   :  { %v813_v35 = vpop.permute.xlu0 %812 }
 0x577   :  { %v819_v39 = vpop.permute.xlu1 %818  ;;  %v815_v48 = vmul.f32 %v813_v35, %v780_v18 }
 0x578   :  { %v821_v47 = vmul.f32 %v819_v39, %v781_v22 }
 0x579   :  { %v834_v55 = vrot.slane %v815_v48, 1 }
 0x57a   :  { %v849_v52 = vrot.slane %v821_v47, 1  ;;  %v854_v57 = vpop.permute.xlu0 %853 }
 0x57c   :  { %850 = vrot.lane.b32.xlu1 %v849_v52, %s4763_s25 }
 0x580   :  { %835 = vrot.lane.b32.xlu1 %v834_v55, %s4763_s25 }
 0x584   :  { %841 = vrot.lane.b32.xlu1 %v840_v56, %s4764_s3 }
 0x5ee   :  { %v851_v58 = vpop.permute.xlu1 %850 }
 0x5ef   :  { %v5340_v50 = vsel %vm823_vm0, %v851_v58, %v854_v57 }
 0x5f0   :  { %858 = vrot.lane.b32.xlu0 %v5340_v50, %s4763_s25 }
 0x5f2   :  { %v836_v60 = vpop.permute.xlu1 %835 }
 0x5f3   :  { %v5350_v61 = vsel %vm822_vm1, %v836_v60, %v5295_v51 }
 0x5f4   :  { %844 = vrot.lane.b32.xlu0 %v667_v31, %s4764_s3 }
 0x5f6   :  { %v842_v37 = vpop.permute.xlu1 %841 }
 0x5f8   :  { %826 = vrot.lane.b32.xlu0 %v825_v59, %s4764_s3 }
 0x662   :  { %v859_v63 = vpop.permute.xlu0 %858 }
 0x663   :  { %v861_v0 = vsel %vm677_vm13, %v5350_v61, %v859_v63 }
 0x664   :  { %3436 = vmatmul.mubr.msk.f32.vlgmr.msra.gmra.mrb[8].mxu0 %vm536_vm14, %v861_v0 }
 0x665   :  { %4229 = vmatpush1.bf16.msra.mxu0 %v5144_v4  ;;  %1290 = vmatprep.mubr.f32.mxu0 %v6487_v19 }
 0x666   :  { %4231 = vmatprep.subr.bf16.mxu0 %v5150_v6  ;;  %v845_v34 = vpop.permute.xlu0 %844 }
 0x667   :  { %v847_v38 = vsel %vm823_vm0, %v842_v37, %v845_v34  ;;  %v1041_v37 = vsel %vm1040_vm8, %v5238_v53, %v5231_v36  ;;  %vm1396_vm0 = vcmask 1046534  }
 0x668   :  { %v982_v40 = vrot.slane %v847_v38, 6 }
 0x669   :  { %4233 = vmatpush1.bf16.msra.mxu0 %v5170_v12 }
 0x66a   :  { %4235 = vmatprep.subr.bf16.mxu0 %v5176_v14  ;;  %v827_v41 = vpop.permute.xlu0 %826 }
 0x66d   :  { %4237 = vmatpush1.bf16.msra.mxu0 %v5194_v20 }
 0x66e   :  { %4239 = vmatprep.subr.bf16.mxu0 %v5197_v21 }
 0x671   :  { %4241 = vmatpush1.bf16.msra.mxu0 %v5209_v25 }
 0x672   :  { %4259 = vmatprep.subr.bf16.mxu0 %v5125_v62 }
 0x737   :  { %v936_v51 = vpop.f32.mrb[8].mxu0 }
 0x738   :  { %v943_v1 = vrot.slane %v936_v51, 6  ;;  %v938_v2 = vpop.f32.mrb[9].mxu0 }
 0x739   :  { %v944_v5 = vrot.slane %v938_v2, 6 }
 0x73a   :  { %v947_v7 = vadd.f32 %v943_v1, %v863_v3 }
 0x73b   :  { %v948_v9 = vadd.f32 %v944_v5, %v865_v8 }
 0x73c   :  { %v3437_v11 = vmul.f32 -1.442695, %v947_v7 }
 0x73d   :  { %v3438_v16 = vmul.f32 -1.442695, %v948_v9 }
 0x73e   :  { %4642 = vpow2.f32 %v3437_v11 }
 0x73f   :  { %4644 = vpow2.f32 %v3438_v16 }
 0x748   :  { %v4643_v17 = vpop.eup %4642 }
 0x749   :  { %v4645_v18 = vpop.eup %4644  ;;  %v955_v22 = vadd.f32 1.0, %v4643_v17 }
 0x74a   :  { %v956_v26 = vadd.f32 1.0, %v4645_v18 }
 0x74b   :  { %4646 = vrcp.f32 %v955_v22 }
 0x74c   :  { %4648 = vrcp.f32 %v956_v26 }
 0x755   :  { %v4647_v27 = vpop.eup %4646 }
 0x756   :  { %v4649_v28 = vpop.eup %4648  ;;  %v961_v29 = vmul.f32 %v4647_v27, %v5248_v10 }
 0x757   :  { %v962_v31 = vmul.f32 %v4649_v28, %v5253_v15 }
 0x758   :  { %v963_v32 = vadd.f32 %v961_v29, %v5251_v13 }
 0x759   :  { %v964_v33 = vadd.f32 %v962_v31, %v5259_v24 }
 0x75a   :  { %972 = vrot.lane.b32.xlu0 %v963_v32, %s4762_s7 }
 0x75b   :  { %988 = vrot.lane.b32.xlu1 %v964_v33, %s4762_s7 }
 0x75f   :  { %829 = vrot.lane.b32.xlu1 %v5324_v30, %s4764_s3 }
 0x763   :  { %983 = vrot.lane.b32.xlu1 %v982_v40, %s4763_s25 }
 0x7cc   :  { %v973_v46 = vpop.permute.xlu0 %972 }
 0x7cd   :  { %v989_v44 = vpop.permute.xlu1 %988  ;;  %v975_v39 = vmul.f32 %v973_v46, %v963_v32 }
 0x7ce   :  { %v991_v45 = vmul.f32 %v989_v44, %v964_v33 }
 0x7d0   :  { %993 = vrot.lane.b32.xlu0 %v991_v45, %s4763_s25 }
 0x7d1   :  { %v830_v35 = vpop.permute.xlu1 %829 }
 0x7d2   :  { %v832_v47 = vsel %vm822_vm1, %v827_v41, %v830_v35  ;;  %v1043_v41 = vsel %vm1040_vm8, %v5240_v54, %v5236_v49  ;;  %vm1544_vm1 = vcmp.gt.s32.totalorder %v5280_v42, 5  ;;  %vm4766_vm8 = vmmov 0  }
 0x7d3   :  { %v966_v48 = vrot.slane %v832_v47, 6 }
 0x7d4   :  { %977 = vrot.lane.b32.xlu0 %v975_v39, %s4763_s25 }
 0x7d5   :  { %967 = vrot.lane.b32.xlu1 %v966_v48, %s4763_s25  ;;  %v984_v30 = vpop.permute.xlu1 %983 }
 0x7d6   :  { %v986_v52 = vmul.f32 %v984_v30, %v964_v33 }
 0x842   :  { %v994_v55 = vpop.permute.xlu0 %993 }
 0x843   :  { %v996_v56 = vadd.f32 %v994_v55, %v986_v52 }
 0x845   :  { %4650 = vtanh.f32 %v996_v56  ;;  %v1024_v8 = vrot.slane %v996_v56, 2 }
 0x846   :  { %v978_v59 = vpop.permute.xlu0 %977 }
 0x847   :  { %v968_v57 = vpop.permute.xlu1 %967 }
 0x848   :  { %v970_v58 = vmul.f32 %v968_v57, %v963_v32 }
 0x84a   :  { %v980_v60 = vadd.f32 %v978_v59, %v970_v58 }
 0x84c   :  { %4652 = vtanh.f32 %v980_v60  ;;  %v1012_v9 = vrot.slane %v980_v60, 2 }
 0x84f   :  { %v4651_v63 = vpop.eup %4650 }
 0x850   :  { %1005 = vrot.lane.b32.xlu1 %v4651_v63, %s4762_s7 }
 0x856   :  { %v4653_v0 = vpop.eup %4652 }
 0x857   :  { %999 = vrot.lane.b32.xlu0 %v4653_v0, %s4762_s7 }
 0x8c2   :  { %v1006_v51 = vpop.permute.xlu1 %1005 }
 0x8c3   :  { %v1008_v1 = vmul.f32 %v1006_v51, %v964_v33 }
 0x8c5   :  { %v1030_v2 = vrot.slane %v1008_v1, 2 }
 0x8c7   :  { %1031 = vrot.lane.b32.xlu1 %v1030_v2, %s4763_s25 }
 0x8c9   :  { %v1000_v3 = vpop.permute.xlu0 %999 }
 0x8ca   :  { %v1002_v5 = vmul.f32 %v1000_v3, %v963_v32 }
 0x8cc   :  { %v1018_v7 = vrot.slane %v1002_v5, 2 }
 0x8ce   :  { %1019 = vrot.lane.b32.xlu0 %v1018_v7, %s4763_s25 }
 0x8d2   :  { %1025 = vrot.lane.b32.xlu0 %v1024_v8, %s4764_s3 }
 0x8d6   :  { %1013 = vrot.lane.b32.xlu0 %v1012_v9, %s4764_s3 }
 0x939   :  { %v1032_v11 = vpop.permute.xlu1 %1031 }
 0x93a   :  { %v5392_v16 = vsel %vm1010_vm6, %v1032_v11, %v5340_v50 }
 0x93b   :  { %1036 = vrot.lane.b32.xlu1 %v5392_v16, %s4763_s25 }
 0x940   :  { %v1020_v17 = vpop.permute.xlu0 %1019 }
 0x941   :  { %v5398_v18 = vsel %vm1009_vm7, %v1020_v17, %v5350_v61 }
 0x944   :  { %v1026_v22 = vpop.permute.xlu0 %1025 }
 0x945   :  { %v5400_v26 = vsel %vm1010_vm6, %v1026_v22, %v847_v38  ;;  %vm1574_vm6 = vcmask 1047559  }
 0x946   :  { %v1160_v27 = vrot.slane %v5400_v26, 5 }
 0x948   :  { %1161 = vrot.lane.b32.xlu0 %v1160_v27, %s4763_s25  ;;  %v1014_v28 = vpop.permute.xlu0 %1013 }
 0x949   :  { %v5404_v29 = vsel %vm1009_vm7, %v1014_v28, %v832_v47  ;;  %vm1722_vm7 = vcmp.gt.s32.totalorder %v5280_v42, 6  ;;  %v2014_v42 = vld [vmem:[%s6479_s10 + $0x130] sm:$0xff] }
 0x94a   :  { %v1144_v50 = vrot.slane %v5404_v29, 5 }
 0x94c   :  { %1145 = vrot.lane.b32.xlu0 %v1144_v50, %s4763_s25 }
 0x9ad   :  { %v1037_v31 = vpop.permute.xlu1 %1036 }
 0x9ae   :  { %v1039_v32 = vsel %vm677_vm13, %v5398_v18, %v1037_v31 }
 0x9af   :  { %3439 = vmatmul.mubr.msk.f32.vlgmr.msra.gmra.mrb[8].mxu1 %vm536_vm14, %v1039_v32 }
 0x9b0   :  { %4245 = vmatpush1.bf16.msra.mxu1 %v5144_v4  ;;  %1468 = vmatprep.mubr.f32.mxu1 %v6487_v19 }
 0x9b1   :  { %4247 = vmatprep.subr.bf16.mxu1 %v5150_v6 }
 0x9b4   :  { %4249 = vmatpush1.bf16.msra.mxu1 %v5170_v12 }
 0x9b5   :  { %4251 = vmatprep.subr.bf16.mxu1 %v5176_v14 }
 0x9b8   :  { %4253 = vmatpush1.bf16.msra.mxu1 %v5194_v20 }
 0x9b9   :  { %4255 = vmatprep.subr.bf16.mxu1 %v5197_v21 }
 0x9ba   :  { %v1162_v0 = vpop.permute.xlu0 %1161 }
 0x9bc   :  { %4257 = vmatpush1.bf16.msra.mxu1 %v5209_v25 }
 0x9bd   :  { %4275 = vmatprep.subr.bf16.mxu1 %v5125_v62 }
 0x9be   :  { %v1146_v3 = vpop.permute.xlu0 %1145 }
 0xa82   :  { %v1114_v61 = vpop.f32.mrb[8].mxu1 }
 0xa83   :  { %v1121_v33 = vrot.slane %v1114_v61, 5  ;;  %v1116_v34 = vpop.f32.mrb[9].mxu1 }
 0xa84   :  { %v1122_v38 = vrot.slane %v1116_v34, 5 }
 0xa85   :  { %v1125_v40 = vadd.f32 %v1121_v33, %v1041_v37 }
 0xa86   :  { %v1126_v44 = vadd.f32 %v1122_v38, %v1043_v41 }
 0xa87   :  { %v3440_v45 = vmul.f32 -1.442695, %v1125_v40 }
 0xa88   :  { %v3441_v46 = vmul.f32 -1.442695, %v1126_v44 }
 0xa89   :  { %4654 = vpow2.f32 %v3440_v45 }
 0xa8a   :  { %4656 = vpow2.f32 %v3441_v46 }
 0xa93   :  { %v4655_v35 = vpop.eup %4654 }
 0xa94   :  { %v4657_v39 = vpop.eup %4656  ;;  %v1133_v62 = vadd.f32 1.0, %v4655_v35 }
 0xa95   :  { %v1134_v47 = vadd.f32 1.0, %v4657_v39 }
 0xa96   :  { %4658 = vrcp.f32 %v1133_v62  ;;  %v1219_v62 = vsel %vm1218_vm11, %v5238_v53, %v5231_v36 }
 0xa97   :  { %4660 = vrcp.f32 %v1134_v47 }
 0xaa0   :  { %v4659_v48 = vpop.eup %4658 }
 0xaa1   :  { %v4661_v30 = vpop.eup %4660  ;;  %v1139_v56 = vmul.f32 %v4659_v48, %v5248_v10 }
 0xaa2   :  { %v1140_v52 = vmul.f32 %v4661_v30, %v5253_v15  ;;  %v1221_v30 = vsel %vm1218_vm11, %v5240_v54, %v5236_v49 }
 0xaa3   :  { %v1141_v57 = vadd.f32 %v1139_v56, %v5251_v13 }
 0xaa4   :  { %v1142_v55 = vadd.f32 %v1140_v52, %v5259_v24 }
 0xaa5   :  { %v1148_v5 = vmul.f32 %v1146_v3, %v1141_v57 }
 0xaa6   :  { %1166 = vrot.lane.b32.xlu1 %v1142_v55, %s4762_s7  ;;  %v1164_v51 = vmul.f32 %v1162_v0, %v1142_v55 }
 0xaaa   :  { %1150 = vrot.lane.b32.xlu1 %v1141_v57, %s4762_s7 }
 0xb18   :  { %v1167_v58 = vpop.permute.xlu1 %1166 }
 0xb19   :  { %v1169_v59 = vmul.f32 %v1167_v58, %v1142_v55 }
 0xb1b   :  { %1171 = vrot.lane.b32.xlu1 %v1169_v59, %s4763_s25 }
 0xb1c   :  { %v1151_v60 = vpop.permute.xlu1 %1150 }
 0xb1d   :  { %v1153_v63 = vmul.f32 %v1151_v60, %v1141_v57 }
 0xb1f   :  { %1155 = vrot.lane.b32.xlu1 %v1153_v63, %s4763_s25 }
 0xb8d   :  { %v1172_v1 = vpop.permute.xlu1 %1171 }
 0xb8e   :  { %v1174_v2 = vadd.f32 %v1172_v1, %v1164_v51 }
 0xb90   :  { %4662 = vtanh.f32 %v1174_v2  ;;  %v1202_v32 = vrot.slane %v1174_v2, 3 }
 0xb91   :  { %v1156_v7 = vpop.permute.xlu1 %1155 }
 0xb92   :  { %v1158_v8 = vadd.f32 %v1156_v7, %v1148_v5 }
 0xb94   :  { %4664 = vtanh.f32 %v1158_v8  ;;  %v1190_v61 = vrot.slane %v1158_v8, 3 }
 0xb9a   :  { %v4663_v9 = vpop.eup %4662 }
 0xb9b   :  { %1183 = vrot.lane.b32.xlu0 %v4663_v9, %s4762_s7 }
 0xb9e   :  { %v4665_v11 = vpop.eup %4664 }
 0xb9f   :  { %1177 = vrot.lane.b32.xlu1 %v4665_v11, %s4762_s7 }
 0xc0d   :  { %v1184_v17 = vpop.permute.xlu0 %1183 }
 0xc0e   :  { %v1186_v22 = vmul.f32 %v1184_v17, %v1142_v55 }
 0xc10   :  { %v1208_v27 = vrot.slane %v1186_v22, 3 }
 0xc11   :  { %v1178_v28 = vpop.permute.xlu1 %1177 }
 0xc12   :  { %v1180_v50 = vmul.f32 %v1178_v28, %v1141_v57  ;;  %1209 = vrot.lane.b32.xlu0 %v1208_v27, %s4763_s25 }
 0xc14   :  { %v1196_v31 = vrot.slane %v1180_v50, 3 }
 0xc16   :  { %1197 = vrot.lane.b32.xlu1 %v1196_v31, %s4763_s25 }
 0xc1a   :  { %1203 = vrot.lane.b32.xlu1 %v1202_v32, %s4764_s3 }
 0xc1e   :  { %1191 = vrot.lane.b32.xlu1 %v1190_v61, %s4764_s3 }
 0xc84   :  { %v1210_v33 = vpop.permute.xlu0 %1209 }
 0xc85   :  { %v5440_v34 = vsel %vm1188_vm9, %v1210_v33, %v5392_v16 }
 0xc86   :  { %1214 = vrot.lane.b32.xlu0 %v5440_v34, %s4763_s25 }
 0xc88   :  { %v1198_v37 = vpop.permute.xlu1 %1197 }
 0xc89   :  { %v5446_v38 = vsel %vm1187_vm10, %v1198_v37, %v5398_v18 }
 0xc8c   :  { %v1204_v40 = vpop.permute.xlu1 %1203 }
 0xc8d   :  { %v5449_v41 = vsel %vm1188_vm9, %v1204_v40, %v5400_v26  ;;  %vm1721_vm9 = vcmp.gt.s32.totalorder %v5282_v43, 6  ;;  %v2088_v43 = vld [vmem:[%s6479_s10 + $0x380] sm:$0xff] }
 0xc8e   :  { %v1338_v44 = vrot.slane %v5449_v41, 4 }
 0xc90   :  { %1339 = vrot.lane.b32.xlu1 %v1338_v44, %s4763_s25  ;;  %v1192_v45 = vpop.permute.xlu1 %1191 }
 0xc91   :  { %v5454_v16 = vsel %vm1187_vm10, %v1192_v45, %v5404_v29 }
 0xc92   :  { %v1322_v46 = vrot.slane %v5454_v16, 4 }
 0xc94   :  { %1323 = vrot.lane.b32.xlu1 %v1322_v46, %s4763_s25 }
 0xcf8   :  { %v1215_v35 = vpop.permute.xlu0 %1214 }
 0xcf9   :  { %v1217_v18 = vsel %vm677_vm13, %v5446_v38, %v1215_v35 }
 0xcfa   :  { %3442 = vmatmul.mubr.msk.f32.vlgmr.msra.gmra.mrb[10].mxu0 %vm536_vm14, %v1217_v18 }
 0xcfb   :  { %4261 = vmatpush1.bf16.msra.mxu0 %v5144_v4  ;;  %1646 = vmatprep.mubr.f32.mxu0 %v6487_v19 }
 0xcfc   :  { %4263 = vmatprep.subr.bf16.mxu0 %v5150_v6 }
 0xcff   :  { %4265 = vmatpush1.bf16.msra.mxu0 %v5170_v12 }
 0xd00   :  { %4267 = vmatprep.subr.bf16.mxu0 %v5176_v14 }
 0xd02   :  { %v1340_v11 = vpop.permute.xlu1 %1339 }
 0xd03   :  { %4269 = vmatpush1.bf16.msra.mxu0 %v5194_v20 }
 0xd04   :  { %4271 = vmatprep.subr.bf16.mxu0 %v5197_v21 }
 0xd06   :  { %v1324_v28 = vpop.permute.xlu1 %1323 }
 0xd07   :  { %4273 = vmatpush1.bf16.msra.mxu0 %v5209_v25 }
 0xdcd   :  { %v1292_v26 = vpop.f32.mrb[10].mxu0 }
 0xdce   :  { %v1299_v29 = vrot.slane %v1292_v26, 4  ;;  %v1294_v39 = vpop.f32.mrb[11].mxu0 }
 0xdcf   :  { %v1300_v47 = vrot.slane %v1294_v39, 4 }
 0xdd0   :  { %v1303_v48 = vadd.f32 %v1299_v29, %v1219_v62 }
 0xdd1   :  { %v1304_v52 = vadd.f32 %v1300_v47, %v1221_v30 }
 0xdd2   :  { %v3443_v55 = vmul.f32 -1.442695, %v1303_v48 }
 0xdd3   :  { %v3444_v56 = vmul.f32 -1.442695, %v1304_v52 }
 0xdd4   :  { %4666 = vpow2.f32 %v3443_v55 }
 0xdd5   :  { %4668 = vpow2.f32 %v3444_v56 }
 0xdde   :  { %v4667_v57 = vpop.eup %4666 }
 0xddf   :  { %v4669_v58 = vpop.eup %4668  ;;  %v1311_v59 = vadd.f32 1.0, %v4667_v57 }
 0xde0   :  { %v1312_v60 = vadd.f32 1.0, %v4669_v58 }
 0xde1   :  { %4670 = vrcp.f32 %v1311_v59 }
 0xde2   :  { %4672 = vrcp.f32 %v1312_v60 }
 0xdeb   :  { %v4671_v63 = vpop.eup %4670 }
 0xdec   :  { %v4673_v0 = vpop.eup %4672  ;;  %v1317_v2 = vmul.f32 %v4671_v63, %v5248_v10 }
 0xded   :  { %v1318_v51 = vmul.f32 %v4673_v0, %v5253_v15 }
 0xdee   :  { %v1319_v3 = vadd.f32 %v1317_v2, %v5251_v13 }
 0xdef   :  { %v1320_v1 = vadd.f32 %v1318_v51, %v5259_v24 }
 0xdf0   :  { %v1326_v50 = vmul.f32 %v1324_v28, %v1319_v3 }
 0xdf1   :  { %1344 = vrot.lane.b32.xlu0 %v1320_v1, %s4762_s7  ;;  %v1342_v17 = vmul.f32 %v1340_v11, %v1320_v1 }
 0xdf5   :  { %1328 = vrot.lane.b32.xlu0 %v1319_v3, %s4762_s7 }
 0xe63   :  { %v1345_v5 = vpop.permute.xlu0 %1344 }
 0xe64   :  { %v1347_v7 = vmul.f32 %v1345_v5, %v1320_v1 }
 0xe66   :  { %1349 = vrot.lane.b32.xlu0 %v1347_v7, %s4763_s25 }
 0xe67   :  { %v1329_v8 = vpop.permute.xlu0 %1328 }
 0xe68   :  { %v1331_v9 = vmul.f32 %v1329_v8, %v1319_v3 }
 0xe6a   :  { %1333 = vrot.lane.b32.xlu0 %v1331_v9, %s4763_s25 }
 0xed8   :  { %v1350_v22 = vpop.permute.xlu0 %1349 }
 0xed9   :  { %v1352_v27 = vadd.f32 %v1350_v22, %v1342_v17 }
 0xedb   :  { %4674 = vtanh.f32 %v1352_v27  ;;  %v1380_v18 = vrot.slane %v1352_v27, 4 }
 0xedc   :  { %v1334_v31 = vpop.permute.xlu0 %1333 }
 0xedd   :  { %v1336_v32 = vadd.f32 %v1334_v31, %v1326_v50 }
 0xedf   :  { %4676 = vtanh.f32 %v1336_v32  ;;  %v1368_v26 = vrot.slane %v1336_v32, 4 }
 0xee5   :  { %v4675_v61 = vpop.eup %4674 }
 0xee6   :  { %1361 = vrot.lane.b32.xlu1 %v4675_v61, %s4762_s7 }
 0xee9   :  { %v4677_v33 = vpop.eup %4676 }
 0xeea   :  { %1355 = vrot.lane.b32.xlu0 %v4677_v33, %s4762_s7 }
 0xf58   :  { %v1362_v37 = vpop.permute.xlu1 %1361 }
 0xf59   :  { %v1364_v40 = vmul.f32 %v1362_v37, %v1320_v1 }
 0xf5b   :  { %v1386_v44 = vrot.slane %v1364_v40, 4 }
 0xf5c   :  { %v1356_v45 = vpop.permute.xlu0 %1355 }
 0xf5d   :  { %v1358_v46 = vmul.f32 %v1356_v45, %v1319_v3  ;;  %1387 = vrot.lane.b32.xlu1 %v1386_v44, %s4763_s25 }
 0xf5f   :  { %v1374_v35 = vrot.slane %v1358_v46, 4 }
 0xf61   :  { %1375 = vrot.lane.b32.xlu0 %v1374_v35, %s4763_s25 }
 0xf65   :  { %1381 = vrot.lane.b32.xlu0 %v1380_v18, %s4764_s3 }
 0xf69   :  { %1369 = vrot.lane.b32.xlu0 %v1368_v26, %s4764_s3 }
 0xfcf   :  { %v1388_v29 = vpop.permute.xlu1 %1387 }
 0xfd0   :  { %v5489_v39 = vsel %vm1366_vm12, %v1388_v29, %v5440_v34 }
 0xfd1   :  { %1392 = vrot.lane.b32.xlu1 %v5489_v39, %s4763_s25 }
 0xfd3   :  { %v1376_v62 = vpop.permute.xlu0 %1375 }
 0xfd4   :  { %v5495_v47 = vsel %vm1365_vm15, %v1376_v62, %v5446_v38 }
 0xfd7   :  { %v1382_v48 = vpop.permute.xlu0 %1381 }
 0xfd8   :  { %v5498_v30 = vsel %vm1366_vm12, %v1382_v48, %v5449_v41  ;;  %vm3407_vm12 = vcmask 17408  }
 0xfd9   :  { %v1516_v52 = vrot.slane %v5498_v30, 3 }
 0xfdb   :  { %1517 = vrot.lane.b32.xlu0 %v1516_v52, %s4763_s25  ;;  %v1370_v55 = vpop.permute.xlu0 %1369 }
 0xfdc   :  { %v5503_v34 = vsel %vm1365_vm15, %v1370_v55, %v5454_v16 }
 0xfdd   :  { %v1500_v56 = vrot.slane %v5503_v34, 3 }
 0xfdf   :  { %1501 = vrot.lane.b32.xlu0 %v1500_v56, %s4763_s25 }
0x1043   :  { %v1393_v57 = vpop.permute.xlu1 %1392 }
0x1044   :  { %v1395_v38 = vsel %vm677_vm13, %v5495_v47, %v1393_v57 }
0x1045   :  { %3445 = vmatmul.mubr.msk.f32.vlgmr.msra.gmra.mrb[10].mxu1 %vm536_vm14, %v1395_v38 }
0x1046   :  { %4277 = vmatpush1.bf16.msra.mxu1 %v5144_v4  ;;  %1823 = vmatprep.mubr.f32.mxu1 %v6487_v19  ;;  %v1397_v4 = vsel %vm1396_vm0, %v5238_v53, %v5231_v36  ;;  %v2010_v19 = vld [vmem:[%s6479_s10 + $0x110] sm:$0xff] }
0x1047   :  { %4279 = vmatprep.subr.bf16.mxu1 %v5150_v6  ;;  %v1399_v6 = vsel %vm1396_vm0, %v5240_v54, %v5236_v49 }
0x104a   :  { %4281 = vmatpush1.bf16.msra.mxu1 %v5170_v12 }
0x104b   :  { %4283 = vmatprep.subr.bf16.mxu1 %v5176_v14 }
0x104d   :  { %v1518_v22 = vpop.permute.xlu0 %1517 }
0x104e   :  { %4285 = vmatpush1.bf16.msra.mxu1 %v5194_v20 }
0x104f   :  { %4287 = vmatprep.subr.bf16.mxu1 %v5197_v21 }
0x1051   :  { %v1502_v31 = vpop.permute.xlu0 %1501 }
0x1052   :  { %4289 = vmatpush1.bf16.msra.mxu1 %v5209_v25 }
0x1118   :  { %v1470_v41 = vpop.f32.mrb[10].mxu1 }
0x1119   :  { %v1477_v16 = vrot.slane %v1470_v41, 3  ;;  %v1472_v58 = vpop.f32.mrb[11].mxu1 }
0x111a   :  { %v1478_v59 = vrot.slane %v1472_v58, 3 }
0x111b   :  { %v1481_v60 = vadd.f32 %v1477_v16, %v1397_v4 }
0x111c   :  { %v1482_v12 = vadd.f32 %v1478_v59, %v1399_v6  ;;  %v1575_v6 = vsel %vm1574_vm6, %v5238_v53, %v5231_v36  ;;  %v2036_v53 = vld [vmem:[%s6479_s10 + $0x1e0] sm:$0xff]  ;;  %v2037_v36 = vld [vmem:[%s6479_s10 + $0x1e8] sm:$0xff] }
0x111d   :  { %v3446_v14 = vmul.f32 -1.442695, %v1481_v60 }
0x111e   :  { %v3447_v63 = vmul.f32 -1.442695, %v1482_v12 }
0x111f   :  { %4678 = vpow2.f32 %v3446_v14 }
0x1120   :  { %4680 = vpow2.f32 %v3447_v63  ;;  %v1577_v63 = vsel %vm1574_vm6, %v5240_v54, %v5236_v49  ;;  %v2018_v54 = vld [vmem:[%s6479_s10 + $0x150] sm:$0xff]  ;;  %v2019_v49 = vld [vmem:[%s6479_s10 + $0x158] sm:$0xff] }
0x1129   :  { %v4679_v20 = vpop.eup %4678 }
0x112a   :  { %v4681_v21 = vpop.eup %4680  ;;  %v1489_v25 = vadd.f32 1.0, %v4679_v20 }
0x112b   :  { %v1490_v0 = vadd.f32 1.0, %v4681_v21 }
0x112c   :  { %4682 = vrcp.f32 %v1489_v25 }
0x112d   :  { %4684 = vrcp.f32 %v1490_v0 }
0x1136   :  { %v4683_v51 = vpop.eup %4682 }
0x1137   :  { %v4685_v1 = vpop.eup %4684  ;;  %v1495_v5 = vmul.f32 %v4683_v51, %v5248_v10 }
0x1138   :  { %v1496_v2 = vmul.f32 %v4685_v1, %v5253_v15 }
0x1139   :  { %v1497_v7 = vadd.f32 %v1495_v5, %v5251_v13 }
0x113a   :  { %v1498_v3 = vadd.f32 %v1496_v2, %v5259_v24 }
0x113b   :  { %v1504_v32 = vmul.f32 %v1502_v31, %v1497_v7 }
0x113c   :  { %1522 = vrot.lane.b32.xlu1 %v1498_v3, %s4762_s7  ;;  %v1520_v27 = vmul.f32 %v1518_v22, %v1498_v3 }
0x1140   :  { %1506 = vrot.lane.b32.xlu1 %v1497_v7, %s4762_s7 }
0x11ae   :  { %v1523_v8 = vpop.permute.xlu1 %1522 }
0x11af   :  { %v1525_v9 = vmul.f32 %v1523_v8, %v1498_v3 }
0x11b1   :  { %1527 = vrot.lane.b32.xlu1 %v1525_v9, %s4763_s25 }
0x11b2   :  { %v1507_v11 = vpop.permute.xlu1 %1506 }
0x11b3   :  { %v1509_v17 = vmul.f32 %v1507_v11, %v1497_v7 }
0x11b5   :  { %1511 = vrot.lane.b32.xlu1 %v1509_v17, %s4763_s25 }
0x1223   :  { %v1528_v28 = vpop.permute.xlu1 %1527 }
0x1224   :  { %v1530_v50 = vadd.f32 %v1528_v28, %v1520_v27 }
0x1226   :  { %4686 = vtanh.f32 %v1530_v50  ;;  %v1558_v29 = vrot.slane %v1530_v50, 5 }
0x1227   :  { %v1512_v61 = vpop.permute.xlu1 %1511 }
0x1228   :  { %v1514_v33 = vadd.f32 %v1512_v61, %v1504_v32 }
0x122a   :  { %4688 = vtanh.f32 %v1514_v33  ;;  %v1546_v62 = vrot.slane %v1514_v33, 5 }
0x1230   :  { %v4687_v37 = vpop.eup %4686 }
0x1231   :  { %1539 = vrot.lane.b32.xlu0 %v4687_v37, %s4762_s7 }
0x1234   :  { %v4689_v40 = vpop.eup %4688 }
0x1235   :  { %1533 = vrot.lane.b32.xlu1 %v4689_v40, %s4762_s7 }
0x12a3   :  { %v1540_v44 = vpop.permute.xlu0 %1539 }
0x12a4   :  { %v1542_v45 = vmul.f32 %v1540_v44, %v1498_v3 }
0x12a6   :  { %v1564_v46 = vrot.slane %v1542_v45, 5 }
0x12a7   :  { %v1534_v35 = vpop.permute.xlu1 %1533 }
0x12a8   :  { %v1536_v18 = vmul.f32 %v1534_v35, %v1497_v7  ;;  %1565 = vrot.lane.b32.xlu0 %v1564_v46, %s4763_s25 }
0x12aa   :  { %v1552_v26 = vrot.slane %v1536_v18, 5 }
0x12ac   :  { %1553 = vrot.lane.b32.xlu1 %v1552_v26, %s4763_s25 }
0x12b0   :  { %1559 = vrot.lane.b32.xlu1 %v1558_v29, %s4764_s3 }
0x12b4   :  { %1547 = vrot.lane.b32.xlu1 %v1546_v62, %s4764_s3 }
0x131a   :  { %v1566_v48 = vpop.permute.xlu0 %1565 }
0x131b   :  { %v5538_v52 = vsel %vm1544_vm1, %v1566_v48, %v5489_v39 }
0x131c   :  { %1570 = vrot.lane.b32.xlu0 %v5538_v52, %s4763_s25 }
0x131e   :  { %v1554_v55 = vpop.permute.xlu1 %1553 }
0x131f   :  { %v5544_v56 = vsel %vm1543_vm5, %v1554_v55, %v5495_v47 }
0x1322   :  { %v1560_v57 = vpop.permute.xlu1 %1559 }
0x1323   :  { %v5547_v38 = vsel %vm1544_vm1, %v1560_v57, %v5498_v30  ;;  %v5562_v30 = vld [vmem:[%s6526_s18 + $0x8] sm:$0xff]  ;;  %v2008_v57 = vld [vmem:[%s6479_s10 + $0x100] sm:$0xff] }
0x1324   :  { %6537 = vst [vmem:[#allocation15_spill] sm:$0xff] %v5547_v38  ;;  %v1694_v41 = vrot.slane %v5547_v38, 2  ;;  %v2015_v38 = vld [vmem:[%s6479_s10 + $0x138] sm:$0xff] }
0x1326   :  { %1695 = vrot.lane.b32.xlu1 %v1694_v41, %s4763_s25  ;;  %v1548_v16 = vpop.permute.xlu1 %1547  ;;  %v2009_v41 = vld [vmem:[%s6479_s10 + $0x108] sm:$0xff] }
0x1327   :  { %v5552_v39 = vsel %vm1543_vm5, %v1548_v16, %v5503_v34  ;;  %v5591_v16 = vpack.c.bf16 %v2009_v41, %v2008_v57  ;;  %v2006_v57 = vld [vmem:[%s6479_s10 + $0xf0] sm:$0xff]  ;;  %v2007_v41 = vld [vmem:[%s6479_s10 + $0xf8] sm:$0xff] }
0x1328   :  { %6538 = vst [vmem:[#allocation16_spill] sm:$0xff] %v5552_v39  ;;  %v1678_v58 = vrot.slane %v5552_v39, 2 }
0x1329   :  { %4323 = vmatprep.subr.bf16.mxu1 %v5591_v16 }
0x132a   :  { %1679 = vrot.lane.b32.xlu1 %v1678_v58, %s4763_s25  ;;  %v1992_v58 = vld [vmem:[%s6479_s10 + $0x80] sm:$0xff] }
0x138e   :  { %v1571_v4 = vpop.permute.xlu0 %1570 }
0x138f   :  { %v1573_v47 = vsel %vm677_vm13, %v5544_v56, %v1571_v4  ;;  %v1993_v4 = vld [vmem:[%s6479_s10 + $0x88] sm:$0xff] }
0x1390   :  { %3448 = vmatmul.mubr.msk.f32.vlgmr.msra.gmra.mrb[12].mxu0 %vm536_vm14, %v1573_v47  ;;  %v1976_v47 = vld [vmem:[%s6479_s10] sm:$0xff] }
0x1391   :  { %2157 = vmatprep.mubr.f32.mxu0 %v5562_v30 }
0x1398   :  { %v1696_v50 = vpop.permute.xlu1 %1695 }
0x139c   :  { %v1680_v33 = vpop.permute.xlu1 %1679 }
0x1463   :  { %v1648_v34 = vpop.f32.mrb[12].mxu0 }
0x1464   :  { %v1655_v59 = vrot.slane %v1648_v34, 2  ;;  %v1650_v60 = vpop.f32.mrb[13].mxu0  ;;  %v5602_v34 = vpack.c.bf16 %v1993_v4, %v1992_v58  ;;  %v1990_v58 = vld [vmem:[%s6479_s10 + $0x70] sm:$0xff]  ;;  %v5737_v4 = vpack.c.bf16 %v2007_v41, %v2006_v57  ;;  %v2072_v41 = vld [vmem:[%s6479_s10 + $0x300] sm:$0xff] }
0x1465   :  { %v1656_v12 = vrot.slane %v1650_v60, 2 }
0x1466   :  { %v1659_v14 = vadd.f32 %v1655_v59, %v1575_v6  ;;  %v1977_v59 = vld [vmem:[%s6479_s10 + $0x8] sm:$0xff]  ;;  %4291 = vmatprep.subr.bf16.mxu0 %v5602_v34  ;;  %v1994_v6 = vld [vmem:[%s6479_s10 + $0x90] sm:$0xff] }
0x1467   :  { %v1660_v20 = vadd.f32 %v1656_v12, %v1577_v63  ;;  %v5608_v60 = vpack.c.bf16 %v1977_v59, %v1976_v47  ;;  %v1995_v12 = vld [vmem:[%s6479_s10 + $0x98] sm:$0xff] }
0x1468   :  { %v3449_v21 = vmul.f32 -1.442695, %v1659_v14  ;;  %v1978_v14 = vld [vmem:[%s6479_s10 + $0x10] sm:$0xff]  ;;  %v5621_v63 = vpack.c.bf16 %v1995_v12, %v1994_v6  ;;  %v1991_v47 = vld [vmem:[%s6479_s10 + $0x78] sm:$0xff] }
0x1469   :  { %v3450_v25 = vmul.f32 -1.442695, %v1660_v20  ;;  %4293 = vmatpush3.bf16.msra.mxu0 %v5608_v60  ;;  %v1979_v20 = vld [vmem:[%s6479_s10 + $0x18] sm:$0xff]  ;;  %v5742_v59 = vpack.c.bf16 %v1991_v47, %v1990_v58  ;;  %v2046_v6 = vld [vmem:[%s6479_s10 + $0x230] sm:$0xff]  ;;  %v2073_v58 = vld [vmem:[%s6479_s10 + $0x308] sm:$0xff] }
0x146a   :  { %4690 = vpow2.f32 %v3449_v21  ;;  %v5626_v21 = vpack.c.bf16 %v1979_v20, %v1978_v14  ;;  %4295 = vmatprep.subr.bf16.mxu0 %v5621_v63  ;;  %v2047_v12 = vld [vmem:[%s6479_s10 + $0x238] sm:$0xff]  ;;  %v5758_v20 = vld [vmem:[%s6526_s18] sm:$0xff] }
0x146b   :  { %4692 = vpow2.f32 %v3450_v25  ;;  %v1996_v25 = vld [vmem:[%s6479_s10 + $0xa0] sm:$0xff]  ;;  %v5752_v14 = vpack.c.bf16 %v2047_v12, %v2046_v6  ;;  %v5858_v6 = vpack.c.bf16 %v2073_v58, %v2072_v41  ;;  %v2057_v12 = vld [vmem:[%s6479_s10 + $0x288] sm:$0xff]  ;;  %v2078_v58 = vld [vmem:[%s6479_s10 + $0x330] sm:$0xff] }
0x146c   :  { %v2056_v47 = vld [vmem:[%s6479_s10 + $0x280] sm:$0xff] }
0x146d   :  { %4297 = vmatpush3.bf16.msra.mxu0 %v5626_v21  ;;  %6541 = vst [vmem:[#allocation19_spill] sm:$0xff] %v5858_v6 }
0x1474   :  { %v4691_v0 = vpop.eup %4690 }
0x1475   :  { %v4693_v51 = vpop.eup %4692  ;;  %v1667_v1 = vadd.f32 1.0, %v4691_v0  ;;  %v1997_v0 = vld [vmem:[%s6479_s10 + $0xa8] sm:$0xff] }
0x1476   :  { %v1668_v2 = vadd.f32 1.0, %v4693_v51  ;;  %v1980_v51 = vld [vmem:[%s6479_s10 + $0x20] sm:$0xff] }
0x1477   :  { %4694 = vrcp.f32 %v1667_v1 }
0x1478   :  { %4696 = vrcp.f32 %v1668_v2  ;;  %v5640_v2 = vpack.c.bf16 %v1997_v0, %v1996_v25  ;;  %v2048_v25 = vld [vmem:[%s6479_s10 + $0x240] sm:$0xff]  ;;  %v2049_v0 = vld [vmem:[%s6479_s10 + $0x248] sm:$0xff] }
0x147a   :  { %4299 = vmatprep.subr.bf16.mxu0 %v5640_v2 }
0x1481   :  { %v4695_v3 = vpop.eup %4694 }
0x1482   :  { %v4697_v5 = vpop.eup %4696  ;;  %v1673_v9 = vmul.f32 %v4695_v3, %v5248_v10  ;;  %v1981_v3 = vld [vmem:[%s6479_s10 + $0x28] sm:$0xff] }
0x1483   :  { %v1674_v7 = vmul.f32 %v4697_v5, %v5253_v15  ;;  %v2017_v15 = vld [vmem:[%s6479_s10 + $0x148] sm:$0xff] }
0x1484   :  { %v1675_v11 = vadd.f32 %v1673_v9, %v5251_v13  ;;  %v1999_v9 = vld [vmem:[%s6479_s10 + $0xb8] sm:$0xff]  ;;  %v2032_v13 = vld [vmem:[%s6479_s10 + $0x1c0] sm:$0xff] }
0x1485   :  { %v1676_v8 = vadd.f32 %v1674_v7, %v5259_v24  ;;  %v5650_v7 = vpack.c.bf16 %v1981_v3, %v1980_v51  ;;  %v5771_v51 = vld [vmem:[%s6526_s18 + $0x20] sm:$0xff]  ;;  %v5780_v3 = vld [vmem:[%s6526_s18 + $0x18] sm:$0xff] }
0x1486   :  { %v1682_v37 = vmul.f32 %v1680_v33, %v1675_v11  ;;  %v2002_v33 = vld [vmem:[%s6479_s10 + $0xd0] sm:$0xff]  ;;  %v2016_v24 = vld [vmem:[%s6479_s10 + $0x140] sm:$0xff] }
0x1487   :  { %1700 = vrot.lane.b32.xlu0 %v1676_v8, %s4762_s7  ;;  %v1698_v31 = vmul.f32 %v1696_v50, %v1676_v8  ;;  %4301 = vmatpush3.bf16.msra.mxu0 %v5650_v7  ;;  %v1984_v50 = vld [vmem:[%s6479_s10 + $0x40] sm:$0xff] }
0x148b   :  { %1684 = vrot.lane.b32.xlu0 %v1675_v11, %s4762_s7 }
0x14f9   :  { %v1701_v17 = vpop.permute.xlu0 %1700 }
0x14fa   :  { %v1703_v22 = vmul.f32 %v1701_v17, %v1676_v8  ;;  %v1983_v17 = vld [vmem:[%s6479_s10 + $0x38] sm:$0xff] }
0x14fc   :  { %1705 = vrot.lane.b32.xlu0 %v1703_v22, %s4763_s25 }
0x14fd   :  { %v1685_v27 = vpop.permute.xlu0 %1684 }
0x14fe   :  { %v1687_v28 = vmul.f32 %v1685_v27, %v1675_v11  ;;  %v2000_v27 = vld [vmem:[%s6479_s10 + $0xc0] sm:$0xff] }
0x1500   :  { %1689 = vrot.lane.b32.xlu0 %v1687_v28, %s4763_s25  ;;  %v2001_v28 = vld [vmem:[%s6479_s10 + $0xc8] sm:$0xff] }
0x156e   :  { %v1706_v32 = vpop.permute.xlu0 %1705 }
0x156f   :  { %v1708_v61 = vadd.f32 %v1706_v32, %v1698_v31  ;;  %v5683_v31 = vpack.c.bf16 %v2001_v28, %v2000_v27  ;;  %v1985_v32 = vld [vmem:[%s6479_s10 + $0x48] sm:$0xff]  ;;  %v2068_v27 = vld [vmem:[%s6479_s10 + $0x2e0] sm:$0xff] }
0x1570   :  { %v2069_v28 = vld [vmem:[%s6479_s10 + $0x2e8] sm:$0xff] }
0x1571   :  { %4698 = vtanh.f32 %v1708_v61  ;;  %v1736_v55 = vrot.slane %v1708_v61, 6  ;;  %v5688_v61 = vpack.c.bf16 %v1985_v32, %v1984_v50  ;;  %v2052_v50 = vld [vmem:[%s6479_s10 + $0x260] sm:$0xff]  ;;  %v5814_v32 = vpack.c.bf16 %v2069_v28, %v2068_v27  ;;  %v2059_v28 = vld [vmem:[%s6479_s10 + $0x298] sm:$0xff] }
0x1572   :  { %v1690_v40 = vpop.permute.xlu0 %1689 }
0x1573   :  { %v5577_v44 = vadd.f32 %v1690_v40, %v1682_v37  ;;  %v2003_v37 = vld [vmem:[%s6479_s10 + $0xd8] sm:$0xff]  ;;  %v1986_v40 = vld [vmem:[%s6479_s10 + $0x50] sm:$0xff] }
0x1575   :  { %6539 = vst [vmem:[#allocation17_spill] sm:$0xff] %v5577_v44  ;;  %4700 = vtanh.f32 %v5577_v44  ;;  %v2033_v44 = vld [vmem:[%s6479_s10 + $0x1c8] sm:$0xff] }
0x1576   :  { %v6019_v10 = vpack.c.bf16 %v2033_v44, %v2032_v13  ;;  %v2035_v13 = vld [vmem:[%s6479_s10 + $0x1d8] sm:$0xff] }
0x157b   :  { %v4699_v45 = vpop.eup %4698 }
0x157c   :  { %1717 = vrot.lane.b32.xlu1 %v4699_v45, %s4762_s7  ;;  %v5701_v45 = vpack.c.bf16 %v2003_v37, %v2002_v33  ;;  %v2053_v33 = vld [vmem:[%s6479_s10 + $0x268] sm:$0xff] }
0x157d   :  { %v5819_v37 = vpack.c.bf16 %v2053_v33, %v2052_v50  ;;  %v2076_v33 = vld [vmem:[%s6479_s10 + $0x320] sm:$0xff] }
0x157f   :  { %v4701_v46 = vpop.eup %4700 }
0x1580   :  { %1711 = vrot.lane.b32.xlu0 %v4701_v46, %s4762_s7  ;;  %v1987_v46 = vld [vmem:[%s6479_s10 + $0x58] sm:$0xff] }
0x15ee   :  { %v1718_v35 = vpop.permute.xlu1 %1717 }
0x15ef   :  { %v1720_v18 = vmul.f32 %v1718_v35, %v1676_v8  ;;  %v1998_v8 = vld [vmem:[%s6479_s10 + $0xb0] sm:$0xff]  ;;  %v5706_v35 = vpack.c.bf16 %v1987_v46, %v1986_v40  ;;  %v5825_v40 = vld [vmem:[%s6526_s18 + $0x28] sm:$0xff] }
0x15f0   :  { %v2070_v46 = vld [vmem:[%s6479_s10 + $0x2f0] sm:$0xff] }
0x15f1   :  { %v1742_v26 = vrot.slane %v1720_v18, 6  ;;  %v2004_v18 = vld [vmem:[%s6479_s10 + $0xe0] sm:$0xff] }
0x15f2   :  { %v1712_v29 = vpop.permute.xlu0 %1711 }
0x15f3   :  { %v1714_v62 = vmul.f32 %v1712_v29, %v1675_v11  ;;  %1743 = vrot.lane.b32.xlu1 %v1742_v26, %s4763_s25  ;;  %v5665_v11 = vpack.c.bf16 %v1999_v9, %v1998_v8  ;;  %v2005_v26 = vld [vmem:[%s6479_s10 + $0xe8] sm:$0xff]  ;;  %v1988_v29 = vld [vmem:[%s6479_s10 + $0x60] sm:$0xff]  ;;  %v2050_v8 = vld [vmem:[%s6479_s10 + $0x250] sm:$0xff] }
0x15f4   :  { %v2051_v9 = vld [vmem:[%s6479_s10 + $0x258] sm:$0xf] }
0x15f5   :  { %v1730_v48 = vrot.slane %v1714_v62, 6  ;;  %4303 = vmatprep.subr.bf16.mxu0 %v5665_v11  ;;  %v5719_v62 = vpack.c.bf16 %v2005_v26, %v2004_v18  ;;  %v2071_v18 = vld [vmem:[%s6479_s10 + $0x2f8] sm:$0xff]  ;;  %v2054_v26 = vld [vmem:[%s6479_s10 + $0x270] sm:$0xff] }
0x15f7   :  { %1731 = vrot.lane.b32.xlu0 %v1730_v48, %s4763_s25  ;;  %v1989_v48 = vld [vmem:[%s6479_s10 + $0x68] sm:$0xff] }
0x15fb   :  { %1737 = vrot.lane.b32.xlu0 %v1736_v55, %s4764_s3  ;;  %v5724_v55 = vpack.c.bf16 %v1989_v48, %v1988_v29  ;;  %v5840_v29 = vpack.c.bf16 %v2071_v18, %v2070_v46  ;;  %v2055_v48 = vld [vmem:[%s6479_s10 + $0x278] sm:$0xff]  ;;  %v2077_v46 = vld [vmem:[%s6479_s10 + $0x328] sm:$0xff]  ;;  %v2060_v18 = vld [vmem:[%s6479_s10 + $0x2a0] sm:$0xff] }
0x15fc   :  { %v5845_v57 = vpack.c.bf16 %v2055_v48, %v2054_v26  ;;  %v5894_v26 = vpack.c.bf16 %v2077_v46, %v2076_v33  ;;  %v2061_v48 = vld [vmem:[%s6479_s10 + $0x2a8] sm:$0xff]  ;;  %v2064_v46 = vld [vmem:[%s6479_s10 + $0x2c0] sm:$0xff] }
0x15fd   :  { %v5899_v41 = vpack.c.bf16 %v2061_v48, %v2060_v18  ;;  %v2081_v33 = vld [vmem:[%s6479_s10 + $0x348] sm:$0xff] }
0x15fe   :  { %6545 = vst [vmem:[#allocation23_spill] sm:$0xff] %v5894_v26  ;;  %v2065_v48 = vld [vmem:[%s6479_s10 + $0x2c8] sm:$0xff] }
0x15ff   :  { %6546 = vst [vmem:[#allocation24_spill] sm:$0xff] %v5899_v41 }
0x1665   :  { %v1744_v1 = vpop.permute.xlu1 %1743 }
0x1666   :  { %v5648_v5 = vsel %vm1722_vm7, %v1744_v1, %v5538_v52  ;;  %v1982_v52 = vld [vmem:[%s6479_s10 + $0x30] sm:$0xff]  ;;  %v5774_v1 = vpack.c.bf16 %v2049_v0, %v2048_v25  ;;  %v5863_v25 = vpack.c.bf16 %v2057_v12, %v2056_v47  ;;  %v2079_v47 = vld [vmem:[%s6479_s10 + $0x338] sm:$0xff] }
0x1667   :  { %6540 = vst [vmem:[#allocation18_spill] sm:$0xff] %v5648_v5  ;;  %1748 = vrot.lane.b32.xlu1 %v5648_v5, %s4763_s25  ;;  %v5670_v22 = vpack.c.bf16 %v1983_v17, %v1982_v52  ;;  %v5793_v52 = vld [vmem:[%s6526_s18 + $0x10] sm:$0xff]  ;;  %v5797_v17 = vpack.c.bf16 %v2051_v9, %v2050_v8  ;;  %v2075_v8 = vld [vmem:[%s6479_s10 + $0x318] sm:$0xff] }
0x1668   :  { %6542 = vst [vmem:[#allocation20_spill] sm:$0xff] %v5863_v25  ;;  %v2074_v0 = vld [vmem:[%s6479_s10 + $0x310] sm:$0xff] }
0x1669   :  { %4305 = vmatpush3.bf16.msra.mxu0 %v5670_v22  ;;  %v2058_v9 = vld [vmem:[%s6479_s10 + $0x290] sm:$0xff]  ;;  %v5876_v27 = vpack.c.bf16 %v2075_v8, %v2074_v0  ;;  %v5912_v0 = vpack.c.bf16 %v2079_v47, %v2078_v58  ;;  %v2063_v8 = vld [vmem:[%s6479_s10 + $0x2b8] sm:$0xff]  ;;  %v5935_v58 = vpack.c.bf16 %v2065_v48, %v2064_v46  ;;  %v6490_v48 = vmov 0.0|0.0  }
0x166a   :  { %4307 = vmatprep.subr.bf16.mxu0 %v5683_v31  ;;  %v5881_v50 = vpack.c.bf16 %v2059_v28, %v2058_v9  ;;  %v2062_v12 = vld [vmem:[%s6479_s10 + $0x2b0] sm:$0xff]  ;;  %v2080_v28 = vld [vmem:[%s6479_s10 + $0x340] sm:$0xff] }
0x166b   :  { %6543 = vst [vmem:[#allocation21_spill] sm:$0xff] %v5876_v27  ;;  %6547 = vst [vmem:[#allocation25_spill] sm:$0xff] %v5912_v0  ;;  %v5917_v9 = vpack.c.bf16 %v2063_v8, %v2062_v12  ;;  %v5930_v18 = vpack.c.bf16 %v2081_v33, %v2080_v28  ;;  %v2082_v47 = vld [vmem:[%s6479_s10 + $0x350] sm:$0xff]  ;;  %v2083_v12 = vld [vmem:[%s6479_s10 + $0x358] sm:$0xff] }
0x166c   :  { %6544 = vst [vmem:[#allocation22_spill] sm:$0xff] %v5881_v50  ;;  %6550 = vst [vmem:[#allocation28_spill] sm:$0xff] %v5935_v58  ;;  %v2066_v8 = vld [vmem:[%s6479_s10 + $0x2d0] sm:$0xff]  ;;  %v5948_v28 = vpack.c.bf16 %v2083_v12, %v2082_v47  ;;  %v2067_v33 = vld [vmem:[%s6479_s10 + $0x2d8] sm:$0xff] }
0x166d   :  { %4309 = vmatpush3.bf16.msra.mxu0 %v5688_v61  ;;  %6548 = vst [vmem:[#allocation26_spill] sm:$0xff] %v5917_v9  ;;  %6549 = vst [vmem:[#allocation27_spill] sm:$0xff] %v5930_v18  ;;  %v5953_v46 = vpack.c.bf16 %v2067_v33, %v2066_v8  ;;  %v2011_v47 = vld [vmem:[%s6479_s10 + $0x118] sm:$0xff]  ;;  %v2012_v8 = vld [vmem:[%s6479_s10 + $0x120] sm:$0xff] }
0x166e   :  { %4311 = vmatprep.subr.bf16.mxu0 %v5701_v45  ;;  %6551 = vst [vmem:[#allocation29_spill] sm:$0xff] %v5948_v28  ;;  %v5968_v12 = vpack.c.bf16 %v2011_v47, %v2010_v19  ;;  %v2013_v33 = vld [vmem:[%s6479_s10 + $0x128] sm:$0xf]  ;;  %v2030_v5 = vld [vmem:[%s6479_s10 + $0x1b0] sm:$0xff]  ;;  %v6553_v19 = vmov 0.0|0.0  }
0x166f   :  { %6552 = vst [vmem:[#allocation30_spill] sm:$0xff] %v5953_v46  ;;  %v5985_v47 = vpack.c.bf16 %v2013_v33, %v2012_v8  ;;  %v6012_v8 = vpack.c.bf16 %v2015_v38, %v2014_v42  ;;  %v6017_v33 = vld [vmem:[%s6471_s2 + $0x4] ss:$12 sps:$4 sm:$0xff]   ;;  %v6038_v38 = vpack.c.bf16 %v2017_v15, %v2016_v24  ;;  %v6056_v15 = vpack.c.bf16 %v2019_v49, %v2018_v54  ;;  %v2023_v54 = vld [vmem:[%s6479_s10 + $0x178] sm:$0xff] }
0x1670   :  { %v2034_v42 = vld [vmem:[%s6479_s10 + $0x1d0] sm:$0xff]  ;;  %v6058_v24 = vpack.c.bf16 %v2037_v36, %v2036_v53 }
0x1671   :  { %4313 = vmatpush3.bf16.msra.mxu0 %v5706_v35  ;;  %v6040_v44 = vpack.c.bf16 %v2035_v13, %v2034_v42  ;;  %v2020_v42 = vld [vmem:[%s6479_s10 + $0x160] sm:$0xff]  ;;  %v2021_v13 = vld [vmem:[%s6479_s10 + $0x168] sm:$0xff]  ;;  %v2022_v53 = vld [vmem:[%s6479_s10 + $0x170] sm:$0xff] }
0x1672   :  { %4315 = vmatprep.subr.bf16.mxu0 %v5719_v62  ;;  %v6074_v36 = vpack.c.bf16 %v2021_v13, %v2020_v42  ;;  %v2024_v42 = vld [vmem:[%s6479_s10 + $0x180] sm:$0xff]  ;;  %v2025_v13 = vld [vmem:[%s6479_s10 + $0x188] sm:$0xff] }
0x1673   :  { %v6558_v23 = vld [vmem:[#allocation22_spill] sm:$0xff] }
0x1675   :  { %4317 = vmatpush3.bf16.msra.mxu0 %v5724_v55 }
0x1676   :  { %4319 = vmatprep.subr.bf16.mxu0 %v5737_v4 }
0x1679   :  { %4321 = vmatpush3.bf16.msra.mxu0 %v5742_v59 }
0x167a   :  { %4369 = vmatprep.subr.bf16.mxu0 %v5752_v14 }
0x167c   :  { %2158 = vmatmul.mubr.f32.vlgmr.msra.gmra.mrb[14].mxu0 %v5758_v20 }
0x167d   :  { %4371 = vmatpush3.bf16.msra.mxu0 %v5752_v14  ;;  %2162 = vmatprep.mubr.f32.mxu0 %v5771_v51 }
0x167e   :  { %4373 = vmatprep.subr.bf16.mxu0 %v5774_v1 }
0x1680   :  { %2163 = vmatmul.mubr.f32.gmra.mrb[16].mxu0 %v5780_v3 }
0x1681   :  { %4375 = vmatpush3.bf16.msra.mxu0 %v5774_v1  ;;  %3931 = vmatprep.mubr.msk.f32.mxu0 %vm131_vm3, %v5793_v52 }
0x1682   :  { %4378 = vmatprep.subr.msk.bf16.mxu0 %vm4902_vm2, %v5797_v17 }
0x1685   :  { %4381 = vmatpush3.bf16.msk.msra.mxu0 %vm4902_vm2, %v5797_v17 }
0x1686   :  { %4383 = vmatprep.subr.bf16.mxu0 %v5814_v32 }
0x1688   :  { %3932 = vmatmul.mubr.msk.f32.vlgmr.msra.gmra.mrb[18].mxu0 %vm131_vm3, %v5825_v40 }
0x1689   :  { %4385 = vmatpush3.bf16.msra.mxu0 %v5819_v37  ;;  %2463 = vmatprep.mubr.f32.mxu0 %v5562_v30 }
0x168a   :  { %4387 = vmatprep.subr.bf16.mxu0 %v5840_v29 }
0x168d   :  { %4389 = vmatpush3.bf16.msra.mxu0 %v5845_v57 }
0x168e   :  { %4391 = vmatprep.subr.bf16.mxu0 %v5858_v6 }
0x1691   :  { %4393 = vmatpush3.bf16.msra.mxu0 %v5863_v25 }
0x1692   :  { %4395 = vmatprep.subr.bf16.mxu0 %v5876_v27  ;;  %v2084_v27 = vld [vmem:[%s6479_s10 + $0x360] sm:$0xff] }
0x1695   :  { %4397 = vmatpush3.bf16.msra.mxu0 %v5881_v50 }
0x1696   :  { %4399 = vmatprep.subr.bf16.mxu0 %v5894_v26  ;;  %v2045_v26 = vld [vmem:[%s6479_s10 + $0x228] sm:$0xff] }
0x1699   :  { %4401 = vmatpush3.bf16.msra.mxu0 %v5899_v41  ;;  %v2044_v41 = vld [vmem:[%s6479_s10 + $0x220] sm:$0xff] }
0x169a   :  { %4403 = vmatprep.subr.bf16.mxu0 %v5912_v0  ;;  %v2043_v0 = vld [vmem:[%s6479_s10 + $0x218] sm:$0xff] }
0x169d   :  { %4405 = vmatpush3.bf16.msra.mxu0 %v5917_v9  ;;  %v2042_v9 = vld [vmem:[%s6479_s10 + $0x210] sm:$0xff] }
0x169e   :  { %4407 = vmatprep.subr.bf16.mxu0 %v5930_v18  ;;  %v2041_v18 = vld [vmem:[%s6479_s10 + $0x208] sm:$0xff] }
0x16a1   :  { %4409 = vmatpush3.bf16.msra.mxu0 %v5935_v58  ;;  %v2040_v58 = vld [vmem:[%s6479_s10 + $0x200] sm:$0xff] }
0x16a2   :  { %4411 = vmatprep.subr.bf16.mxu0 %v5948_v28  ;;  %v2039_v28 = vld [vmem:[%s6479_s10 + $0x1f8] sm:$0xff] }
0x16a5   :  { %4413 = vmatpush3.bf16.msra.mxu0 %v5953_v46  ;;  %v2038_v46 = vld [vmem:[%s6479_s10 + $0x1f0] sm:$0xff] }
0x16a6   :  { %4460 = vmatprep.subr.bf16.mxu0 %v6490_v48  ;;  %v6076_v49 = vpack.c.bf16 %v2039_v28, %v2038_v46  ;;  %v6092_v28 = vpack.c.bf16 %v2023_v54, %v2022_v53  ;;  %v6094_v46 = vpack.c.bf16 %v2041_v18, %v2040_v58  ;;  %v4358_v18 = vpack.c.bf16 %v2025_v13, %v2024_v42  ;;  %v2026_v53 = vld [vmem:[%s6479_s10 + $0x190] sm:$0xff]  ;;  %v2027_v54 = vld [vmem:[%s6479_s10 + $0x198] sm:$0xff]  ;;  %v2029_v13 = vld [vmem:[%s6479_s10 + $0x1a8] sm:$0xff] }
0x16a7   :  { %v4360_v58 = vpack.c.bf16 %v2043_v0, %v2042_v9  ;;  %v4362_v42 = vpack.c.bf16 %v2027_v54, %v2026_v53  ;;  %v4364_v0 = vpack.c.bf16 %v2045_v26, %v2044_v41  ;;  %v2028_v9 = vld [vmem:[%s6479_s10 + $0x1a0] sm:$0xff]  ;;  %v2085_v53 = vld [vmem:[%s6479_s10 + $0x368] sm:$0xff]  ;;  %v1732_v41 = vpop.permute.xlu0 %1731 }
0x16a8   :  { %2464 = vmatmul.mubr.f32.vlgmr.msra.gmra.mrb[20].mxu0 %v5758_v20  ;;  %v4366_v50 = vpack.c.bf16 %v2029_v13, %v2028_v9  ;;  %v6137_v26 = vld [vmem:[%s6471_s2] ss:$12 sps:$4 sm:$0xff]   ;;  %v4414_v54 = vpack.c.bf16 %v2085_v53, %v2084_v27  ;;  %v2086_v9 = vld [vmem:[%s6479_s10 + $0x370] sm:$0xff]  ;;  %v2087_v13 = vld [vmem:[%s6479_s10 + $0x378] sm:$0xff]  ;;  %v6153_v27 = vsel %vm1721_vm9, %v1732_v41, %v5544_v56 }
0x16a9   :  { %4462 = vmatpush3.bf16.msra.mxu0 %v5591_v16  ;;  %2468 = vmatprep.mubr.f32.mxu0 %v5771_v51  ;;  %v4418_v6 = vpack.c.bf16 %v2087_v13, %v2086_v9  ;;  %v2089_v56 = vld [vmem:[%s6479_s10 + $0x388] sm:$0xf]  ;;  %v3070_v13 = vld [vmem:[%s6481_s12 + $0x50] sm:$0xff] }
0x16aa   :  { %4463 = vmatprep.subr.bf16.mxu0 %v6490_v48  ;;  %v2031_v48 = vld [vmem:[%s6479_s10 + $0x1b8] sm:$0xff]  ;;  %v3061_v9 = vld [vmem:[%s6481_s12 + $0x8] sm:$0xff] }
0x16ab   :  { %v5987_v39 = vpack.c.bf16 %v2031_v48, %v2030_v5  ;;  %v6007_v5 = vld [vmem:[%s6471_s2 + $0x8] ss:$12 sps:$4 sm:$0xff]   ;;  %v6554_v48 = vmov 0.0   ;;  %s3415_s2 = sshll.u32 %s4767_s19, 4  ;;  %s3416_s2 = int_to_ptr.vmem [resolvable:$true] %s3415_s2 }
0x16ac   :  { %2469 = vmatmul.mubr.f32.gmra.mrb[22].mxu0 %v5780_v3  ;;  %p4739_p1 = scmp.lt.s32.totalorder %s3416_s2, %s3416_s2 }
0x16ad   :  { %4465 = vmatpush3.bf16.msra.mxu0 %v5968_v12  ;;  %3961 = vmatprep.mubr.msk.f32.mxu0 %vm4766_vm8, %v6554_v48 }
0x16ae   :  { %4466 = vmatprep.subr.bf16.mxu0 %v6553_v19 }
0x16b1   :  { %4469 = vmatpush3.bf16.msk.msra.mxu0 %vm4902_vm2, %v5985_v47 }
0x16b2   :  { %4471 = vmatprep.subr.bf16.mxu0 %v5987_v39 }
0x16b4   :  { %3962 = vmatmul.mubr.msk.f32.vlgmr.msra.gmra.mrb[24].mxu0 %vm131_vm3, %v6007_v5 }
0x16b5   :  { %4473 = vmatpush3.bf16.msra.mxu0 %v6012_v8  ;;  %2807 = vmatprep.mubr.f32.mxu0 %v6017_v33 }
0x16b6   :  { %4475 = vmatprep.subr.bf16.mxu0 %v6019_v10 }
0x16b9   :  { %4477 = vmatpush3.bf16.msra.mxu0 %v6038_v38 }
0x16ba   :  { %4479 = vmatprep.subr.bf16.mxu0 %v6040_v44 }
0x16bd   :  { %4481 = vmatpush3.bf16.msra.mxu0 %v6056_v15 }
0x16be   :  { %4483 = vmatprep.subr.bf16.mxu0 %v6058_v24 }
0x16c1   :  { %4485 = vmatpush3.bf16.msra.mxu0 %v6074_v36 }
0x16c2   :  { %4487 = vmatprep.subr.bf16.mxu0 %v6076_v49 }
0x16c5   :  { %4489 = vmatpush3.bf16.msra.mxu0 %v6092_v28 }
0x16c6   :  { %4491 = vmatprep.subr.bf16.mxu0 %v6094_v46 }
0x16c9   :  { %4493 = vmatpush3.bf16.msra.mxu0 %v4358_v18 }
0x16ca   :  { %4495 = vmatprep.subr.bf16.mxu0 %v4360_v58 }
0x16cd   :  { %4497 = vmatpush3.bf16.msra.mxu0 %v4362_v42 }
0x16ce   :  { %4499 = vmatprep.subr.bf16.mxu0 %v4364_v0 }
0x16d1   :  { %4501 = vmatpush3.bf16.msra.mxu0 %v4366_v50 }
0x16d2   :  { %4544 = vmatprep.subr.bf16.mxu0 %v6553_v19 }
0x16d4   :  { %2808 = vmatmul.mubr.f32.vlgmr.msra.gmra.mrb[26].mxu0 %v6137_v26 }
0x16d5   :  { %4546 = vmatpush3.bf16.msra.mxu0 %v4414_v54  ;;  %3991 = vmatprep.mubr.msk.f32.mxu0 %vm4766_vm8, %v6554_v48 }
0x16d6   :  { %4547 = vmatprep.subr.bf16.mxu0 %v6553_v19 }
0x16d9   :  { %v1749_v53 = vpop.permute.xlu1 %1748  ;;  %4549 = vmatpush3.bf16.msra.mxu0 %v4418_v6 }
0x16da   :  { %v1751_v25 = vsel %vm677_vm13, %v6153_v27, %v1749_v53  ;;  %4550 = vmatprep.subr.bf16.mxu0 %v6553_v19 }
0x16db   :  { %3451 = vmatmul.mubr.msk.f32.vlgmr.msra.gmra.mrb[12].mxu1 %vm536_vm14, %v1751_v25  ;;  %v4422_v25 = vpack.c.bf16 %v2089_v56, %v2088_v43  ;;  %v6556_v43 = vld [vmem:[#allocation20_spill] sm:$0xff] }
0x16dc   :  { %4325 = vmatpush3.bf16.msra.mxu1 %v5591_v16  ;;  %3916 = vmatprep.mubr.msk.f32.mxu1 %vm131_vm3, %v5793_v52  ;;  %v6560_v16 = vld [vmem:[#allocation24_spill] sm:$0xff] }
0x16dd   :  { %4327 = vmatprep.subr.bf16.mxu1 %v5968_v12  ;;  %4553 = vmatpush3.bf16.msk.msra.mxu0 %vm4902_vm2, %v4422_v25 }
0x16de   :  { %4554 = vmatprep.subr.bf16.mxu0 %v6553_v19 }
0x16e0   :  { %4329 = vmatpush3.bf16.msra.mxu1 %v5968_v12  ;;  %3992 = vmatmul.mubr.msk.f32.vlgmr.msra.gmra.mrb[28].mxu0 %vm131_vm3, %v6007_v5 }
0x16e1   :  { %4332 = vmatprep.subr.msk.bf16.mxu1 %vm4902_vm2, %v5985_v47  ;;  %4010 = vmatprep.mubr.msk.f32.mxu0 %vm4766_vm8, %v6554_v48 }
0x16e4   :  { %4335 = vmatpush3.bf16.msk.msra.mxu1 %vm4902_vm2, %v5985_v47 }
0x16e5   :  { %4337 = vmatprep.subr.bf16.mxu1 %v5987_v39  ;;  %v6557_v39 = vld [vmem:[#allocation21_spill] sm:$0xff] }
0x16e7   :  { %3917 = vmatmul.mubr.msk.f32.vlgmr.msra.gmra.mrb[14].mxu1 %vm131_vm3, %v5825_v40 }
0x16e8   :  { %4339 = vmatpush3.bf16.msra.mxu1 %v6012_v8  ;;  %2310 = vmatprep.mubr.f32.mxu1 %v5562_v30  ;;  %v6559_v30 = vld [vmem:[#allocation23_spill] sm:$0xff] }
0x16e9   :  { %4341 = vmatprep.subr.bf16.mxu1 %v6019_v10  ;;  %v6555_v10 = vld [vmem:[#allocation19_spill] sm:$0xff] }
0x16ea   :  { %v6571_v8 = vld [vmem:[#allocation11_spill] sm:$0xff] }
0x16ec   :  { %4343 = vmatpush3.bf16.msra.mxu1 %v6038_v38 }
0x16ed   :  { %4345 = vmatprep.subr.bf16.mxu1 %v6040_v44 }
0x16f0   :  { %4347 = vmatpush3.bf16.msra.mxu1 %v6056_v15  ;;  %v6572_v15 = vld [vmem:[#allocation12_spill] sm:$0xff] }
0x16f1   :  { %4349 = vmatprep.subr.bf16.mxu1 %v6058_v24 }
0x16f4   :  { %4351 = vmatpush3.bf16.msra.mxu1 %v6074_v36 }
0x16f5   :  { %4353 = vmatprep.subr.bf16.mxu1 %v6076_v49 }
0x16f8   :  { %4355 = vmatpush3.bf16.msra.mxu1 %v6092_v28  ;;  %v3068_v28 = vld [vmem:[%s6481_s12 + $0x40] sm:$0xff] }
0x16f9   :  { %4357 = vmatprep.subr.bf16.mxu1 %v6094_v46  ;;  %v3069_v46 = vld [vmem:[%s6481_s12 + $0x48] sm:$0xff] }
0x16fa   :  { %v4555_v41 = vpack.c.bf16 %v3069_v46, %v3068_v28 }
0x16fc   :  { %4359 = vmatpush3.bf16.msra.mxu1 %v4358_v18  ;;  %4556 = vmatpush3.bf16.msra.mxu0 %v4555_v41 }
0x16fd   :  { %4361 = vmatprep.subr.bf16.mxu1 %v4360_v58  ;;  %v6573_v58 = vld [vmem:[#allocation9_spill] sm:$0xff]  ;;  %4557 = vmatprep.subr.bf16.mxu0 %v6553_v19 }
0x1700   :  { %4363 = vmatpush3.bf16.msra.mxu1 %v4362_v42 }
0x1701   :  { %4365 = vmatprep.subr.bf16.mxu1 %v4364_v0 }
0x1704   :  { %4367 = vmatpush3.bf16.msra.mxu1 %v4366_v50 }
0x1705   :  { %4415 = vmatprep.subr.bf16.mxu1 %v4414_v54 }
0x1707   :  { %2311 = vmatmul.mubr.f32.vlgmr.msra.gmra.mrb[16].mxu1 %v5758_v20 }
0x1708   :  { %4417 = vmatpush3.bf16.msra.mxu1 %v4414_v54  ;;  %2315 = vmatprep.mubr.f32.mxu1 %v5771_v51  ;;  %v3060_v54 = vld [vmem:[%s6481_s12] sm:$0xff] }
0x1709   :  { %4419 = vmatprep.subr.bf16.mxu1 %v4418_v6 }
0x170b   :  { %2316 = vmatmul.mubr.f32.gmra.mrb[18].mxu1 %v5780_v3 }
0x170c   :  { %4421 = vmatpush3.bf16.msra.mxu1 %v4418_v6  ;;  %3946 = vmatprep.mubr.msk.f32.mxu1 %vm131_vm3, %v5793_v52 }
0x170d   :  { %4424 = vmatprep.subr.msk.bf16.mxu1 %vm4902_vm2, %v4422_v25 }
0x1710   :  { %4427 = vmatpush3.bf16.msk.msra.mxu1 %vm4902_vm2, %v4422_v25  ;;  %v4567_v25 = vpack.c.bf16 %v3061_v9, %v3060_v54 }
0x1711   :  { %4429 = vmatprep.subr.bf16.mxu1 %v5602_v34  ;;  %v6561_v34 = vld [vmem:[#allocation25_spill] sm:$0xff] }
0x1713   :  { %3947 = vmatmul.mubr.msk.f32.vlgmr.msra.gmra.mrb[20].mxu1 %vm131_vm3, %v5825_v40 }
0x1714   :  { %4431 = vmatpush3.bf16.msra.mxu1 %v5608_v60  ;;  %2664 = vmatprep.mubr.f32.mxu1 %v6017_v33  ;;  %v6562_v60 = vld [vmem:[#allocation26_spill] sm:$0xff] }
0x1715   :  { %4433 = vmatprep.subr.bf16.mxu1 %v5621_v63  ;;  %v6563_v63 = vld [vmem:[#allocation27_spill] sm:$0xff] }
0x1718   :  { %4435 = vmatpush3.bf16.msra.mxu1 %v5626_v21  ;;  %v6564_v21 = vld [vmem:[#allocation28_spill] sm:$0xff] }
0x1719   :  { %4437 = vmatprep.subr.bf16.mxu1 %v5640_v2  ;;  %v6565_v2 = vld [vmem:[#allocation29_spill] sm:$0xff] }
0x171c   :  { %4439 = vmatpush3.bf16.msra.mxu1 %v5650_v7  ;;  %v6566_v7 = vld [vmem:[#allocation30_spill] sm:$0xff] }
0x171d   :  { %4441 = vmatprep.subr.bf16.mxu1 %v5665_v11 }
0x1720   :  { %4443 = vmatpush3.bf16.msra.mxu1 %v5670_v22 }
0x1721   :  { %4445 = vmatprep.subr.bf16.mxu1 %v5683_v31 }
0x1724   :  { %4447 = vmatpush3.bf16.msra.mxu1 %v5688_v61 }
0x1725   :  { %4449 = vmatprep.subr.bf16.mxu1 %v5701_v45  ;;  %v6567_v45 = vld [vmem:[#allocation5_spill] sm:$0xff] }
0x1728   :  { %4451 = vmatpush3.bf16.msra.mxu1 %v5706_v35 }
0x1729   :  { %4453 = vmatprep.subr.bf16.mxu1 %v5719_v62  ;;  %v6568_v62 = vld [vmem:[#allocation7_spill] sm:$0xff] }
0x172c   :  { %4455 = vmatpush3.bf16.msra.mxu1 %v5724_v55 }
0x172d   :  { %4457 = vmatprep.subr.bf16.mxu1 %v5737_v4  ;;  %v6569_v4 = vld [vmem:[#allocation6_spill] sm:$0xff] }
0x1730   :  { %4459 = vmatpush3.bf16.msra.mxu1 %v5742_v59 }
0x1731   :  { %4502 = vmatprep.subr.bf16.mxu1 %v6553_v19 }
0x1733   :  { %2665 = vmatmul.mubr.f32.vlgmr.msra.gmra.mrb[22].mxu1 %v6137_v26 }
0x1734   :  { %4504 = vmatpush3.bf16.msra.mxu1 %v5752_v14  ;;  %3976 = vmatprep.mubr.msk.f32.mxu1 %vm4766_vm8, %v6554_v48  ;;  %v6570_v14 = vld [vmem:[#allocation8_spill] sm:$0xff] }
0x1735   :  { %4505 = vmatprep.subr.bf16.mxu1 %v6553_v19 }
0x1738   :  { %4507 = vmatpush3.bf16.msra.mxu1 %v5774_v1 }
0x1739   :  { %4508 = vmatprep.subr.bf16.mxu1 %v6553_v19 }
0x173c   :  { %4511 = vmatpush3.bf16.msk.msra.mxu1 %vm4902_vm2, %v5797_v17  ;;  %vm2565_vm2 = vcmask 521216  }
0x173d   :  { %4513 = vmatprep.subr.bf16.mxu1 %v5814_v32 }
0x173f   :  { %3977 = vmatmul.mubr.msk.f32.vlgmr.msra.gmra.mrb[24].mxu1 %vm131_vm3, %v6007_v5  ;;  %vm3043_vm3 = vcmask 517120  }
0x1740   :  { %4515 = vmatpush3.bf16.msra.mxu1 %v5819_v37  ;;  %2949 = vmatprep.mubr.f32.mxu1 %v6017_v33 }
0x1741   :  { %4517 = vmatprep.subr.bf16.mxu1 %v5840_v29 }
0x1744   :  { %4519 = vmatpush3.bf16.msra.mxu1 %v5845_v57 }
0x1745   :  { %4521 = vmatprep.subr.bf16.mxu1 %v6555_v10  ;;  %v3071_v10 = vld [vmem:[%s6481_s12 + $0x58] sm:$0xff] }
0x1748   :  { %4523 = vmatpush3.bf16.msra.mxu1 %v6556_v43  ;;  %v3062_v43 = vld [vmem:[%s6481_s12 + $0x10] sm:$0xff] }
0x1749   :  { %4525 = vmatprep.subr.bf16.mxu1 %v6557_v39  ;;  %v3063_v39 = vld [vmem:[%s6481_s12 + $0x18] sm:$0xff] }
0x174c   :  { %4527 = vmatpush3.bf16.msra.mxu1 %v6558_v23  ;;  %v1738_v23 = vpop.permute.xlu0 %1737 }
0x174d   :  { %4529 = vmatprep.subr.bf16.mxu1 %v6559_v30 }
0x174f   :  { %v3606_v36 = vpop.f32.mrb[14].mxu0 }
0x1750   :  { %4531 = vmatpush3.bf16.msra.mxu1 %v6560_v16  ;;  %v3607_v0 = vpop.f32.mrb[15].mxu0 }
0x1751   :  { %4533 = vmatprep.subr.bf16.mxu1 %v6561_v34  ;;  %v3608_v53 = vadd.f32 %v3607_v0, %v3606_v36  ;;  %v4558_v34 = vpack.c.bf16 %v3071_v10, %v3070_v13 }
0x1753   :  { %v3609_v56 = vpop.f32.mrb[16].mxu0  ;;  %4559 = vmatpush3.bf16.msra.mxu0 %v4558_v34 }
0x1754   :  { %4535 = vmatpush3.bf16.msra.mxu1 %v6562_v60  ;;  %v3610_v16 = vpop.f32.mrb[17].mxu0  ;;  %v6574_v60 = vld [vmem:[#allocation17_spill] sm:$0xff]  ;;  %4560 = vmatprep.subr.bf16.mxu0 %v6553_v19 }
0x1755   :  { %4537 = vmatprep.subr.bf16.mxu1 %v6563_v63  ;;  %v1724_v63 = vrot.slane %v6574_v60, 6 }
0x1758   :  { %4539 = vmatpush3.bf16.msra.mxu1 %v6564_v21  ;;  %v3611_v21 = vadd.f32 %v3610_v16, %v3609_v56 }
0x1759   :  { %4541 = vmatprep.subr.bf16.mxu1 %v6565_v2 }
0x175c   :  { %4543 = vmatpush3.bf16.msra.mxu1 %v6566_v7  ;;  %v3933_v7 = vpop.f32.mrb[18].mxu0 }
0x175d   :  { %4566 = vmatprep.subr.bf16.mxu1 %v6553_v19 }
0x175f   :  { %2950 = vmatmul.mubr.f32.vlgmr.msra.gmra.mrb[26].mxu1 %v6137_v26 }
0x1760   :  { %4029 = vmatprep.mubr.msk.f32.mxu1 %vm4766_vm8, %v6554_v48  ;;  %4568 = vmatpush3.bf16.msra.mxu1 %v4567_v25 }
0x1761   :  { %4569 = vmatprep.subr.bf16.mxu1 %v6553_v19 }
0x17ae   :  { %v1825_v11 = vpop.f32.mrb[12].mxu1 }
0x17af   :  { %v1832_v22 = vrot.slane %v1825_v11, 1  ;;  %v1827_v31 = vpop.f32.mrb[13].mxu1  ;;  %v4570_v11 = vpack.c.bf16 %v3063_v39, %v3062_v43 }
0x17b0   :  { %v1833_v61 = vrot.slane %v1827_v31, 1  ;;  %v3073_v31 = vld [vmem:[%s6481_s12 + $0x68] sm:$0xff] }
0x17b1   :  { %v1836_v35 = vadd.f32 %v1832_v22, %v6567_v45  ;;  %v1838_v55 = vadd.f32 %v1832_v22, %v6568_v62  ;;  %v3072_v22 = vld [vmem:[%s6481_s12 + $0x60] sm:$0xff]  ;;  %4571 = vmatpush3.bf16.msra.mxu1 %v4570_v11 }
0x17b2   :  { %v1837_v59 = vadd.f32 %v1833_v61, %v6569_v4  ;;  %v1839_v20 = vadd.f32 %v1833_v61, %v6570_v14  ;;  %v6575_v61 = vld [vmem:[#allocation10_spill] sm:$0xff]  ;;  %v3064_v62 = vld [vmem:[%s6481_s12 + $0x20] sm:$0xff]  ;;  %v6576_v4 = vld [vmem:[#allocation15_spill] sm:$0xff]  ;;  %4572 = vmatprep.subr.bf16.mxu1 %v6553_v19 }
0x17b3   :  { %v3452_v51 = vmul.f32 -1.442695, %v1836_v35  ;;  %v3454_v1 = vmul.f32 -1.442695, %v1838_v55  ;;  %v2387_v35 = vpop.f32.mrb[19].mxu0  ;;  %v3065_v55 = vld [vmem:[%s6481_s12 + $0x28] sm:$0xff]  ;;  %v1740_v14 = vsel %vm1722_vm7, %v1738_v23, %v6576_v4 }
0x17b4   :  { %v3453_v3 = vmul.f32 -1.442695, %v1837_v59  ;;  %v3455_v52 = vmul.f32 -1.442695, %v1839_v20  ;;  %v6577_v59 = vld [vmem:[#allocation13_spill] sm:$0xff] }
0x17b5   :  { %4702 = vpow2.f32 %v3452_v51  ;;  %v3698_v51 = vpop.f32.mrb[20].mxu0  ;;  %vm1951_vm10 = vcmp.gt.s32.totalorder %v6577_v59, 7  ;;  %v3481_v59 = vld [vmem:[%s6484_s15] ss:$0 sm:$0xff] }
0x17b6   :  { %4704 = vpow2.f32 %v3454_v1  ;;  %v3699_v1 = vpop.f32.mrb[21].mxu0 }
0x17b7   :  { %4706 = vpow2.f32 %v3453_v3  ;;  %v4561_v3 = vpack.c.bf16 %v3073_v31, %v3072_v22 }
0x17b8   :  { %4708 = vpow2.f32 %v3455_v52 }
0x17b9   :  { %4562 = vmatpush3.bf16.msra.mxu0 %v4561_v3 }
0x17ba   :  { %v3918_v49 = vpop.f32.mrb[14].mxu1  ;;  %4563 = vmatprep.subr.bf16.mxu0 %v6553_v19 }
0x17bb   :  { %v2234_v26 = vpop.f32.mrb[15].mxu1  ;;  %v2240_v20 = vadd.f32 %v3918_v49, %v3611_v21 }
0x17bc   :  { %v2235_v2 = vadd.f32 %v3608_v53, %v2234_v26 }
0x17bf   :  { %v4703_v17 = vpop.eup %4702 }
0x17c0   :  { %v4705_v32 = vpop.eup %4704  ;;  %v1852_v37 = vadd.f32 1.0, %v4703_v17  ;;  %v3700_v17 = vadd.f32 %v3699_v1, %v3698_v51 }
0x17c1   :  { %v4707_v40 = vpop.eup %4706  ;;  %v1854_v6 = vadd.f32 1.0, %v4705_v32  ;;  %v3701_v32 = vpop.f32.mrb[22].mxu0 }
0x17c2   :  { %v4709_v29 = vpop.eup %4708  ;;  %v1853_v57 = vadd.f32 1.0, %v4707_v40  ;;  %4710 = vrcp.f32 %v1852_v37  ;;  %v4573_v37 = vpack.c.bf16 %v3065_v55, %v3064_v62  ;;  %v1900_v40 = vrot.slane %v1740_v14, 1 }
0x17c3   :  { %v1855_v50 = vadd.f32 1.0, %v4709_v29 }
0x17c4   :  { %4712 = vrcp.f32 %v1853_v57  ;;  %v3702_v57 = vpop.f32.mrb[23].mxu0  ;;  %4574 = vmatpush3.bf16.msra.mxu1 %v4573_v37 }
0x17c5   :  { %4714 = vrcp.f32 %v1855_v50  ;;  %v3703_v50 = vadd.f32 %v3702_v57, %v3701_v32  ;;  %4575 = vmatprep.subr.bf16.mxu1 %v6553_v19 }
0x17c6   :  { %4716 = vrcp.f32 %v1854_v6 }
0x17cc   :  { %v4711_v12 = vpop.eup %4710 }
0x17cd   :  { %v1864_v42 = vmul.f32 %v4711_v12, %v6573_v58  ;;  %v2736_v12 = vpop.f32.mrb[24].mxu0 }
0x17ce   :  { %v4713_v47 = vpop.eup %4712 }
0x17cf   :  { %v4715_v5 = vpop.eup %4714  ;;  %v1865_v33 = vmul.f32 %v4713_v47, %v6571_v8  ;;  %v6311_v45 = vadd.f32 %v1864_v42, %v6575_v61 }
0x17d0   :  { %v1867_v38 = vmul.f32 %v4715_v5, %v6571_v8  ;;  %v4717_v44 = vpop.eup %4716  ;;  %v3963_v5 = vpop.f32.mrb[25].mxu0 }
0x17d1   :  { %v6267_v24 = vadd.f32 %v1865_v33, %v6572_v15  ;;  %v1866_v30 = vmul.f32 %v4717_v44, %v6573_v58  ;;  %v3786_v8 = vpop.f32.mrb[26].mxu0 }
0x17d2   :  { %v6276_v18 = vadd.f32 %v1867_v38, %v6572_v15  ;;  %v3787_v44 = vpop.f32.mrb[27].mxu0 }
0x17d3   :  { %1908 = vrot.lane.b32.xlu1 %v6267_v24, %s4762_s7  ;;  %v6327_v52 = vadd.f32 %v1866_v30, %v6575_v61  ;;  %v3788_v36 = vadd.f32 %v3787_v44, %v3786_v8  ;;  %v3021_v49 = vpop.f32.mrb[28].mxu0  ;;  %v3066_v44 = vld [vmem:[%s6481_s12 + $0x30] sm:$0xff] }
0x17d4   :  { %1910 = vrot.lane.b32.xlu0 %v6276_v18, %s4762_s7  ;;  %v3993_v58 = vpop.f32.mrb[29].mxu0 }
0x17d7   :  { %1725 = vrot.lane.b32.xlu1 %v1724_v63, %s4764_s3 }
0x17d8   :  { %1881 = vrot.lane.b32.xlu0 %v6311_v45, %s4762_s7 }
0x17da   :  { %v3652_v29 = vpop.f32.mrb[16].mxu1 }
0x17db   :  { %1883 = vrot.lane.b32.xlu1 %v6327_v52, %s4762_s7  ;;  %v3653_v6 = vpop.f32.mrb[17].mxu1 }
0x17dc   :  { %1901 = vrot.lane.b32.xlu0 %v1900_v40, %s4763_s25  ;;  %v3654_v47 = vadd.f32 %v3653_v6, %v3652_v29 }
0x17de   :  { %v2388_v33 = vadd.f32 %v3654_v47, %v2387_v35  ;;  %v3655_v38 = vpop.f32.mrb[18].mxu1 }
0x17df   :  { %v3656_v15 = vpop.f32.mrb[19].mxu1 }
0x17e0   :  { %v2551_v28 = vrot.slane %v2388_v33, 1  ;;  %v3657_v46 = vadd.f32 %v3656_v15, %v3655_v38  ;;  %v3074_v33 = vld [vmem:[%s6481_s12 + $0x70] sm:$0xff]  ;;  %v3075_v38 = vld [vmem:[%s6481_s12 + $0x78] sm:$0xff] }
0x17e2   :  { %v2555_v42 = vadd.f32 %v2551_v28, %v2235_v2  ;;  %v2393_v0 = vadd.f32 %v3933_v7, %v3657_v46  ;;  %v3067_v28 = vld [vmem:[%s6481_s12 + $0x38] sm:$0xff]  ;;  %v3465_v46 = vld [vmem:[%s6480_s11] ss:$0 sm:$0xff] }
0x17e4   :  { %v2552_v26 = vrot.slane %v2393_v0, 1 }
0x17e6   :  { %v2556_v41 = vadd.f32 %v2552_v26, %v2240_v20  ;;  %v3948_v54 = vpop.f32.mrb[20].mxu1 }
0x17e7   :  { %v2546_v9 = vadd.f32 %v3948_v54, %v3703_v50  ;;  %v2540_v13 = vpop.f32.mrb[21].mxu1 }
0x17e8   :  { %v2541_v53 = vadd.f32 %v3700_v17, %v2540_v13 }
0x17e9   :  { %v2560_v56 = vrot.slane %v2546_v9, 2 }
0x17ea   :  { %v2559_v25 = vrot.slane %v2541_v53, 2 }
0x17eb   :  { %v2564_v10 = vadd.f32 %v2560_v56, %v2556_v41 }
0x17ec   :  { %v2563_v43 = vadd.f32 %v2559_v25, %v2555_v42  ;;  %v4576_v42 = vpack.c.bf16 %v3067_v28, %v3066_v44  ;;  %v3076_v44 = vld [vmem:[%s6483_s14] sm:$0xff]  ;;  %v3079_v28 = vld [vmem:[%s6483_s14 + $0x18] sm:$0xff] }
0x17ed   :  { %v2573_v61 = vsel %vm2565_vm2, %v2564_v10, -inf }
0x17ee   :  { %v2566_v35 = vsel %vm2565_vm2, %v2563_v43, -inf  ;;  %v2574_v62 = vrot.slane %v2573_v61, 4  ;;  %4577 = vmatpush3.bf16.msra.mxu1 %v4576_v42  ;;  %v3081_v42 = vld [vmem:[%s6483_s14 + $0x28] sm:$0xff] }
0x17ef   :  { %v2567_v55 = vrot.slane %v2566_v35, 4  ;;  %4590 = vmatprep.subr.bf16.mxu1 %v6553_v19 }
0x17f0   :  { %v2575_v4 = vmax.f32 %v2573_v61, %v2574_v62 }
0x17f1   :  { %v2568_v14 = vmax.f32 %v2566_v35, %v2567_v55 }
0x17f2   :  { %v2576_v20 = vrot.slane %v2575_v4, 2 }
0x17f3   :  { %v2569_v51 = vrot.slane %v2568_v14, 2 }
0x17f4   :  { %v2577_v1 = vmax.f32 %v2575_v4, %v2576_v20 }
0x17f5   :  { %v2570_v3 = vmax.f32 %v2568_v14, %v2569_v51 }
0x17f6   :  { %v2578_v40 = vrot.slane %v2577_v1, 1 }
0x17f7   :  { %v2571_v29 = vrot.slane %v2570_v3, 1 }
0x17f9   :  { %v2572_v47 = vmax.f32 %v2570_v3, %v2571_v29 }
0x17fb   :  { %v2587_v41 = vadd.f32 %v3465_v46, %v2572_v47 }
0x1806   :  { %v3744_v39 = vpop.f32.mrb[22].mxu1 }
0x1807   :  { %v3745_v23 = vpop.f32.mrb[23].mxu1 }
0x1808   :  { %v3746_v30 = vadd.f32 %v3745_v23, %v3744_v39 }
0x180a   :  { %v2737_v16 = vadd.f32 %v3746_v30, %v2736_v12  ;;  %v2579_v12 = vmax.f32 %v2577_v1, %v2578_v40 }
0x180c   :  { %v2741_v21 = vcombine.high %v2737_v16, %v2737_v16  ;;  %v2588_v0 = vadd.f32 %v3465_v46, %v2579_v12 }
0x180e   :  { %v3170_v13 = vrot.slane %v2588_v0, 7 }
0x1810   :  { %v3171_v25 = vsel %vm528_vm4, %v3170_v13, %v2587_v41 }
0x1811   :  { %4030 = vmatmul.mubr.msk.f32.vlgmr.msra.gmra.mrb[28].mxu1 %vm536_vm14, %v3171_v25 }
0x1812   :  { %v2879_v34 = vpop.f32.mrb[24].mxu1  ;;  %4067 = vmatprep.mubr.msk.f32.mxu1 %vm4766_vm8, %v6554_v48 }
0x1813   :  { %v2880_v60 = vadd.f32 %v3788_v36, %v2879_v34  ;;  %v3978_v63 = vpop.f32.mrb[25].mxu1 }
0x1815   :  { %v2884_v2 = vcombine.high %v2880_v60, %v2880_v60  ;;  %v3472_v7 = vrot.slane %v2880_v60, 9 }
0x1817   :  { %v3473_v11 = vrot.slane %v2884_v2, 9  ;;  %v3033_v22 = vadd.f32 %v3472_v7, %v2737_v16 }
0x1819   :  { %v3034_v31 = vadd.f32 %v3473_v11, %v2741_v21 }
0x1832   :  { %v3828_v17 = vpop.f32.mrb[26].mxu1 }
0x1833   :  { %v3829_v32 = vpop.f32.mrb[27].mxu1 }
0x1834   :  { %v3830_v37 = vadd.f32 %v3829_v32, %v3828_v17 }
0x1836   :  { %v3022_v57 = vadd.f32 %v3830_v37, %v3021_v49  ;;  %v4564_v49 = vpack.c.bf16 %v3075_v38, %v3074_v33 }
0x1838   :  { %v3026_v6 = vcombine.high %v3022_v57, %v3022_v57  ;;  %v3474_v50 = vrot.slane %v3022_v57, 10  ;;  %4565 = vmatpush3.bf16.msra.mxu0 %v4564_v49  ;;  %v3078_v49 = vld [vmem:[%s6483_s14 + $0x10] sm:$0xff] }
0x1839   :  { %4578 = vmatprep.subr.bf16.mxu0 %v6553_v19 }
0x183a   :  { %v3475_v5 = vrot.slane %v3026_v6, 10  ;;  %v3041_v8 = vadd.f32 %v3474_v50, %v3033_v22  ;;  %v6578_v22 = vld [vmem:[#allocation16_spill] sm:$0xff] }
0x183c   :  { %v3042_v15 = vadd.f32 %v3475_v5, %v3034_v31  ;;  %v3044_v36 = vsel %vm3043_vm3, %v3041_v8, -inf  ;;  %v6579_v31 = vld [vmem:[#allocation14_spill] sm:$0xff] }
0x183d   :  { %v3045_v58 = vrot.slane %v3044_v36, 4  ;;  %vm1950_vm11 = vcmp.gt.s32.totalorder %v6579_v31, 7 }
0x183e   :  { %v3051_v26 = vsel %vm3043_vm3, %v3042_v15, -inf  ;;  %v3077_v15 = vld [vmem:[%s6483_s14 + $0x8] sm:$0xff] }
0x183f   :  { %v3046_v54 = vmax.f32 %v3044_v36, %v3045_v58  ;;  %v3052_v9 = vrot.slane %v3051_v26, 4  ;;  %v4591_v36 = vpack.c.bf16 %v3077_v15, %v3076_v44  ;;  %v3080_v58 = vld [vmem:[%s6483_s14 + $0x20] sm:$0xff] }
0x1840   :  { %v4597_v41 = vpack.c.bf16 %v3081_v42, %v3080_v58 }
0x1841   :  { %v3047_v53 = vrot.slane %v3046_v54, 2  ;;  %v3053_v56 = vmax.f32 %v3051_v26, %v3052_v9  ;;  %4592 = vmatpush3.bf16.msra.mxu1 %v4591_v36  ;;  %v3083_v9 = vld [vmem:[%s6483_s14 + $0x38] sm:$0xff] }
0x1842   :  { %4593 = vmatprep.subr.bf16.mxu1 %v6553_v19 }
0x1843   :  { %v3048_v10 = vmax.f32 %v3046_v54, %v3047_v53  ;;  %v3054_v43 = vrot.slane %v3053_v56, 2  ;;  %v3082_v54 = vld [vmem:[%s6483_s14 + $0x30] sm:$0xff] }
0x1844   :  { %v4600_v13 = vpack.c.bf16 %v3083_v9, %v3082_v54 }
0x1845   :  { %v1909_v39 = vpop.permute.xlu1 %1908  ;;  %v3049_v23 = vrot.slane %v3048_v10, 1  ;;  %v3055_v30 = vmax.f32 %v3053_v56, %v3054_v43 }
0x1846   :  { %v1911_v16 = vpop.permute.xlu0 %1910  ;;  %v1914_v34 = vmul.f32 %v1909_v39, %v6267_v24 }
0x1847   :  { %v1915_v60 = vmul.f32 %v1911_v16, %v6276_v18  ;;  %v3050_v63 = vmax.f32 %v3048_v10, %v3049_v23  ;;  %v3056_v21 = vrot.slane %v3055_v30, 1  ;;  %v3478_v10 = vld [vmem:[%s6482_s13] ss:$0 sm:$0xff] }
0x1848   :  { %1918 = vrot.lane.b32.xlu1 %v1914_v34, %s4763_s25 }
0x1849   :  { %1920 = vrot.lane.b32.xlu0 %v1915_v60, %s4763_s25  ;;  %v1726_v2 = vpop.permute.xlu1 %1725  ;;  %v3057_v7 = vmax.f32 %v3055_v30, %v3056_v21  ;;  %v3058_v55 = vadd.f32 %v3465_v46, %v3050_v63  ;;  %v3084_v21 = vld [vmem:[%s6483_s14 + $0x40] sm:$0xff] }
0x184a   :  { %v1882_v11 = vpop.permute.xlu0 %1881  ;;  %v1728_v61 = vsel %vm1721_vm9, %v1726_v2, %v6578_v22  ;;  %v3085_v2 = vld [vmem:[%s6483_s14 + $0x48] sm:$0xff] }
0x184b   :  { %v1887_v35 = vmul.f32 %v1882_v11, %v6311_v45  ;;  %v1873_v62 = vrot.slane %v1728_v61, 1  ;;  %v3059_v4 = vadd.f32 %v3465_v46, %v3057_v7  ;;  %v4594_v46 = vpack.c.bf16 %v3079_v28, %v3078_v49  ;;  %v3086_v7 = vld [vmem:[%s6483_s14 + $0x50] sm:$0xff] }
0x184c   :  { %v4579_v22 = vpack.c.bf16 %v3085_v2, %v3084_v21 }
0x184d   :  { %1891 = vrot.lane.b32.xlu0 %v1887_v35, %s4763_s25  ;;  %1874 = vrot.lane.b32.xlu1 %v1873_v62, %s4763_s25  ;;  %v1884_v14 = vpop.permute.xlu1 %1883  ;;  %v3094_v20 = vrot.slane %v3059_v4, 7  ;;  %v3088_v62 = vld [vmem:[%s6483_s14 + $0x60] sm:$0xff] }
0x184e   :  { %v1888_v51 = vmul.f32 %v1884_v14, %v6327_v52  ;;  %v1902_v3 = vpop.permute.xlu0 %1901  ;;  %4595 = vmatpush3.bf16.msra.mxu1 %v4594_v46 }
0x184f   :  { %v3095_v1 = vsel %vm528_vm4, %v3094_v20, %v3058_v55  ;;  %v1904_v17 = vmul.f32 %v1902_v3, %v6267_v24  ;;  %v1905_v32 = vmul.f32 %v1902_v3, %v6276_v18  ;;  %4596 = vmatprep.subr.bf16.mxu1 %v6553_v19  ;;  %vm1954_vm4 = vcmask 1040384   ;;  %v3089_v55 = vld [vmem:[%s6483_s14 + $0x68] sm:$0xff]  ;;  %v3090_v3 = vld [vmem:[%s6483_s14 + $0x70] sm:$0xff] }
0x1850   :  { %4011 = vmatmul.mubr.msk.f32.vlgmr.msra.gmra.mrb[30].mxu0 %vm536_vm14, %v3095_v1 }
0x1851   :  { %1893 = vrot.lane.b32.xlu1 %v1888_v51, %s4763_s25  ;;  %4048 = vmatprep.mubr.msk.f32.mxu0 %vm4766_vm8, %v6554_v48  ;;  %v4585_v51 = vpack.c.bf16 %v3089_v55, %v3088_v62 }
0x1852   :  { %4598 = vmatpush3.bf16.msra.mxu1 %v4597_v41  ;;  %4580 = vmatpush3.bf16.msra.mxu0 %v4579_v22 }
0x1853   :  { %4599 = vmatprep.subr.bf16.mxu1 %v6553_v19  ;;  %4581 = vmatprep.subr.bf16.mxu0 %v6553_v19 }
0x1856   :  { %4601 = vmatpush3.bf16.msra.mxu1 %v4600_v13 }
0x18ba   :  { %v1919_v37 = vpop.permute.xlu1 %1918 }
0x18bb   :  { %v1921_v40 = vpop.permute.xlu0 %1920  ;;  %v1924_v29 = vadd.f32 %v1919_v37, %v1904_v17  ;;  %v3091_v17 = vld [vmem:[%s6483_s14 + $0x78] sm:$0xff] }
0x18bc   :  { %v1925_v57 = vadd.f32 %v1921_v40, %v1905_v32  ;;  %v4588_v40 = vpack.c.bf16 %v3091_v17, %v3090_v3 }
0x18bd   :  { %4718 = vtanh.f32 %v1924_v29  ;;  %v6580_v29 = vld [vmem:[#allocation18_spill] sm:$0xff] }
0x18be   :  { %4720 = vtanh.f32 %v1925_v57 }
0x18bf   :  { %v1875_v6 = vpop.permute.xlu1 %1874  ;;  %v1892_v12 = vpop.permute.xlu0 %1891 }
0x18c0   :  { %v1877_v50 = vmul.f32 %v1875_v6, %v6311_v45  ;;  %v1878_v47 = vmul.f32 %v1875_v6, %v6327_v52 }
0x18c2   :  { %v1897_v5 = vadd.f32 %v1892_v12, %v1877_v50 }
0x18c3   :  { %v1894_v8 = vpop.permute.xlu1 %1893 }
0x18c4   :  { %4722 = vtanh.f32 %v1897_v5  ;;  %v1898_v48 = vadd.f32 %v1894_v8, %v1878_v47 }
0x18c6   :  { %4724 = vtanh.f32 %v1898_v48 }
0x18c7   :  { %v4719_v33 = vpop.eup %4718 }
0x18c8   :  { %v4721_v38 = vpop.eup %4720  ;;  %1942 = vrot.lane.b32.xlu0 %v4719_v33, %s4762_s7 }
0x18c9   :  { %1944 = vrot.lane.b32.xlu1 %v4721_v38, %s4762_s7 }
0x18ce   :  { %v4723_v0 = vpop.eup %4722 }
0x18cf   :  { %1930 = vrot.lane.b32.xlu0 %v4723_v0, %s4762_s7 }
0x18d0   :  { %v4725_v26 = vpop.eup %4724 }
0x18d1   :  { %1932 = vrot.lane.b32.xlu1 %v4725_v26, %s4762_s7 }
0x18e4   :  { %v3240_v53 = vpop.f32.mrb[28].mxu1 }
0x18e5   :  { %v4031_v56 = vpop.f32.mrb[29].mxu1 }
0x1923   :  { %v3164_v25 = vpop.f32.mrb[30].mxu0 }
0x1924   :  { %v3241_v43 = vadd.f32 %v3240_v53, %v3164_v25  ;;  %v4012_v39 = vpop.f32.mrb[31].mxu0 }
0x1926   :  { %v3251_v23 = vadd.f32 %v3478_v10, %v3241_v43 }
0x1928   :  { %4726 = vtanh.f32 %v3251_v23 }
0x1932   :  { %v4727_v30 = vpop.eup %4726 }
0x1933   :  { %4068 = vmatmul.mubr.msk.f32.vlgmr.msra.gmra.mrb[30].mxu1 %vm536_vm14, %v4727_v30 }
0x193a   :  { %v1943_v16 = vpop.permute.xlu0 %1942 }
0x193b   :  { %v1945_v34 = vpop.permute.xlu1 %1944  ;;  %v1948_v60 = vmul.f32 %v1943_v16, %v6267_v24  ;;  %v3087_v24 = vld [vmem:[%s6483_s14 + $0x58] sm:$0xff] }
0x193c   :  { %v1949_v63 = vmul.f32 %v1945_v34, %v6276_v18  ;;  %v4582_v61 = vpack.c.bf16 %v3087_v24, %v3086_v7 }
0x193d   :  { %v1964_v11 = vrot.slane %v1948_v60, 7 }
0x193e   :  { %v1965_v18 = vrot.slane %v1949_v63, 7  ;;  %4583 = vmatpush3.bf16.msra.mxu0 %v4582_v61 }
0x193f   :  { %4584 = vmatprep.subr.bf16.mxu0 %v6553_v19 }
0x1940   :  { %v1966_v35 = vsel %vm1954_vm4, %v1964_v11, %v1965_v18 }
0x1941   :  { %1967 = vrot.lane.b32.xlu0 %v1966_v35, %s4763_s25  ;;  %v1931_v4 = vpop.permute.xlu0 %1930 }
0x1942   :  { %v1936_v14 = vmul.f32 %v1931_v4, %v6311_v45  ;;  %4586 = vmatpush3.bf16.msra.mxu0 %v4585_v51 }
0x1943   :  { %v1933_v20 = vpop.permute.xlu1 %1932  ;;  %4587 = vmatprep.subr.bf16.mxu0 %v6553_v19 }
0x1944   :  { %v1937_v1 = vmul.f32 %v1933_v20, %v6327_v52  ;;  %v1955_v32 = vrot.slane %v1936_v14, 7 }
0x1946   :  { %v1956_v37 = vrot.slane %v1937_v1, 7  ;;  %4589 = vmatpush3.bf16.msra.mxu0 %v4588_v40 }
0x1948   :  { %v1957_v45 = vsel %vm1954_vm4, %v1955_v32, %v1956_v37 }
0x1949   :  { %1958 = vrot.lane.b32.xlu1 %v1957_v45, %s4763_s25 }
0x19b3   :  { %v1968_v52 = vpop.permute.xlu0 %1967 }
0x19b4   :  { %v1970_v57 = vsel %vm1951_vm10, %v1968_v52, %v6580_v29 }
0x19b5   :  { %1972 = vrot.lane.b32.xlu0 %v1970_v57, %s4763_s25  ;;  %s4734_s25 = scalar_lea.vmem %s3416_s2, 32 }
0x19b6   :  { %p4735_p0 = scmp.ne.s32.totalorder %s3416_s2, %s4734_s25  ;;  %p4740_p2 = scmp.lt.s32.totalorder %s4734_s25, %s4734_s25 }
0x19b8   :  { %p4741_p3 = por %p4740_p2, %p4739_p1 }
0x19ba   :  { %p4742_p4 = pnand %p4741_p3, %p4735_p0 }
0x19bb   :  { %v1959_v12 = vpop.permute.xlu1 %1958 }
0x19bc   :  { %v1961_v47 = vsel %vm1950_vm11, %v1959_v12, %v6153_v27 }
0x1a06   :  { %v3395_v6 = vpop.f32.mrb[30].mxu1 }
0x1a07   :  { %v4069_v50 = vpop.f32.mrb[31].mxu1 }
0x1a27   :  { %v1973_v5 = vpop.permute.xlu0 %1972 }
0x1a28   :  { %v1975_v19 = vsel %vm677_vm13, %v1961_v47, %v1973_v5 }
0x1a29   :  { %4049 = vmatmul.mubr.msk.f32.vlgmr.msra.gmra.mrb[32].mxu0 %vm536_vm14, %v1975_v19 }
0x1afc   :  { %v3322_v8 = vpop.f32.mrb[32].mxu0 }
0x1afd   :  { %v3396_v48 = vadd.f32 %v3395_v6, %v3322_v8  ;;  %v4050_v33 = vpop.f32.mrb[33].mxu0 }
0x1aff   :  { %v3406_v38 = vadd.f32 %v3481_v59, %v3396_v48 }
0x1b01   :  { %3408 = vst.msk [vmem:[#allocation2] sm:$0x3] %vm3407_vm12, %v3406_v38 }
0x1b02   :  { %4745 = shalt.err (!%p4742_p4)
}
0x1b03   :  { %s4746_s5 = scalar_lea.hbm %s6485_s16, 32 }
0x1b04   :  { %p4747_p5 = scmp.ne.s32.totalorder %s6485_s16, %s4746_s5  ;;  %p4750_p6 = scmp.lt.u32.totalorder %s4746_s5, %s6485_s16 }
0x1b06   :  { %p4752_p7 = pnand %p4750_p6, %p4747_p5 }
0x1b08   :  { %4755 = shalt.err (!%p4752_p7)
}
0x1b09   :  { %3418 = dma.vmem_to_hbm [thread:$0]  %s3416_s2, 32, %s6485_s16, [#allocation3]  }
0x1b0a   :  { %4756 = dma.done.wait [#allocation3], 32  }
0x1b0b   :  { %4757 = vsyncadd [#allocation3], 4294967264 }
0x1b0c   :  { %3422 = vsyncpa [#allocation3], 1 }

</bundles_post_ra>
